<compile_context>
chip_gen: v7x
topology: tpu7x:2x2x1
jax: 0.10.0
libtpu: 0.0.40
codegen_flags: <defaults>
</compile_context>

<pallas_src>
import numpy as np

import jax
import jax.numpy as jnp
from jax import lax
from jax.experimental import pallas as pl
from jax.experimental.pallas import tpu as pltpu


# NT matmul: contract the lane (K) axis of both operands:
# (Cout, Q) . (S, Q) -> (Cout, S).  Same dimension_numbers the TPU
# flash-attention kernels use for q @ k^T; lowers straight onto the MXU.
_NT_DIMS = (((1,), (1,)), ((), ()))


def _make_down_kernel(row_offsets, n_rows):
    """Kernel for one sample of the stride-2 3x3x3 conv.

    x_ref: (1, S+R, Q)  bf16 phase-split padded input (Q = 8*Cin lanes)
    w_ref: (8, Cout, Q) bf16 offset-group weight slabs (zero-filled lanes for
                        phase combos a tap group does not use)
    b_ref: (Cout, 1)    f32 bias
    o_ref: (1, Cout, S) f32 conv output on the full coarse lattice
    """
    def kernel(x_ref, w_ref, b_ref, o_ref):
        acc = None
        for g, r in enumerate(row_offsets):          # 8 static offset groups
            xg = x_ref[0, r:r + n_rows, :]           # (S, Q) static slice
            part = lax.dot_general(w_ref[g], xg, _NT_DIMS,
                                   preferred_element_type=jnp.float32)
            acc = part if acc is None else acc + part
        # Keep f32 output to match torch Conv3d; flip to bf16 here if the
        # downstream GroupNorm accepts bf16 activations.
        o_ref[0] = (acc + b_ref[...]).astype(o_ref.dtype)
    return kernel


@jax.jit
def down_forward(x, weight, bias):
    """Conv3d(kernel=3, stride=2, padding=1), NCDHW in / NCDHW out.

    x:      (N, Cin, D, H, W) float32   (even D, H, W, as in the Encoder)
    weight: (Cout, Cin, 3, 3, 3) float32
    bias:   (Cout,) float32
    """
    N, Cin, D, H, W = x.shape
    Cout = weight.shape[0]
    assert D % 2 == 0 and H % 2 == 0 and W % 2 == 0, "expect even spatial dims"
    Do, Ho, Wo = D // 2, H // 2, W // 2
    Ad, Ah, Aw = Do + 1, Ho + 1, Wo + 1      # coarse (phase) lattice extents
    S = Ad * Ah * Aw                         # coarse lattice rows (over-computed)
    Q = 8 * Cin                              # (p_d, p_h, p_w, cin) lane axis
    R = Ah * Aw + Aw + 1                     # max row shift over offset groups
    row_offsets = tuple(ad * Ah * Aw + ah * Aw + aw
                        for ad in (0, 1) for ah in (0, 1) for aw in (0, 1))

    # ---- glue (one small fusion): phase-split padded input, NO im2col ------
    x_cl = jnp.transpose(x, (0, 2, 3, 4, 1)).astype(jnp.bfloat16)     # NDHWC
    xp = jnp.pad(x_cl, ((0, 0), (1, 1), (1, 1), (1, 1), (0, 0)))      # (N,D+2,H+2,W+2,C)
    xq = xp.reshape(N, Ad, 2, Ah, 2, Aw, 2, Cin)                      # split phases
    xq = jnp.transpose(xq, (0, 1, 3, 5, 2, 4, 6, 7))                  # (N,Ad,Ah,Aw,2,2,2,C)
    x3 = xq.reshape(N, S, Q)
    x3 = jnp.pad(x3, ((0, 0), (0, R), (0, 0)))                        # (N, S+R, Q)

    # ---- weight -> 8 offset-group slabs over the (p_d,p_h,p_w,cin) lanes ---
    # Constant 0/1 placement tensor built at trace time: padded index
    # 2*o + k == 2*(o + off[k]) + phase[k].
    phase = (0, 1, 0)
    off = (0, 0, 1)
    sel = np.zeros((2, 2, 2, 2, 2, 2, 3, 3, 3), np.float32)
    for kd in range(3):
        for kh in range(3):
            for kw in range(3):
                sel[off[kd], off[kh], off[kw],
                    phase[kd], phase[kh], phase[kw], kd, kh, kw] = 1.0
    sel = sel.reshape(8, 2, 2, 2, 3, 3, 3)                            # (g, p_d,p_h,p_w, kd,kh,kw)
    wg = jnp.einsum('gxyzdef,ocdef->goxyzc', sel, weight.astype(jnp.float32))
    wg = wg.reshape(8, Cout, Q).astype(jnp.bfloat16)                  # (8, Cout, 8*Cin)
    b2 = bias.astype(jnp.float32).reshape(Cout, 1)

    # ---- VMEM budget / cost hint (right-sized, not the v7x physical max) ---
    x_blk = (S + R) * Q * 2
    w_blk = 8 * Cout * Q * 2
    o_blk = Cout * S * 4
    vmem_limit = int(min(32 * 1024 * 1024,
                         max(8 * 1024 * 1024, 4 * (x_blk + w_blk + o_blk))))
    cost = pl.CostEstimate(
        flops=int(2 * N * 8 * Cout * Q * S),
        transcendentals=0,
        bytes_accessed=int(x3.size * 2 + wg.size * 2 + b2.size * 4
                           + N * Cout * S * 4),
    )

    kernel = _make_down_kernel(row_offsets, S)

    out_full = pl.pallas_call(
        kernel,
        out_shape=jax.ShapeDtypeStruct((N, Cout, S), jnp.float32),
        grid=(N,),
        in_specs=[
            pl.BlockSpec((1, S + R, Q), lambda n: (n, 0, 0)),   # per-sample input
            pl.BlockSpec((8, Cout, Q), lambda n: (0, 0, 0)),    # resident weights
            pl.BlockSpec((Cout, 1), lambda n: (0, 0)),          # resident bias
        ],
        out_specs=pl.BlockSpec((1, Cout, S), lambda n: (n, 0, 0)),
        compiler_params=pltpu.CompilerParams(
            dimension_semantics=("parallel",),   # samples shard across v7x's 2 TCs
            vmem_limit_bytes=vmem_limit,
        ),
        cost_estimate=cost,
    )(x3, wg, b2)

    # Boundary rows of the coarse lattice were over-computed: slice them off.
    # Output is already channel-major per sample -> no transpose needed.
    out = out_full.reshape(N, Cout, Ad, Ah, Aw)[:, :, :Do, :Ho, :Wo]
    return out


if __name__ == "__main__":
    # Shapes consistent with Encoder(modalities, start_channels=8) on a 16^3
    # volume: down1: 8->16 @ 16^3, down2: 16->32 @ 8^3, down3: 32->64 @ 4^3.
    N = 2
    sc = 8
    spatial = 16
    configs = [
        (sc, 2 * sc, spatial),
        (2 * sc, 4 * sc, spatial // 2),
        (4 * sc, 8 * sc, spatial // 4),
    ]

    key = jax.random.PRNGKey(0)
    for li, (cin, cout, s) in enumerate(configs, start=1):
        key, kx, kw, kb = jax.random.split(key, 4)
        x = jax.random.normal(kx, (N, cin, s, s, s), dtype=jnp.float32)
        fan_in = cin * 27
        bound = float(1.0 / np.sqrt(fan_in))
        weight = jax.random.uniform(kw, (cout, cin, 3, 3, 3), jnp.float32,
                                    -bound, bound)
        bias = jax.random.uniform(kb, (cout,), jnp.float32, -bound, bound)

        y = jax.block_until_ready(down_forward(x, weight, bias))

        # f32 reference (torch Conv3d stride=2 pad=1 semantics)
        ref_f32 = lax.conv_general_dilated(
            x, weight, window_strides=(2, 2, 2), padding=((1, 1),) * 3,
            dimension_numbers=("NCDHW", "OIDHW", "NCDHW"),
        ) + bias.reshape(1, cout, 1, 1, 1)
        # bf16-input / f32-accumulate reference (same arithmetic as the kernel)
        ref_bf16 = lax.conv_general_dilated(
            x.astype(jnp.bfloat16), weight.astype(jnp.bfloat16),
            window_strides=(2, 2, 2), padding=((1, 1),) * 3,
            dimension_numbers=("NCDHW", "OIDHW", "NCDHW"),
            preferred_element_type=jnp.float32,
        ) + bias.reshape(1, cout, 1, 1, 1)

        assert y.shape == ref_f32.shape, (y.shape, ref_f32.shape)
        assert jnp.allclose(y, ref_bf16, rtol=5e-3, atol=5e-3), \
            f"down{li}: mismatch vs bf16 ref"
        assert jnp.allclose(y, ref_f32, rtol=3e-2, atol=3e-2), \
            f"down{li}: mismatch vs f32 ref"

    print("KERNEL_OK")
</pallas_src>

<mosaic_0001>
module attributes {stable_mosaic.version = 11 : i64} {
  func.func @kernel(%arg0: i32, %arg1: memref<1x820x64xbf16, #tpu.memory_space<vmem>>, %arg2: memref<8x16x64xbf16, #tpu.memory_space<vmem>>, %arg3: memref<16x1xf32, #tpu.memory_space<vmem>>, %arg4: memref<1x16x729xf32, #tpu.memory_space<vmem>>) attributes {dimension_semantics = [#tpu.dimension_semantics<parallel>], iteration_bounds = array<i64: 2>, scalar_prefetch = 0 : i64, scratch_operands = 0 : i64, tpu.core_type = #tpu.core_type<tc>, window_params = [{transform_indices = @transform_0, window_bounds = array<i64: 1, 820, 64>}, {pipeline_mode = #tpu.pipeline_mode<synchronous>, transform_indices = @transform_1, window_bounds = array<i64: 8, 16, 64>}, {pipeline_mode = #tpu.pipeline_mode<synchronous>, transform_indices = @transform_2, window_bounds = array<i64: 16, 1>}, {transform_indices = @transform_3, window_bounds = array<i64: 1, 16, 729>}]} {
    %c0 = arith.constant 0 : index
    %c0_0 = arith.constant 0 : index
    %c0_1 = arith.constant 0 : index
    %0 = vector.load %arg1[%c0, %c0_0, %c0_1] : memref<1x820x64xbf16, #tpu.memory_space<vmem>>, vector<1x729x64xbf16>
    %1 = vector.shape_cast %0 : vector<1x729x64xbf16> to vector<729x64xbf16>
    %c0_2 = arith.constant 0 : index
    %c0_3 = arith.constant 0 : index
    %c0_4 = arith.constant 0 : index
    %2 = vector.load %arg2[%c0_2, %c0_3, %c0_4] : memref<8x16x64xbf16, #tpu.memory_space<vmem>>, vector<1x16x64xbf16>
    %3 = vector.shape_cast %2 : vector<1x16x64xbf16> to vector<16x64xbf16>
    %cst = arith.constant dense<0.000000e+00> : vector<16x729xf32>
    %4 = tpu.matmul %3, %1, %cst {dimension_numbers = #tpu.dot_dimension_numbers<[1], [1], [0], [0], [0, 0, 1, 0], [], []>} : vector<16x64xbf16>, vector<729x64xbf16>, vector<16x729xf32> -> vector<16x729xf32>
    %c0_5 = arith.constant 0 : index
    %c1 = arith.constant 1 : index
    %c0_6 = arith.constant 0 : index
    %5 = vector.load %arg1[%c0_5, %c1, %c0_6] : memref<1x820x64xbf16, #tpu.memory_space<vmem>>, vector<1x729x64xbf16>
    %6 = vector.shape_cast %5 : vector<1x729x64xbf16> to vector<729x64xbf16>
    %c1_7 = arith.constant 1 : index
    %c0_8 = arith.constant 0 : index
    %c0_9 = arith.constant 0 : index
    %7 = vector.load %arg2[%c1_7, %c0_8, %c0_9] : memref<8x16x64xbf16, #tpu.memory_space<vmem>>, vector<1x16x64xbf16>
    %8 = vector.shape_cast %7 : vector<1x16x64xbf16> to vector<16x64xbf16>
    %cst_10 = arith.constant dense<0.000000e+00> : vector<16x729xf32>
    %9 = tpu.matmul %8, %6, %cst_10 {dimension_numbers = #tpu.dot_dimension_numbers<[1], [1], [0], [0], [0, 0, 1, 0], [], []>} : vector<16x64xbf16>, vector<729x64xbf16>, vector<16x729xf32> -> vector<16x729xf32>
    %10 = arith.addf %4, %9 : vector<16x729xf32>
    %c0_11 = arith.constant 0 : index
    %c9 = arith.constant 9 : index
    %c0_12 = arith.constant 0 : index
    %11 = vector.load %arg1[%c0_11, %c9, %c0_12] : memref<1x820x64xbf16, #tpu.memory_space<vmem>>, vector<1x729x64xbf16>
    %12 = vector.shape_cast %11 : vector<1x729x64xbf16> to vector<729x64xbf16>
    %c2 = arith.constant 2 : index
    %c0_13 = arith.constant 0 : index
    %c0_14 = arith.constant 0 : index
    %13 = vector.load %arg2[%c2, %c0_13, %c0_14] : memref<8x16x64xbf16, #tpu.memory_space<vmem>>, vector<1x16x64xbf16>
    %14 = vector.shape_cast %13 : vector<1x16x64xbf16> to vector<16x64xbf16>
    %cst_15 = arith.constant dense<0.000000e+00> : vector<16x729xf32>
    %15 = tpu.matmul %14, %12, %cst_15 {dimension_numbers = #tpu.dot_dimension_numbers<[1], [1], [0], [0], [0, 0, 1, 0], [], []>} : vector<16x64xbf16>, vector<729x64xbf16>, vector<16x729xf32> -> vector<16x729xf32>
    %16 = arith.addf %10, %15 : vector<16x729xf32>
    %c0_16 = arith.constant 0 : index
    %c10 = arith.constant 10 : index
    %c0_17 = arith.constant 0 : index
    %17 = vector.load %arg1[%c0_16, %c10, %c0_17] : memref<1x820x64xbf16, #tpu.memory_space<vmem>>, vector<1x729x64xbf16>
    %18 = vector.shape_cast %17 : vector<1x729x64xbf16> to vector<729x64xbf16>
    %c3 = arith.constant 3 : index
    %c0_18 = arith.constant 0 : index
    %c0_19 = arith.constant 0 : index
    %19 = vector.load %arg2[%c3, %c0_18, %c0_19] : memref<8x16x64xbf16, #tpu.memory_space<vmem>>, vector<1x16x64xbf16>
    %20 = vector.shape_cast %19 : vector<1x16x64xbf16> to vector<16x64xbf16>
    %cst_20 = arith.constant dense<0.000000e+00> : vector<16x729xf32>
    %21 = tpu.matmul %20, %18, %cst_20 {dimension_numbers = #tpu.dot_dimension_numbers<[1], [1], [0], [0], [0, 0, 1, 0], [], []>} : vector<16x64xbf16>, vector<729x64xbf16>, vector<16x729xf32> -> vector<16x729xf32>
    %22 = arith.addf %16, %21 : vector<16x729xf32>
    %c0_21 = arith.constant 0 : index
    %c81 = arith.constant 81 : index
    %c0_22 = arith.constant 0 : index
    %23 = vector.load %arg1[%c0_21, %c81, %c0_22] : memref<1x820x64xbf16, #tpu.memory_space<vmem>>, vector<1x729x64xbf16>
    %24 = vector.shape_cast %23 : vector<1x729x64xbf16> to vector<729x64xbf16>
    %c4 = arith.constant 4 : index
    %c0_23 = arith.constant 0 : index
    %c0_24 = arith.constant 0 : index
    %25 = vector.load %arg2[%c4, %c0_23, %c0_24] : memref<8x16x64xbf16, #tpu.memory_space<vmem>>, vector<1x16x64xbf16>
    %26 = vector.shape_cast %25 : vector<1x16x64xbf16> to vector<16x64xbf16>
    %cst_25 = arith.constant dense<0.000000e+00> : vector<16x729xf32>
    %27 = tpu.matmul %26, %24, %cst_25 {dimension_numbers = #tpu.dot_dimension_numbers<[1], [1], [0], [0], [0, 0, 1, 0], [], []>} : vector<16x64xbf16>, vector<729x64xbf16>, vector<16x729xf32> -> vector<16x729xf32>
    %28 = arith.addf %22, %27 : vector<16x729xf32>
    %c0_26 = arith.constant 0 : index
    %c82 = arith.constant 82 : index
    %c0_27 = arith.constant 0 : index
    %29 = vector.load %arg1[%c0_26, %c82, %c0_27] : memref<1x820x64xbf16, #tpu.memory_space<vmem>>, vector<1x729x64xbf16>
    %30 = vector.shape_cast %29 : vector<1x729x64xbf16> to vector<729x64xbf16>
    %c5 = arith.constant 5 : index
    %c0_28 = arith.constant 0 : index
    %c0_29 = arith.constant 0 : index
    %31 = vector.load %arg2[%c5, %c0_28, %c0_29] : memref<8x16x64xbf16, #tpu.memory_space<vmem>>, vector<1x16x64xbf16>
    %32 = vector.shape_cast %31 : vector<1x16x64xbf16> to vector<16x64xbf16>
    %cst_30 = arith.constant dense<0.000000e+00> : vector<16x729xf32>
    %33 = tpu.matmul %32, %30, %cst_30 {dimension_numbers = #tpu.dot_dimension_numbers<[1], [1], [0], [0], [0, 0, 1, 0], [], []>} : vector<16x64xbf16>, vector<729x64xbf16>, vector<16x729xf32> -> vector<16x729xf32>
    %34 = arith.addf %28, %33 : vector<16x729xf32>
    %c0_31 = arith.constant 0 : index
    %c90 = arith.constant 90 : index
    %c0_32 = arith.constant 0 : index
    %35 = vector.load %arg1[%c0_31, %c90, %c0_32] : memref<1x820x64xbf16, #tpu.memory_space<vmem>>, vector<1x729x64xbf16>
    %36 = vector.shape_cast %35 : vector<1x729x64xbf16> to vector<729x64xbf16>
    %c6 = arith.constant 6 : index
    %c0_33 = arith.constant 0 : index
    %c0_34 = arith.constant 0 : index
    %37 = vector.load %arg2[%c6, %c0_33, %c0_34] : memref<8x16x64xbf16, #tpu.memory_space<vmem>>, vector<1x16x64xbf16>
    %38 = vector.shape_cast %37 : vector<1x16x64xbf16> to vector<16x64xbf16>
    %cst_35 = arith.constant dense<0.000000e+00> : vector<16x729xf32>
    %39 = tpu.matmul %38, %36, %cst_35 {dimension_numbers = #tpu.dot_dimension_numbers<[1], [1], [0], [0], [0, 0, 1, 0], [], []>} : vector<16x64xbf16>, vector<729x64xbf16>, vector<16x729xf32> -> vector<16x729xf32>
    %40 = arith.addf %34, %39 : vector<16x729xf32>
    %c0_36 = arith.constant 0 : index
    %c91 = arith.constant 91 : index
    %c0_37 = arith.constant 0 : index
    %41 = vector.load %arg1[%c0_36, %c91, %c0_37] : memref<1x820x64xbf16, #tpu.memory_space<vmem>>, vector<1x729x64xbf16>
    %42 = vector.shape_cast %41 : vector<1x729x64xbf16> to vector<729x64xbf16>
    %c7 = arith.constant 7 : index
    %c0_38 = arith.constant 0 : index
    %c0_39 = arith.constant 0 : index
    %43 = vector.load %arg2[%c7, %c0_38, %c0_39] : memref<8x16x64xbf16, #tpu.memory_space<vmem>>, vector<1x16x64xbf16>
    %44 = vector.shape_cast %43 : vector<1x16x64xbf16> to vector<16x64xbf16>
    %cst_40 = arith.constant dense<0.000000e+00> : vector<16x729xf32>
    %45 = tpu.matmul %44, %42, %cst_40 {dimension_numbers = #tpu.dot_dimension_numbers<[1], [1], [0], [0], [0, 0, 1, 0], [], []>} : vector<16x64xbf16>, vector<729x64xbf16>, vector<16x729xf32> -> vector<16x729xf32>
    %46 = arith.addf %40, %45 : vector<16x729xf32>
    %c0_41 = arith.constant 0 : index
    %c0_42 = arith.constant 0 : index
    %47 = vector.load %arg3[%c0_41, %c0_42] : memref<16x1xf32, #tpu.memory_space<vmem>>, vector<16x1xf32>
    %48 = vector.broadcast %47 : vector<16x1xf32> to vector<16x729xf32>
    %49 = arith.addf %46, %48 : vector<16x729xf32>
    %c0_43 = arith.constant 0 : index
    %c0_44 = arith.constant 0 : index
    %c0_45 = arith.constant 0 : index
    %50 = vector.load %arg4[%c0_43, %c0_44, %c0_45] : memref<1x16x729xf32, #tpu.memory_space<vmem>>, vector<1x16x729xf32>
    %51 = vector.shape_cast %50 : vector<1x16x729xf32> to vector<16x729xf32>
    %52 = vector.shape_cast %49 : vector<16x729xf32> to vector<1x16x729xf32>
    tpu.vector_store %arg4[%c0_43, %c0_44, %c0_45], %52 {strides = array<i32>} : memref<1x16x729xf32, #tpu.memory_space<vmem>>, vector<1x16x729xf32>,
    return
  }
  func.func @transform_0(%arg0: i32) -> (i32, i32, i32) {
    %c0_i32 = arith.constant 0 : i32
    %c0_i32_0 = arith.constant 0 : i32
    %c0_i32_1 = arith.constant 0 : i32
    return %arg0, %c0_i32, %c0_i32_0 : i32, i32, i32
  }
  func.func @transform_1(%arg0: i32) -> (i32, i32, i32) {
    %c0_i32 = arith.constant 0 : i32
    %c0_i32_0 = arith.constant 0 : i32
    %c0_i32_1 = arith.constant 0 : i32
    %c0_i32_2 = arith.constant 0 : i32
    return %c0_i32, %c0_i32_0, %c0_i32_1 : i32, i32, i32
  }
  func.func @transform_2(%arg0: i32) -> (i32, i32) {
    %c0_i32 = arith.constant 0 : i32
    %c0_i32_0 = arith.constant 0 : i32
    %c0_i32_1 = arith.constant 0 : i32
    return %c0_i32, %c0_i32_0 : i32, i32
  }
  func.func @transform_3(%arg0: i32) -> (i32, i32, i32) {
    %c0_i32 = arith.constant 0 : i32
    %c0_i32_0 = arith.constant 0 : i32
    %c0_i32_1 = arith.constant 0 : i32
    return %arg0, %c0_i32, %c0_i32_0 : i32, i32, i32
  }
}

</mosaic_0001>

<bundles_post_ra>
// kernel: down_forward.1
= control target key start
LH: loop header
LB: loop body
LE: loop exit
PB: predicated region body
PF: predicated region fallthrough
CT: control target
= control target key end

     0   :  { %s6623_s12 = smov 0   ;;  %s8875_s0 = inlined_call_operand.vmem [shape: bf16[2,820,64], index: 0, kind: input, shape index: {}]   ;;  %s8876_s1 = inlined_call_operand.vmem [shape: bf16[8,16,64], index: 1, kind: input, shape index: {}]   ;;  %s8877_s2 = inlined_call_operand.vmem [shape: f32[16,1], index: 2, kind: input, shape index: {}]   ;;  %s8878_s3 = inlined_call_operand.vmem [shape: f32[2,16,729], index: 3, kind: output, shape index: {}]  }
   0x1 LB: > { %s5608_s13 = sadd.s32 4294967295, %s6600_s12   ;;  %p5612_p0 = scmp.ge.s32.totalorder %s6600_s12, 1  ;;  %s6600_s12 = sphi %s6623_s12, %s13_s12  }
   0x2   : > { %p137_p1 = scmp.lt.s32.totalorder %s6600_s12, 3 }
   0x4   : > { %p138_p2 = pnand %p5612_p0, %p137_p1 }
   0x6   : > { %141 = sbr.rel (%p138_p2) target bundleno = 1209 (0x4b9), region = 32 }
   0xd   : > { %p161_p3 = scmp.lt.s32.totalorder %s5608_s13, 1  ;;  %v6634_v0 = vld [vmem:[%s8876_s1 + $0x8] sm:$0xff]   ;;  %vm872_vm0 = vcmask 523264   ;;  %v8880_v1 = vmov 0   ;;  %vm504_vm1 = vsmask.f32 7424 }
   0xe   : > { %6362 = vset.pattern.permute.xlu0 %v8880_v1  ;;  %5867 = vmatprep.mubr.msk.bf16.mxu0 %vm872_vm0, %v6634_v0  ;;  %vm2367_vm2 = vcmask 1046528   ;;  %vm4820_vm3 = vsmask.f32 6400  ;;  %vm5545_vm4 = vcmask 728064  }
   0xf   : > { %s8974_s13 = smov (!%p161_p3, %s5608_s13), 1  ;;  %5885 = vmatprep.mubr.msk.bf16.mxu1 %vm872_vm0, %v6634_v0 }
  0x10   : > { %s6351_s16 = smul.u32 412, %s8974_s13 }
  0x12   : > { %s6647_s19 = scalar_lea.vmem %s8875_s0, %s6351_s16 }
  0x13   : > { %v6650_v2 = vld [vmem:[%s6647_s19 + $0x40] sm:$0xff]   ;;  %v6653_v3 = vld [vmem:[%s6647_s19 + $0x48] sm:$0xff]   ;;  %v6682_v33 = vld [vmem:[%s6647_s19 + $0x50] sm:$0xff]  }
  0x14   : > { %v569_v4 = vshll.u32 %v6650_v2, 16  ;;  %v573_v5 = vshrl.u32 %v6650_v2, 16  ;;  %v577_v6 = vshll.u32 %v6653_v3, 16  ;;  %v6365_v7 = vld [vmem:[%s6647_s19 + $0xc0] sm:$0xff]   ;;  %v6366_v8 = vld [vmem:[%s6647_s19 + $0xc8] sm:$0xff]   ;;  %v581_v15 = vshrl.u32 %v6653_v3, 16 }
  0x15   : > { %v697_v11 = vshll.u32 %v6365_v7, 16  ;;  %v701_v12 = vshrl.u32 %v6365_v7, 16  ;;  %v705_v13 = vshll.u32 %v6366_v8, 16  ;;  %v709_v16 = vshrl.u32 %v6366_v8, 16  ;;  %v6665_v17 = vld [vmem:[%s6647_s19] sm:$0xff]   ;;  %v6668_v18 = vld [vmem:[%s6647_s19 + $0x8] sm:$0xff]  }
  0x16   : > { %v6660_v9 = vrot.slane %v569_v4, 1  ;;  %v579_v10 = vrot.slane %v577_v6, 1  ;;  %v506_v22 = vshrl.u32 %v6665_v17, 16  ;;  %v508_v23 = vshll.u32 %v6665_v17, 16  ;;  %v6369_v25 = vld [vmem:[%s6647_s19 + $0x80] sm:$0xff]   ;;  %v6370_v27 = vld [vmem:[%s6647_s19 + $0x88] sm:$0xff]  }
  0x17   : > { %v6670_v19 = vrot.slane %v697_v11, 1  ;;  %v707_v20 = vrot.slane %v705_v13, 1  ;;  %v513_v24 = vshll.u32 %v6668_v18, 16  ;;  %v517_v28 = vshrl.u32 %v6668_v18, 16  ;;  %v6372_v34 = vld [vmem:[%s6647_s19 + $0xd0] sm:$0xff]   ;;  %v6702_v59 = vld [vmem:[%s6647_s19 + $0x58] sm:$0xff]  }
  0x18   : > { %v575_v14 = vor.u32 %v573_v5, %v6660_v9  ;;  %v510_v29 = vrot.slane %v508_v23, 1  ;;  %v633_v31 = vshll.u32 %v6369_v25, 16  ;;  %v637_v32 = vshrl.u32 %v6369_v25, 16  ;;  %v6687_v39 = vld [vmem:[%s6647_s19 + $0x10] sm:$0xff]   ;;  %v6376_v5 = vld [vmem:[%s6647_s19 + $0xd8] sm:$0xff]  }
  0x19   : > { %v703_v26 = vor.u32 %v701_v12, %v6670_v19  ;;  %v515_v30 = vrot.slane %v513_v24, 1  ;;  %v583_v35 = vor.u32 %v581_v15, %v579_v10  ;;  %v711_v37 = vor.u32 %v709_v16, %v707_v20  ;;  %v6374_v44 = vld [vmem:[%s6647_s19 + $0x90] sm:$0xff]   ;;  %v6710_v6 = vld [vmem:[%s6647_s19 + $0x18] sm:$0xff]   ;;  %v6719_v16 = vld [vmem:[%s6647_s19 + $0x60] sm:$0xff]  }
  0x1a   : > { %v580_v21 = vsel %vm504_vm1, %v575_v14, %v579_v10  ;;  %v641_v38 = vshll.u32 %v6370_v27, 16  ;;  %v511_v40 = vor.u32 %v510_v29, %v506_v22  ;;  %v6690_v41 = vrot.slane %v633_v31, 1  ;;  %v6378_v12 = vld [vmem:[%s6647_s19 + $0x98] sm:$0xff]   ;;  %v6380_v24 = vld [vmem:[%s6647_s19 + $0xe0] sm:$0xff]  }
  0x1b   : > { %6223 = vmatprep.subr.msk.bf16.mxu0 %vm872_vm0, %v580_v21  ;;  %v708_v36 = vsel %vm504_vm1, %v703_v26, %v707_v20  ;;  %v585_v42 = vshll.u32 %v6682_v33, 16  ;;  %v713_v43 = vshll.u32 %v6372_v34, 16  ;;  %v519_v46 = vor.u32 %v517_v28, %v515_v30  ;;  %v6724_v29 = vld [vmem:[%s6647_s19 + $0x20] sm:$0xff]  }
  0x1c   : > { %6231 = vmatprep.subr.msk.bf16.mxu1 %vm872_vm0, %v708_v36  ;;  %v643_v45 = vrot.slane %v641_v38, 1  ;;  %v521_v47 = vshll.u32 %v6687_v39, 16  ;;  %v516_v48 = vsel %vm504_vm1, %v511_v40, %v515_v30  ;;  %v639_v49 = vor.u32 %v637_v32, %v6690_v41 }
  0x1d   : > { %v587_v50 = vrot.slane %v585_v42, 1  ;;  %v715_v51 = vrot.slane %v713_v43, 1  ;;  %v877_v52 = vsel %vm872_vm0, %v516_v48, 0  ;;  %v645_v54 = vshrl.u32 %v6370_v27, 16  ;;  %v6382_v43 = vld [vmem:[%s6647_s19 + $0xa0] sm:$0xff]   ;;  %v6737_v48 = vld [vmem:[%s6647_s19 + $0x68] sm:$0xff]  }
  0x1e   : > { %v523_v53 = vrot.slane %v521_v47, 1  ;;  %v649_v55 = vshll.u32 %v6374_v44, 16  ;;  %5852 = vmatpush3.bf16.xpose.msra.mxu0 %v877_v52  ;;  %v644_v56 = vsel %vm504_vm1, %v639_v49, %v643_v45  ;;  %v589_v60 = vshrl.u32 %v6682_v33, 16 }
  0x1f   : > { %v588_v57 = vsel %vm504_vm1, %v583_v35, %v587_v50  ;;  %v716_v58 = vsel %vm504_vm1, %v711_v37, %v715_v51  ;;  %v925_v61 = vsel %vm872_vm0, %v644_v56, 0  ;;  %v647_v63 = vor.u32 %v645_v54, %v643_v45 }
  0x20   : > { %6224 = vmatprep.subr.msk.bf16.mxu0 %vm872_vm0, %v588_v57  ;;  %v524_v62 = vsel %vm504_vm1, %v519_v46, %v523_v53  ;;  %v651_v4 = vrot.slane %v649_v55, 1  ;;  %5870 = vmatpush3.bf16.xpose.msra.mxu1 %v925_v61  ;;  %v591_v8 = vor.u32 %v589_v60, %v587_v50  ;;  %v593_v10 = vshll.u32 %v6702_v59, 16 }
  0x21   : > { %v880_v7 = vsel %vm872_vm0, %v524_v62, 0  ;;  %v717_v11 = vshrl.u32 %v6372_v34, 16  ;;  %6232 = vmatprep.subr.msk.bf16.mxu1 %vm872_vm0, %v716_v58  ;;  %v721_v13 = vshll.u32 %v6376_v5, 16  ;;  %v525_v14 = vshrl.u32 %v6687_v39, 16  ;;  %v6747_v62 = vld [vmem:[%s6647_s19 + $0x28] sm:$0xff]  }
  0x22   : > { %v529_v15 = vshll.u32 %v6710_v6, 16  ;;  %v652_v20 = vsel %vm504_vm1, %v647_v63, %v651_v4  ;;  %v595_v21 = vrot.slane %v593_v10, 1  ;;  %v653_v23 = vshrl.u32 %v6374_v44, 16 }
  0x23   : > { %v719_v22 = vor.u32 %v717_v11, %v715_v51  ;;  %v723_v25 = vrot.slane %v721_v13, 1  ;;  %v527_v26 = vor.u32 %v525_v14, %v523_v53  ;;  %v657_v28 = vshll.u32 %v6378_v12, 16  ;;  %v6384_v51 = vld [vmem:[%s6647_s19 + $0xe8] sm:$0xff]  }
  0x24   : > { %v531_v27 = vrot.slane %v529_v15, 1  ;;  %v596_v30 = vsel %vm504_vm1, %v591_v8, %v595_v21  ;;  %v597_v31 = vshrl.u32 %v6702_v59, 16  ;;  %v601_v32 = vshll.u32 %v6719_v16, 16  ;;  %v6386_v11 = vld [vmem:[%s6647_s19 + $0xa8] sm:$0xff]  }
  0x25   : > { %v928_v34 = vsel %vm872_vm0, %v652_v20, 0  ;;  %v724_v35 = vsel %vm504_vm1, %v719_v22, %v723_v25  ;;  %v655_v36 = vor.u32 %v653_v23, %v651_v4  ;;  %v659_v38 = vrot.slane %v657_v28, 1  ;;  %v6388_v23 = vld [vmem:[%s6647_s19 + $0xf0] sm:$0xff]  }
  0x26   : > { %5854 = vmatpush3.bf16.xpose.msra.mxu0 %v880_v7  ;;  %v532_v37 = vsel %vm504_vm1, %v527_v26, %v531_v27  ;;  %v725_v40 = vshrl.u32 %v6376_v5, 16  ;;  %v729_v42 = vshll.u32 %v6380_v24, 16  ;;  %v599_v44 = vor.u32 %v597_v31, %v595_v21  ;;  %v6757_v21 = vld [vmem:[%s6647_s19 + $0x70] sm:$0xff]  }
  0x27   : > { %6225 = vmatprep.subr.msk.bf16.mxu0 %vm872_vm0, %v596_v30  ;;  %v603_v45 = vrot.slane %v601_v32, 1  ;;  %v533_v46 = vshrl.u32 %v6710_v6, 16  ;;  %v537_v47 = vshll.u32 %v6724_v29, 16  ;;  %v883_v49 = vsel %vm872_vm0, %v532_v37, 0  ;;  %v6765_v31 = vld [vmem:[%s6647_s19 + $0x30] sm:$0xff]  }
  0x28   : > { %5872 = vmatpush3.bf16.xpose.msra.mxu1 %v928_v34  ;;  %v731_v50 = vrot.slane %v729_v42, 1  ;;  %v660_v52 = vsel %vm504_vm1, %v655_v36, %v659_v38  ;;  %v727_v53 = vor.u32 %v725_v40, %v723_v25  ;;  %v661_v54 = vshrl.u32 %v6378_v12, 16 }
  0x29   : > { %6233 = vmatprep.subr.msk.bf16.mxu1 %vm872_vm0, %v724_v35  ;;  %v665_v55 = vshll.u32 %v6382_v43, 16  ;;  %v605_v56 = vshrl.u32 %v6719_v16, 16  ;;  %v609_v57 = vshll.u32 %v6737_v48, 16  ;;  %v604_v58 = vsel %vm504_vm1, %v599_v44, %v603_v45 }
  0x2a   : > { %v535_v60 = vor.u32 %v533_v46, %v531_v27  ;;  %v539_v61 = vrot.slane %v537_v47, 1  ;;  %v931_v63 = vsel %vm872_vm0, %v660_v52, 0  ;;  %v733_v4 = vshrl.u32 %v6380_v24, 16  ;;  %v6777_v52 = vld [vmem:[%s6647_s19 + $0x78] sm:$0xff]  }
  0x2b   : > { %v737_v5 = vshll.u32 %v6384_v51, 16  ;;  %v732_v7 = vsel %vm504_vm1, %v727_v53, %v731_v50  ;;  %v663_v8 = vor.u32 %v661_v54, %v659_v38  ;;  %v667_v10 = vrot.slane %v665_v55, 1  ;;  %v6392_v54 = vld [vmem:[%s6647_s19 + $0xf8] sm:$0xff]  }
  0x2c   : > { %v607_v12 = vor.u32 %v605_v56, %v603_v45  ;;  %v611_v13 = vrot.slane %v609_v57, 1  ;;  %v540_v14 = vsel %vm504_vm1, %v535_v60, %v539_v61  ;;  %v541_v15 = vshrl.u32 %v6724_v29, 16  ;;  %v6390_v45 = vld [vmem:[%s6647_s19 + $0xb0] sm:$0xff]  }
  0x2d   : > { %v545_v20 = vshll.u32 %v6747_v62, 16  ;;  %v739_v22 = vrot.slane %v737_v5, 1  ;;  %v668_v24 = vsel %vm504_vm1, %v663_v8, %v667_v10  ;;  %v735_v25 = vor.u32 %v733_v4, %v731_v50  ;;  %v6787_v8 = vld [vmem:[%s6647_s19 + $0x38] sm:$0xff]  }
  0x2e   : > { %5856 = vmatpush3.bf16.xpose.msra.mxu0 %v883_v49  ;;  %v669_v26 = vshrl.u32 %v6382_v43, 16  ;;  %v673_v27 = vshll.u32 %v6386_v11, 16  ;;  %v886_v28 = vsel %vm872_vm0, %v540_v14, 0  ;;  %v612_v30 = vsel %vm504_vm1, %v607_v12, %v611_v13 }
  0x2f   : > { %6226 = vmatprep.subr.msk.bf16.mxu0 %vm872_vm0, %v604_v58  ;;  %v543_v32 = vor.u32 %v541_v15, %v539_v61  ;;  %v547_v34 = vrot.slane %v545_v20, 1  ;;  %v613_v35 = vshrl.u32 %v6737_v48, 16  ;;  %v617_v36 = vshll.u32 %v6757_v21, 16  ;;  %v6394_v20 = vld [vmem:[%s6647_s19 + $0xb8] sm:$0xff]  }
  0x30   : > { %5874 = vmatpush3.bf16.xpose.msra.mxu1 %v931_v63  ;;  %v934_v37 = vsel %vm872_vm0, %v668_v24, 0  ;;  %v741_v38 = vshrl.u32 %v6384_v51, 16  ;;  %v745_v40 = vshll.u32 %v6388_v23, 16  ;;  %v740_v42 = vsel %vm504_vm1, %v735_v25, %v739_v22 }
  0x31   : > { %6234 = vmatprep.subr.msk.bf16.mxu1 %vm872_vm0, %v732_v7  ;;  %v671_v43 = vor.u32 %v669_v26, %v667_v10  ;;  %v675_v44 = vrot.slane %v673_v27, 1  ;;  %v549_v46 = vshrl.u32 %v6747_v62, 16  ;;  %v553_v47 = vshll.u32 %v6765_v31, 16 }
  0x32   : > { %v548_v49 = vsel %vm504_vm1, %v543_v32, %v547_v34  ;;  %v615_v50 = vor.u32 %v613_v35, %v611_v13  ;;  %v619_v51 = vrot.slane %v617_v36, 1  ;;  %v747_v53 = vrot.slane %v745_v40, 1  ;;  %v6395_v35 = vld [vmem:[%s6647_s19 + $0x100] sm:$0xff]  }
  0x33   : > { %v676_v55 = vsel %vm504_vm1, %v671_v43, %v675_v44  ;;  %v743_v56 = vor.u32 %v741_v38, %v739_v22  ;;  %v677_v57 = vshrl.u32 %v6386_v11, 16  ;;  %v681_v58 = vshll.u32 %v6390_v45, 16 }
  0x34   : > { %v889_v60 = vsel %vm872_vm0, %v548_v49, 0  ;;  %v551_v61 = vor.u32 %v549_v46, %v547_v34  ;;  %v555_v63 = vrot.slane %v553_v47, 1  ;;  %v620_v4 = vsel %vm504_vm1, %v615_v50, %v619_v51 }
  0x35   : > { %v621_v5 = vshrl.u32 %v6757_v21, 16  ;;  %v625_v7 = vshll.u32 %v6777_v52, 16  ;;  %v937_v10 = vsel %vm872_vm0, %v676_v55, 0  ;;  %v749_v12 = vshrl.u32 %v6388_v23, 16 }
  0x36   : > { %5858 = vmatpush3.bf16.xpose.msra.mxu0 %v886_v28  ;;  %v753_v13 = vshll.u32 %v6392_v54, 16  ;;  %v748_v11 = vsel %vm504_vm1, %v743_v56, %v747_v53  ;;  %v679_v14 = vor.u32 %v677_v57, %v675_v44  ;;  %v683_v15 = vrot.slane %v681_v58, 1 }
  0x37   : > { %6227 = vmatprep.subr.msk.bf16.mxu0 %vm872_vm0, %v612_v30  ;;  %v556_v22 = vsel %vm504_vm1, %v551_v61, %v555_v63  ;;  %v623_v24 = vor.u32 %v621_v5, %v619_v51  ;;  %v627_v25 = vrot.slane %v625_v7, 1  ;;  %v557_v26 = vshrl.u32 %v6765_v31, 16  ;;  %v6397_v7 = vld [vmem:[%s6647_s19 + $0x108] sm:$0xff]  }
  0x38   : > { %5876 = vmatpush3.bf16.xpose.msra.mxu1 %v934_v37  ;;  %v561_v27 = vshll.u32 %v6787_v8, 16  ;;  %v751_v23 = vor.u32 %v749_v12, %v747_v53  ;;  %v755_v28 = vrot.slane %v753_v13, 1  ;;  %v684_v30 = vsel %vm504_vm1, %v679_v14, %v683_v15 }
  0x39   : > { %6235 = vmatprep.subr.msk.bf16.mxu1 %vm872_vm0, %v740_v42  ;;  %v685_v32 = vshrl.u32 %v6390_v45, 16  ;;  %v689_v34 = vshll.u32 %v6394_v20, 16  ;;  %v892_v36 = vsel %vm872_vm0, %v556_v22, 0  ;;  %v628_v37 = vsel %vm504_vm1, %v623_v24, %v627_v25  ;;  %v6400_v24 = vld [vmem:[%s6647_s19 + $0x120] sm:$0xff]  }
  0x3a   : > { %v559_v38 = vor.u32 %v557_v26, %v555_v63  ;;  %v563_v40 = vrot.slane %v561_v27, 1  ;;  %v629_v42 = vshrl.u32 %v6777_v52, 16  ;;  %v940_v43 = vsel %vm872_vm0, %v684_v30, 0  ;;  %v6401_v27 = vld [vmem:[%s6647_s19 + $0x128] sm:$0xff]  }
  0x3b   : > { %v756_v44 = vsel %vm504_vm1, %v751_v23, %v755_v28  ;;  %v687_v46 = vor.u32 %v685_v32, %v683_v15  ;;  %v691_v47 = vrot.slane %v689_v34, 1  ;;  %v757_v49 = vshrl.u32 %v6392_v54, 16  ;;  %v6398_v15 = vld [vmem:[%s6647_s19 + $0x110] sm:$0xff]   ;;  %v6834_v23 = vld [vmem:[%s8876_s1] sm:$0xff]  }
  0x3c   : > { %v761_v50 = vshll.u32 %v6395_v35, 16  ;;  %v564_v45 = vsel %vm504_vm1, %v559_v38, %v563_v40  ;;  %v631_v51 = vor.u32 %v629_v42, %v627_v25  ;;  %v565_v53 = vshrl.u32 %v6787_v8, 16 }
  0x3d   : > { %v692_v55 = vsel %vm504_vm1, %v687_v46, %v691_v47  ;;  %v759_v56 = vor.u32 %v757_v49, %v755_v28  ;;  %v693_v58 = vshrl.u32 %v6394_v20, 16  ;;  %v765_v12 = vshrl.u32 %v6395_v35, 16 }
  0x3e   : > { %5860 = vmatpush3.bf16.xpose.msra.mxu0 %v889_v60  ;;  %v763_v57 = vrot.slane %v761_v50, 1  ;;  %v895_v60 = vsel %vm872_vm0, %v564_v45, 0  ;;  %v636_v54 = vsel %vm504_vm1, %v631_v51, %v6690_v41  ;;  %v567_v61 = vor.u32 %v565_v53, %v563_v40  ;;  %v6851_v50 = vld [vmem:[%s6647_s19 + $0x130] sm:$0xff]  }
  0x3f   : > { %6228 = vmatprep.subr.msk.bf16.mxu0 %vm872_vm0, %v620_v4  ;;  %v943_v63 = vsel %vm872_vm0, %v692_v55, 0  ;;  %v695_v5 = vor.u32 %v693_v58, %v691_v47  ;;  %v769_v13 = vshll.u32 %v6397_v7, 16  ;;  %v773_v26 = vshrl.u32 %v6397_v7, 16  ;;  %v6869_v58 = vld [vmem:[%s6647_s19 + $0x140] sm:$0xff]  }
  0x40   : > { %5878 = vmatpush3.bf16.xpose.msra.mxu1 %v937_v10  ;;  %v764_v4 = vsel %vm504_vm1, %v759_v56, %v763_v57  ;;  %v572_v10 = vsel %vm504_vm1, %v567_v61, %v6660_v9  ;;  %v767_v20 = vor.u32 %v765_v12, %v763_v57  ;;  %v6399_v9 = vld [vmem:[%s6647_s19 + $0x118] sm:$0xff]   ;;  %v1151_v28 = vsel %vm872_vm0, %v6665_v17, 0  ;;  %v6899_v12 = vld [vmem:[%s6647_s19 + $0x4c] sm:$0xff]  }
  0x41   : > { %6236 = vmatprep.subr.msk.bf16.mxu1 %vm872_vm0, %v748_v11  ;;  %v700_v41 = vsel %vm504_vm1, %v695_v5, %v6670_v19  ;;  %v898_v11 = vsel %vm872_vm0, %v572_v10, 0  ;;  %v771_v22 = vrot.slane %v769_v13, 1  ;;  %v777_v19 = vshll.u32 %v6398_v15, 16  ;;  %v6889_v5 = vld [vmem:[%s6647_s19 + $0x44] sm:$0xff]   ;;  %v6903_v13 = vld [vmem:[%s6647_s19 + $0xc] sm:$0xff]  }
  0x42   : > { %v946_v14 = vsel %vm872_vm0, %v700_v41, 0  ;;  %v785_v30 = vshll.u32 %v6399_v9, 16  ;;  %v781_v35 = vshrl.u32 %v6398_v15, 16  ;;  %v797_v38 = vshrl.u32 %v6400_v24, 16  ;;  %v6909_v15 = vld [vmem:[%s6647_s19 + $0x8] sm:$0xf] }
  0x43   : > { %v772_v25 = vsel %vm504_vm1, %v767_v20, %v771_v22  ;;  %v779_v34 = vrot.slane %v777_v19, 1  ;;  %v801_v40 = vshll.u32 %v6401_v27, 16  ;;  %v809_v56 = vshll.u32 %v6851_v50, 16  ;;  %v2351_v20 = vld [vmem:[%s6647_s19 + $0x4] sm:$0xe] }
  0x44   : > { %v973_v32 = vsel %vm872_vm0, %v772_v25, 0  ;;  %v787_v17 = vrot.slane %v785_v30, 1  ;;  %v6876_v61 = vsel %vm872_vm0, %v6724_v29, 0  ;;  %v6895_v10 = vsel %vm872_vm0, %v6765_v31, 0  ;;  %v6932_v30 = vld [vmem:[%s6647_s19 + $0x1c] sm:$0xff]  }
  0x45   : > { %v803_v49 = vrot.slane %v801_v40, 1  ;;  %v811_v29 = vrot.slane %v809_v56, 1  ;;  %v2383_v31 = vrot.slane %v6889_v5, 1  ;;  %v2385_v19 = vrot.slane %v6899_v12, 1 }
  0x46   : > { %5862 = vmatpush3.bf16.xpose.msra.mxu0 %v892_v36  ;;  %v789_v36 = vshrl.u32 %v6399_v9, 16  ;;  %v6918_v9 = vld [vmem:[%s6647_s19 + $0x14] sm:$0xff]   ;;  %v5726_v25 = vcombine.low %v2351_v20, %v6909_v15  ;;  %v1770_v40 = vshrl.u32 %v6889_v5, 16 }
  0x47   : > { %6229 = vmatprep.subr.msk.bf16.mxu0 %vm872_vm0, %v628_v37  ;;  %v775_v37 = vor.u32 %v773_v26, %v771_v22  ;;  %v6915_v22 = vsel %vm872_vm0, %v6787_v8, 0  ;;  %v2369_v26 = vrot.slane %v6903_v13, 1 }
  0x48   : > { %5880 = vmatpush3.bf16.xpose.msra.mxu1 %v940_v43  ;;  %v783_v43 = vor.u32 %v781_v35, %v779_v34  ;;  %v791_v46 = vor.u32 %v789_v36, %v787_v17  ;;  %v6946_v35 = vld [vmem:[%s6647_s19 + $0x148] sm:$0xff]   ;;  %v2368_v36 = vrot.slane %v5726_v25, 1  ;;  %v7014_v25 = vld [vmem:[%s6647_s19 + $0x34] sm:$0xff]  }
  0x49   : > { %6237 = vmatprep.subr.msk.bf16.mxu1 %vm872_vm0, %v756_v44  ;;  %v780_v44 = vsel %vm504_vm1, %v775_v37, %v779_v34  ;;  %v1774_v34 = vshll.u32 %v6899_v12, 16 }
  0x4a   : > { %v976_v45 = vsel %vm872_vm0, %v780_v44, 0  ;;  %v788_v51 = vsel %vm504_vm1, %v783_v43, %v787_v17  ;;  %v6954_v17 = vld [vmem:[%s6647_s19 + $0x24] sm:$0xff]   ;;  %v2373_v43 = vrot.slane %v6932_v30, 1 }
  0x4b   : > { %v6977_v56 = vrot.slane %v1774_v34, 1 }
  0x4e   : > { %5864 = vmatpush3.bf16.xpose.msra.mxu0 %v895_v60  ;;  %v979_v60 = vsel %vm872_vm0, %v788_v51, 0 }
  0x4f   : > { %6230 = vmatprep.subr.msk.bf16.mxu0 %vm872_vm0, %v636_v54  ;;  %v1157_v54 = vsel %vm872_vm0, %v6710_v6, 0  ;;  %v813_v6 = vshrl.u32 %v6851_v50, 16 }
  0x50   : > { %5882 = vmatpush3.bf16.xpose.msra.mxu1 %v943_v63  ;;  %v805_v63 = vshrl.u32 %v6401_v27, 16 }
  0x51   : > { %6238 = vmatprep.subr.msk.bf16.mxu1 %vm872_vm0, %v764_v4  ;;  %v6885_v4 = vsel %vm872_vm0, %v6747_v62, 0  ;;  %v825_v62 = vshll.u32 %v6869_v58, 16 }
  0x56   : > { %5866 = vmatpush3.bf16.xpose.msra.mxu0 %v898_v11  ;;  %v6906_v11 = vld [vmem:[%s6647_s19 + $0x54] sm:$0xff]  }
  0x57   : > { %6239 = vmatprep.subr.msk.bf16.mxu0 %vm872_vm0, %v6650_v2  ;;  %v793_v2 = vshll.u32 %v6400_v24, 16  ;;  %v6921_v24 = vld [vmem:[%s6647_s19 + $0x5c] sm:$0xff]   ;;  %v2387_v27 = vrot.slane %v6906_v11, 1 }
  0x58   : > { %5884 = vmatpush3.bf16.xpose.msra.mxu1 %v946_v14  ;;  %v807_v14 = vor.u32 %v805_v63, %v803_v49  ;;  %v6987_v63 = vld [vmem:[%s6647_s19 + $0x6c] sm:$0xff]  }
  0x59   : > { %1100 = vmatprep.subr.bf16.mxu1 %v8880_v1  ;;  %v795_v42 = vrot.slane %v793_v2, 1  ;;  %v6935_v2 = vld [vmem:[%s6647_s19 + $0x64] sm:$0xff]   ;;  %v6949_v37 = vsel %vm2367_vm2, %v2385_v19, %v2387_v27 }
  0x5a   : > { %v812_v8 = vsel %vm504_vm1, %v807_v14, %v811_v29  ;;  %v2391_v44 = vrot.slane %v6935_v2, 1 }
  0x5b   : > { %v799_v47 = vor.u32 %v797_v38, %v795_v42  ;;  %v796_v53 = vsel %vm504_vm1, %v791_v46, %v795_v42  ;;  %v2389_v38 = vrot.slane %v6921_v24, 1  ;;  %v988_v46 = vsel %vm872_vm0, %v812_v8, 0 }
  0x5c   : > { %v1710_v8 = vshll.u32 %v6903_v13, 16 }
  0x5d   : > { %5868 = vmatmul.mubr.msk.bf16.vlgmr.msra.gmra.mrb[0].mxu0 %vm872_vm0, %v6634_v0  ;;  %v804_v55 = vsel %vm504_vm1, %v799_v47, %v803_v49  ;;  %v827_v47 = vrot.slane %v825_v62, 1  ;;  %v6963_v49 = vsel %vm2367_vm2, %v2368_v36, %v2369_v26  ;;  %v6966_v50 = vsel %vm2367_vm2, %v2387_v27, %v2389_v38 }
  0x5e   : > { %5888 = vmatpush3.bf16.xpose.msra.mxu0 %v1151_v28  ;;  %5903 = vmatprep.mubr.msk.bf16.mxu0 %vm872_vm0, %v6834_v23  ;;  %v1766_v28 = vshll.u32 %v6889_v5, 16  ;;  %v6974_v51 = vsel %vm2367_vm2, %v2389_v38, %v2391_v44 }
  0x5f   : > { %5886 = vmatmul.mubr.msk.bf16.vlgmr.msra.gmra.mrb[0].mxu1 %vm872_vm0, %v6634_v0  ;;  %6240 = vmatprep.subr.msk.bf16.mxu0 %vm872_vm0, %v6653_v3  ;;  %v6854_v0 = vld [vmem:[%s6647_s19 + $0x138] sm:$0xff]   ;;  %v1153_v3 = vsel %vm872_vm0, %v6668_v18, 0  ;;  %v1155_v18 = vsel %vm872_vm0, %v6687_v39, 0  ;;  %v6881_v39 = vsel %vm872_vm0, %v804_v55, 0  ;;  %v815_v55 = vor.u32 %v813_v6, %v811_v29 }
  0x60   : > { %1101 = vmatpush1.bf16.xpose.msra.mxu1 %v973_v32  ;;  %1132 = vmatprep.mubr.bf16.mxu1 %v8880_v1  ;;  %v817_v57 = vshll.u32 %v6854_v0, 16  ;;  %v821_v41 = vshrl.u32 %v6854_v0, 16  ;;  %v2371_v32 = vrot.slane %v6918_v9, 1  ;;  %v1782_v0 = vshll.u32 %v6906_v11, 16 }
  0x61   : > { %1102 = vmatprep.subr.bf16.mxu1 %v8880_v1 }
  0x62   : > { %v6891_v7 = vrot.slane %v817_v57, 1  ;;  %v6957_v42 = vsel %vm2367_vm2, %v2369_v26, %v2371_v32  ;;  %v829_v57 = vshrl.u32 %v6869_v58, 16  ;;  %v6993_v58 = vld [vmem:[%s6647_s19 + $0x2c] sm:$0xff]  }
  0x63   : > { %v2377_v62 = vrot.slane %v6993_v58, 1 }
  0x64   : > { %v820_v6 = vsel %vm504_vm1, %v815_v55, %v6891_v7 }
  0x66   : > { %5890 = vmatpush3.bf16.xpose.msra.mxu0 %v1153_v3  ;;  %v6968_v3 = vrot.slane %v1766_v28, 1 }
  0x67   : > { %6241 = vmatprep.subr.msk.bf16.mxu0 %vm872_vm0, %v6682_v33  ;;  %v982_v33 = vsel %vm872_vm0, %v796_v53, 0  ;;  %v2375_v53 = vrot.slane %v6954_v17, 1 }
  0x68   : > { %1103 = vmatpush1.bf16.xpose.msra.mxu1 %v976_v45  ;;  %v6971_v45 = vsel %vm2367_vm2, %v2371_v32, %v2373_v43  ;;  %v7030_v32 = vld [vmem:[%s6647_s19 + $0x7c] sm:$0xff]   ;;  %v1772_v55 = vor.u32 %v1770_v40, %v6968_v3  ;;  %v1714_v40 = vshrl.u32 %v6903_v13, 16 }
  0x69   : > { %1104 = vmatprep.subr.bf16.mxu1 %v8880_v1  ;;  %v7004_v14 = vsel %vm2367_vm2, %v2375_v53, %v2377_v62  ;;  %v2397_v34 = vrot.slane %v7030_v32, 1 }
  0x6e   : > { %5892 = vmatpush3.bf16.xpose.msra.mxu0 %v1155_v18  ;;  %v6981_v18 = vsel %vm2367_vm2, %v2373_v43, %v2375_v53  ;;  %v6412_v53 = vld [vmem:[%s6647_s19 + $0x150] sm:$0xff]  }
  0x6f   : > { %6242 = vmatprep.subr.msk.bf16.mxu0 %vm872_vm0, %v6702_v59  ;;  %v6940_v59 = vsel %vm2367_vm2, %v2383_v31, %v2385_v19  ;;  %v7009_v19 = vld [vmem:[%s6647_s19 + $0x74] sm:$0xff]  }
  0x70   : > { %1105 = vmatpush1.bf16.xpose.msra.mxu1 %v979_v60  ;;  %v833_v60 = vshll.u32 %v6946_v35, 16 }
  0x71   : > { %1106 = vmatprep.subr.bf16.mxu1 %v8880_v1 }
  0x72   : > { %v835_v20 = vrot.slane %v833_v60, 1 }
  0x76   : > { %5894 = vmatpush3.bf16.xpose.msra.mxu0 %v1157_v54  ;;  %v2393_v54 = vrot.slane %v6987_v63, 1 }
  0x77   : > { %6243 = vmatprep.subr.msk.bf16.mxu0 %vm872_vm0, %v6719_v16  ;;  %v991_v16 = vsel %vm872_vm0, %v820_v6, 0  ;;  %v837_v6 = vshrl.u32 %v6946_v35, 16 }
  0x78   : > { %1107 = vmatpush1.bf16.xpose.msra.mxu1 %v982_v33  ;;  %v6997_v29 = vsel %vm2367_vm2, %v2391_v44, %v2393_v54  ;;  %v1372_v33 = vld [vmem:[%s6647_s19 + $0x4] sm:$0xf] }
  0x79   : > { %1108 = vmatprep.subr.bf16.mxu1 %v8880_v1  ;;  %v5674_v26 = vcombine.low %v1372_v33, %v6909_v15  ;;  %v7034_v15 = vld [vmem:[%s6647_s19 + $0x3c] sm:$0xff]   ;;  %v1784_v33 = vrot.slane %v1782_v0, 1  ;;  %v839_v13 = vor.u32 %v837_v6, %v835_v20  ;;  %v1794_v0 = vshrl.u32 %v6921_v24, 16 }
  0x7a   : > { %v2381_v38 = vrot.slane %v7034_v15, 1 }
  0x7b   : > { %v1703_v36 = vshrl.u32 %v5674_v26, 16 }
  0x7e   : > { %5896 = vmatpush3.bf16.xpose.msra.mxu0 %v6876_v61  ;;  %v2395_v61 = vrot.slane %v7009_v19, 1 }
  0x7f   : > { %6244 = vmatprep.subr.msk.bf16.mxu0 %vm872_vm0, %v6737_v48  ;;  %v2379_v48 = vrot.slane %v7014_v25, 1 }
  0x80   : > { %1109 = vmatpush1.bf16.xpose.msra.mxu1 %v6881_v39  ;;  %v7019_v27 = vsel %vm2367_vm2, %v2393_v54, %v2395_v61  ;;  %v1705_v39 = vshll.u32 %v5674_v26, 16  ;;  %v841_v54 = vshll.u32 %v6412_v53, 16 }
  0x81   : > { %1110 = vmatprep.subr.bf16.mxu1 %v8880_v1  ;;  %v7025_v28 = vsel %vm2367_vm2, %v2377_v62, %v2379_v48  ;;  %v7048_v43 = vsel %vm2367_vm2, %v2379_v48, %v2381_v38  ;;  %v7085_v48 = vld [vmem:[%s8876_s1 + $0x10] sm:$0xff]  }
  0x82   : > { %v1707_v44 = vrot.slane %v1705_v39, 1  ;;  %v1790_v39 = vshll.u32 %v6921_v24, 16 }
  0x84   : > { %v1708_v60 = vor.u32 %v1707_v44, %v1703_v36  ;;  %v1726_v44 = vshll.u32 %v6932_v30, 16 }
  0x86   : > { %5898 = vmatpush3.bf16.xpose.msra.mxu0 %v6885_v4  ;;  %v7040_v4 = vsel %vm2367_vm2, %v2395_v61, %v2397_v34  ;;  %v843_v61 = vrot.slane %v841_v54, 1 }
  0x87   : > { %6245 = vmatprep.subr.msk.bf16.mxu0 %vm872_vm0, %v6757_v21  ;;  %v823_v21 = vor.u32 %v821_v41, %v6891_v7  ;;  %v831_v41 = vor.u32 %v829_v57, %v827_v47 }
  0x88   : > { %1111 = vmatpush1.bf16.xpose.msra.mxu1 %v988_v46  ;;  %v1778_v46 = vshrl.u32 %v6899_v12, 16 }
  0x89   : > { %1112 = vmatprep.subr.bf16.mxu1 %v8880_v1  ;;  %v828_v7 = vsel %vm504_vm1, %v823_v21, %v827_v47  ;;  %v7070_v47 = vsel %vm2367_vm2, %v2381_v38, %v2383_v31  ;;  %v836_v57 = vsel %vm504_vm1, %v831_v41, %v835_v20  ;;  %v845_v20 = vshrl.u32 %v6412_v53, 16 }
  0x8a   : > { %v994_v12 = vsel %vm872_vm0, %v828_v7, 0  ;;  %v1780_v35 = vor.u32 %v1778_v46, %v6977_v56  ;;  %v997_v5 = vsel %vm872_vm0, %v836_v57, 0  ;;  %v1722_v21 = vshrl.u32 %v6918_v9, 16 }
  0x8b   : > { %v1728_v41 = vrot.slane %v1726_v44, 1  ;;  %v1738_v44 = vshrl.u32 %v6954_v17, 16 }
  0x8c   : > { %v1785_v36 = vsel %vm504_vm1, %v1780_v35, %v1784_v33 }
  0x8e   : > { %5900 = vmatpush3.bf16.xpose.msra.mxu0 %v6895_v10  ;;  %v1712_v10 = vrot.slane %v1710_v8, 1  ;;  %v1786_v8 = vshrl.u32 %v6906_v11, 16  ;;  %v844_v11 = vsel %vm504_vm1, %v839_v13, %v843_v61  ;;  %v7117_v13 = vld [vmem:[%s6647_s19 + $0x168] sm:$0x1f]  }
  0x8f   : > { %6246 = vmatprep.subr.msk.bf16.mxu0 %vm872_vm0, %v6777_v52  ;;  %v1777_v52 = vsel %vm504_vm1, %v1772_v55, %v6977_v56  ;;  %v1000_v53 = vsel %vm872_vm0, %v844_v11, 0 }
  0x90   : > { %1113 = vmatpush1.bf16.xpose.msra.mxu1 %v991_v16  ;;  %v1718_v16 = vshll.u32 %v6918_v9, 16  ;;  %v1713_v62 = vsel %vm504_vm1, %v1708_v60, %v1712_v10  ;;  %v1716_v31 = vor.u32 %v1714_v40, %v1712_v10  ;;  %v1788_v55 = vor.u32 %v1786_v8, %v1784_v33 }
  0x91   : > { %1114 = vmatprep.subr.bf16.mxu1 %v8880_v1  ;;  %v2073_v56 = vsel %vm872_vm0, %v1713_v62, 0  ;;  %v1792_v10 = vrot.slane %v1790_v39, 1  ;;  %v1730_v62 = vshrl.u32 %v6932_v30, 16  ;;  %v1806_v39 = vshll.u32 %v6987_v63, 16 }
  0x92   : > { %v1720_v26 = vrot.slane %v1718_v16, 1  ;;  %v1734_v16 = vshll.u32 %v6954_v17, 16  ;;  %v1750_v17 = vshll.u32 %v7014_v25, 16 }
  0x93   : > { %v1793_v54 = vsel %vm504_vm1, %v1788_v55, %v1792_v10  ;;  %v1796_v35 = vor.u32 %v1794_v0, %v1792_v10 }
  0x94   : > { %v1721_v46 = vsel %vm504_vm1, %v1716_v31, %v1720_v26  ;;  %v1724_v6 = vor.u32 %v1722_v21, %v1720_v26  ;;  %v1802_v31 = vshrl.u32 %v6935_v2, 16 }
  0x95   : > { %v2076_v9 = vsel %vm872_vm0, %v1721_v46, 0 }
  0x96   : > { %5902 = vmatpush3.bf16.xpose.msra.mxu0 %v6915_v22  ;;  %v7077_v22 = vld [vmem:[%s6647_s19 + $0x158] sm:$0xff]   ;;  %v1729_v57 = vsel %vm504_vm1, %v1724_v6, %v1728_v41 }
  0x97   : > { %6255 = vmatprep.subr.msk.bf16.mxu0 %vm872_vm0, %v1777_v52  ;;  %v849_v38 = vshll.u32 %v7077_v22, 16  ;;  %v1798_v52 = vshll.u32 %v6935_v2, 16  ;;  %v853_v60 = vshrl.u32 %v7077_v22, 16  ;;  %v2079_v8 = vsel %vm872_vm0, %v1729_v57, 0 }
  0x98   : > { %1115 = vmatpush1.bf16.xpose.msra.mxu1 %v994_v12  ;;  %v847_v12 = vor.u32 %v845_v20, %v843_v61  ;;  %v865_v20 = vshll.u32 %v7117_v13, 16 }
  0x99   : > { %1116 = vmatprep.subr.bf16.mxu1 %v8880_v1  ;;  %v851_v7 = vrot.slane %v849_v38, 1  ;;  %v1800_v33 = vrot.slane %v1798_v52, 1  ;;  %v1742_v38 = vshll.u32 %v6993_v58, 16 }
  0x9b   : > { %v852_v24 = vsel %vm504_vm1, %v847_v12, %v851_v7  ;;  %v855_v61 = vor.u32 %v853_v60, %v851_v7  ;;  %v1801_v30 = vsel %vm504_vm1, %v1796_v35, %v1800_v33  ;;  %v1804_v46 = vor.u32 %v1802_v31, %v1800_v33 }
  0x9c   : > { %v1003_v26 = vsel %vm872_vm0, %v852_v24, 0  ;;  %v1744_v0 = vrot.slane %v1742_v38, 1  ;;  %v1810_v7 = vshrl.u32 %v6987_v63, 16  ;;  %v1814_v12 = vshll.u32 %v7009_v19, 16 }
  0x9d   : > { %5904 = vmatmul.mubr.msk.bf16.vlgmr.msra.gmra.mrb[0].mxu0 %vm872_vm0, %v6834_v23  ;;  %v7102_v23 = vld [vmem:[%s6647_s19 + $0x160] sm:$0xff]   ;;  %v869_v24 = vshrl.u32 %v7117_v13, 16  ;;  %v1752_v35 = vrot.slane %v1750_v17, 1  ;;  %v1818_v33 = vshrl.u32 %v7009_v19, 16  ;;  %v1758_v31 = vshll.u32 %v7034_v15, 16  ;;  %v6563_v17 = vld [vmem:[%s6647_s19 + $0xc8] sm:$0xff]  }
  0x9e   : > { %5924 = vmatpush3.bf16.xpose.msra.mxu0 %v2073_v56  ;;  %5939 = vmatprep.mubr.msk.bf16.mxu0 %vm872_vm0, %v7085_v48  ;;  %v857_v40 = vshll.u32 %v7102_v23, 16  ;;  %v1736_v56 = vrot.slane %v1734_v16, 1  ;;  %v861_v21 = vshrl.u32 %v7102_v23, 16  ;;  %v1816_v63 = vrot.slane %v1814_v12, 1  ;;  %v7185_v12 = vld [vmem:[%s8876_s1] sm:$0xff]  }
  0x9f   : > { %6256 = vmatprep.subr.msk.bf16.mxu0 %vm872_vm0, %v1785_v36  ;;  %v1732_v36 = vor.u32 %v1730_v62, %v1728_v41  ;;  %v1760_v38 = vrot.slane %v1758_v31, 1  ;;  %v6574_v31 = vld [vmem:[%s6647_s19 + $0xb0] sm:$0xff]  }
  0xa0   : > { %1117 = vmatpush1.bf16.xpose.msra.mxu1 %v997_v5  ;;  %v859_v5 = vrot.slane %v857_v40, 1  ;;  %v1740_v52 = vor.u32 %v1738_v44, %v1736_v56  ;;  %v1746_v40 = vshrl.u32 %v6993_v58, 16  ;;  %v1822_v58 = vshll.u32 %v7030_v32, 16 }
  0xa1   : > { %1118 = vmatprep.subr.bf16.mxu1 %v8880_v1  ;;  %v1737_v2 = vsel %vm504_vm1, %v1732_v36, %v1736_v56  ;;  %v1754_v56 = vshrl.u32 %v7014_v25, 16 }
  0xa2   : > { %v860_v11 = vsel %vm504_vm1, %v855_v61, %v859_v5  ;;  %v2082_v10 = vsel %vm872_vm0, %v1737_v2, 0  ;;  %v863_v41 = vor.u32 %v861_v21, %v859_v5  ;;  %v1748_v61 = vor.u32 %v1746_v40, %v1744_v0 }
  0xa3   : > { %v1006_v55 = vsel %vm872_vm0, %v860_v11, 0  ;;  %v1824_v36 = vrot.slane %v1822_v58, 1  ;;  %v1756_v11 = vor.u32 %v1754_v56, %v1752_v35  ;;  %v1826_v21 = vshrl.u32 %v7030_v32, 16  ;;  %v2741_v56 = vld [vmem:[%s6647_s19 + $0x28] sm:$0xf] }
  0xa4   : > { %v2475_v58 = vsel %vm872_vm0, %v7004_v14, 0  ;;  %v6576_v14 = vld [vmem:[%s6647_s19 + $0xb8] sm:$0xff]  }
  0xa5   : > { %v1761_v44 = vsel %vm504_vm1, %v1756_v11, %v1760_v38 }
  0xa6   : > { %5926 = vmatpush3.bf16.xpose.msra.mxu0 %v2076_v9  ;;  %v867_v9 = vrot.slane %v865_v20, 1 }
  0xa7   : > { %6257 = vmatprep.subr.msk.bf16.mxu0 %vm872_vm0, %v1793_v54  ;;  %v1745_v54 = vsel %vm504_vm1, %v1740_v52, %v1744_v0 }
  0xa8   : > { %1119 = vmatpush1.bf16.xpose.msra.mxu1 %v1000_v53  ;;  %v1808_v53 = vrot.slane %v1806_v39, 1  ;;  %v868_v6 = vsel %vm504_vm1, %v863_v41, %v867_v9  ;;  %v2085_v62 = vsel %vm872_vm0, %v1745_v54, 0  ;;  %v1820_v39 = vor.u32 %v1818_v33, %v1816_v63  ;;  %v6564_v54 = vld [vmem:[%s6647_s19 + $0x88] sm:$0xff]   ;;  %v6570_v33 = vld [vmem:[%s6647_s19 + $0xa0] sm:$0xff]  }
  0xa9   : > { %1120 = vmatprep.subr.bf16.mxu1 %v8880_v1  ;;  %v1009_v57 = vsel %vm872_vm0, %v868_v6, 0  ;;  %v1185_v40 = vsel %vm872_vm0, %v6564_v54, 0  ;;  %v6578_v54 = vld [vmem:[%s6647_s19 + $0x108] sm:$0xff]  }
  0xaa   : > { %v1809_v60 = vsel %vm504_vm1, %v1804_v46, %v1808_v53  ;;  %v1812_v16 = vor.u32 %v1810_v7, %v1808_v53  ;;  %v1825_v2 = vsel %vm504_vm1, %v1820_v39, %v1824_v36  ;;  %v1762_v46 = vshrl.u32 %v7034_v15, 16  ;;  %v6560_v7 = vld [vmem:[%s6647_s19 + $0x80] sm:$0xff]   ;;  %v6561_v15 = vld [vmem:[%s8876_s1 + $0x8] sm:$0xff]  }
  0xab   : > { %v1828_v53 = vor.u32 %v1826_v21, %v1824_v36  ;;  %v1183_v41 = vsel %vm872_vm0, %v6560_v7, 0  ;;  %v7254_v39 = vld [vmem:[%s6647_s19 + $0x2c] sm:$0xf]  ;;  %v1197_v36 = vsel %vm872_vm0, %v6576_v14, 0  ;;  %v2484_v7 = vsel %vm872_vm0, %v7070_v47, 0 }
  0xac   : > { %v1817_v5 = vsel %vm504_vm1, %v1812_v16, %v1816_v63  ;;  %v1764_v0 = vor.u32 %v1762_v46, %v1760_v38  ;;  %v7201_v16 = vld [vmem:[%s8876_s1 + $0x18] sm:$0xff]   ;;  %v2463_v63 = vsel %vm872_vm0, %v6963_v49, 0  ;;  %v2466_v49 = vsel %vm872_vm0, %v6957_v42, 0  ;;  %v6577_v46 = vld [vmem:[%s6647_s19 + $0x100] sm:$0xff]  }
  0xad   : > { %v1191_v42 = vsel %vm872_vm0, %v6570_v33, 0  ;;  %v2481_v38 = vsel %vm872_vm0, %v7048_v43, 0 }
  0xae   : > { %5928 = vmatpush3.bf16.xpose.msra.mxu0 %v2079_v8  ;;  %v1753_v8 = vsel %vm504_vm1, %v1748_v61, %v1752_v35  ;;  %v6569_v35 = vld [vmem:[%s6647_s19 + $0xe0] sm:$0xff]   ;;  %v6571_v61 = vld [vmem:[%s6647_s19 + $0xe8] sm:$0xff]  }
  0xaf   : > { %6258 = vmatprep.subr.msk.bf16.mxu0 %vm872_vm0, %v1801_v30  ;;  %v7155_v30 = vld [vmem:[%s6647_s19 + $0x84] sm:$0xff]   ;;  %v2088_v20 = vsel %vm872_vm0, %v1753_v8, 0 }
  0xb0   : > { %1121 = vmatpush1.bf16.xpose.msra.mxu1 %v1003_v26  ;;  %v871_v26 = vor.u32 %v869_v24, %v867_v9  ;;  %v1830_v25 = vshll.u32 %v7155_v30, 16  ;;  %v2091_v9 = vsel %vm872_vm0, %v1761_v44, 0  ;;  %v6566_v24 = vld [vmem:[%s6647_s19 + $0x90] sm:$0xff]   ;;  %v7250_v8 = vld [vmem:[%s6647_s19 + $0x68] sm:$0xff]  }
  0xb1   : > { %1122 = vmatprep.subr.bf16.mxu1 %v8880_v1  ;;  %v3139_v21 = vshrl.u32 %v7250_v8, 16  ;;  %v7279_v44 = vld [vmem:[%s6647_s19 + $0x30] sm:$0xff]  }
  0xb2   : > { %v1012_v19 = vsel %vm872_vm0, %v871_v26, 0  ;;  %v6575_v26 = vld [vmem:[%s6647_s19 + $0xf8] sm:$0xff]   ;;  %v3083_v47 = vshrl.u32 %v7279_v44, 16 }
  0xb6   : > { %5930 = vmatpush3.bf16.xpose.msra.mxu0 %v2082_v10  ;;  %v6559_v10 = vld [vmem:[%s6647_s19 + $0xc0] sm:$0xff]  }
  0xb7   : > { %6259 = vmatprep.subr.msk.bf16.mxu0 %vm872_vm0, %v1809_v60  ;;  %v1769_v60 = vsel %vm504_vm1, %v1764_v0, %v6968_v3  ;;  %v6565_v3 = vld [vmem:[%s6647_s19 + $0xd0] sm:$0xff]   ;;  %v7289_v0 = vld [vmem:[%s6647_s19 + $0x78] sm:$0xff]  }
  0xb8   : > { %1123 = vmatpush1.bf16.xpose.msra.mxu1 %v1006_v55  ;;  %v7166_v55 = vrot.slane %v1830_v25, 1  ;;  %v2094_v6 = vsel %vm872_vm0, %v1769_v60, 0  ;;  %v3155_v33 = vshrl.u32 %v7289_v0, 16 }
  0xb9   : > { %1124 = vmatprep.subr.bf16.mxu1 %v8880_v1 }
  0xba   : > { %v1833_v52 = vsel %vm504_vm1, %v1828_v53, %v7166_v55  ;;  %v1215_v53 = vsel %vm872_vm0, %v6577_v46, 0 }
  0xbe   : > { %5932 = vmatpush3.bf16.xpose.msra.mxu0 %v2085_v62  ;;  %v6568_v62 = vld [vmem:[%s6647_s19 + $0x98] sm:$0xff]  }
  0xbf   : > { %6260 = vmatprep.subr.msk.bf16.mxu0 %vm872_vm0, %v1817_v5  ;;  %v6572_v5 = vld [vmem:[%s6647_s19 + $0xa8] sm:$0xff]  }
  0xc0   : > { %1125 = vmatpush1.bf16.xpose.msra.mxu1 %v1009_v57  ;;  %v1187_v57 = vsel %vm872_vm0, %v6566_v24, 0 }
  0xc1   : > { %1126 = vmatprep.subr.bf16.mxu1 %v8880_v1 }
  0xc6   : > { %5934 = vmatpush3.bf16.xpose.msra.mxu0 %v2088_v20  ;;  %v3135_v20 = vshll.u32 %v7250_v8, 16 }
  0xc7   : > { %6261 = vmatprep.subr.msk.bf16.mxu0 %vm872_vm0, %v1825_v2 }
  0xc8   : > { %1127 = vmatpush1.bf16.xpose.msra.mxu1 %v1012_v19  ;;  %v8879_v19 = vrot.slane %v7155_v30, 1  ;;  %v7274_v2 = vrot.slane %v3135_v20, 1  ;;  %v7342_v20 = vld [vmem:[%s6647_s19 + $0x48] sm:$0xff]  }
  0xc9   : > { %6247 = vmatprep.subr.msk.bf16.mxu1 %vm872_vm0, %v6559_v10 }
  0xca   : > { %v3141_v43 = vor.u32 %v3139_v21, %v7274_v2 }
  0xce   : > { %5936 = vmatpush3.bf16.xpose.msra.mxu0 %v2091_v9  ;;  %v3079_v9 = vshll.u32 %v7279_v44, 16 }
  0xcf   : > { %5666 = vmatmul.mubr.msk.bf16.vlgmr.msra.gmra.mrb[4].mxu1 %vm872_vm0, %v6561_v15  ;;  %6262 = vmatprep.subr.msk.bf16.mxu0 %vm872_vm0, %v1833_v52 }
  0xd0   : > { %5906 = vmatpush3.bf16.xpose.msra.mxu1 %v1183_v41  ;;  %5921 = vmatprep.mubr.msk.bf16.mxu1 %vm872_vm0, %v7185_v12  ;;  %v3081_v15 = vrot.slane %v3079_v9, 1 }
  0xd1   : > { %6248 = vmatprep.subr.msk.bf16.mxu1 %vm872_vm0, %v6563_v17  ;;  %v3151_v17 = vshll.u32 %v7289_v0, 16 }
  0xd3   : > { %v3153_v24 = vrot.slane %v3151_v17, 1  ;;  %v3107_v17 = vshrl.u32 %v7342_v20, 16 }
  0xd6   : > { %5938 = vmatpush3.bf16.xpose.msra.mxu0 %v2094_v6  ;;  %v7299_v6 = vld [vmem:[%s6647_s19 + $0x38] sm:$0xff]  }
  0xd7   : > { %6271 = vmatprep.subr.msk.bf16.mxu0 %vm872_vm0, %v6940_v59  ;;  %v6567_v59 = vld [vmem:[%s6647_s19 + $0xd8] sm:$0xff]  }
  0xd8   : > { %5908 = vmatpush3.bf16.xpose.msra.mxu1 %v1185_v40  ;;  %v1217_v40 = vsel %vm872_vm0, %v6578_v54, 0 }
  0xd9   : > { %6249 = vmatprep.subr.msk.bf16.mxu1 %vm872_vm0, %v6565_v3 }
  0xdd   : > { %5940 = vmatmul.mubr.msk.bf16.vlgmr.msra.gmra.mrb[0].mxu0 %vm872_vm0, %v7085_v48  ;;  %v1189_v48 = vsel %vm872_vm0, %v6568_v62, 0 }
  0xde   : > { %5960 = vmatpush3.bf16.xpose.msra.mxu0 %v2463_v63  ;;  %5975 = vmatprep.mubr.msk.bf16.mxu0 %vm872_vm0, %v7201_v16 }
  0xdf   : > { %6272 = vmatprep.subr.msk.bf16.mxu0 %vm872_vm0, %v6949_v37  ;;  %v2469_v37 = vsel %vm872_vm0, %v6971_v45, 0  ;;  %v1193_v45 = vsel %vm872_vm0, %v6572_v5, 0 }
  0xe0   : > { %5910 = vmatpush3.bf16.xpose.msra.mxu1 %v1187_v57  ;;  %v3087_v57 = vshll.u32 %v7299_v6, 16 }
  0xe1   : > { %6250 = vmatprep.subr.msk.bf16.mxu1 %vm872_vm0, %v6567_v59  ;;  %v7308_v59 = vld [vmem:[%s6647_s19 + $0x80] sm:$0xff]  }
  0xe6   : > { %5962 = vmatpush3.bf16.xpose.msra.mxu0 %v2466_v49  ;;  %v7314_v49 = vld [vmem:[%s8876_s1 + $0x20] sm:$0xff]  }
  0xe7   : > { %6273 = vmatprep.subr.msk.bf16.mxu0 %vm872_vm0, %v6966_v50  ;;  %v2472_v50 = vsel %vm872_vm0, %v6981_v18, 0  ;;  %v1195_v18 = vsel %vm872_vm0, %v6574_v31, 0 }
  0xe8   : > { %5912 = vmatpush3.bf16.xpose.msra.mxu1 %v1189_v48  ;;  %v3085_v48 = vor.u32 %v3083_v47, %v3081_v15 }
  0xe9   : > { %6251 = vmatprep.subr.msk.bf16.mxu1 %vm872_vm0, %v6569_v35 }
  0xee   : > { %5964 = vmatpush3.bf16.xpose.msra.mxu0 %v2469_v37  ;;  %v3089_v37 = vrot.slane %v3087_v57, 1 }
  0xef   : > { %6274 = vmatprep.subr.msk.bf16.mxu0 %vm872_vm0, %v6974_v51  ;;  %v6573_v51 = vld [vmem:[%s6647_s19 + $0xf0] sm:$0xff]  }
  0xf0   : > { %5914 = vmatpush3.bf16.xpose.msra.mxu1 %v1191_v42  ;;  %v3159_v42 = vshll.u32 %v7308_v59, 16 }
  0xf1   : > { %6252 = vmatprep.subr.msk.bf16.mxu1 %vm872_vm0, %v6571_v61  ;;  %v7321_v61 = vld [vmem:[%s6647_s19 + $0x40] sm:$0xff]  }
  0xf2   : > { %v3161_v31 = vrot.slane %v3159_v42, 1  ;;  %v6582_v42 = vld [vmem:[%s6647_s19 + $0x128] sm:$0xff]  }
  0xf6   : > { %5966 = vmatpush3.bf16.xpose.msra.mxu0 %v2472_v50  ;;  %v6579_v50 = vld [vmem:[%s6647_s19 + $0x110] sm:$0xff]  }
  0xf7   : > { %6275 = vmatprep.subr.msk.bf16.mxu0 %vm872_vm0, %v6997_v29  ;;  %v2478_v29 = vsel %vm872_vm0, %v7025_v28, 0  ;;  %v7263_v28 = vld [vmem:[%s6647_s19 + $0x70] sm:$0xff]   ;;  %v1219_v5 = vsel %vm872_vm0, %v6579_v50, 0  ;;  %v1225_v50 = vsel %vm872_vm0, %v6582_v42, 0 }
  0xf8   : > { %5916 = vmatpush3.bf16.xpose.msra.mxu1 %v1193_v45  ;;  %v3143_v25 = vshll.u32 %v7263_v28, 16  ;;  %v3147_v60 = vshrl.u32 %v7263_v28, 16  ;;  %v3091_v45 = vshrl.u32 %v7299_v6, 16 }
  0xf9   : > { %6253 = vmatprep.subr.msk.bf16.mxu1 %vm872_vm0, %v6573_v51  ;;  %v3090_v51 = vsel %vm504_vm1, %v3085_v48, %v3089_v37 }
  0xfa   : > { %v3145_v10 = vrot.slane %v3143_v25, 1 }
  0xfc   : > { %v3146_v52 = vsel %vm504_vm1, %v3141_v43, %v3145_v10  ;;  %v3149_v63 = vor.u32 %v3147_v60, %v3145_v10 }
  0xfe   : > { %5968 = vmatpush3.bf16.xpose.msra.mxu0 %v2475_v58  ;;  %v3154_v35 = vsel %vm504_vm1, %v3149_v63, %v3153_v24  ;;  %v3157_v58 = vor.u32 %v3155_v33, %v3153_v24  ;;  %v7368_v63 = vld [vmem:[%s6647_s19 + $0x98] sm:$0xff]  }
  0xff   : > { %6276 = vmatprep.subr.msk.bf16.mxu0 %vm872_vm0, %v7019_v27  ;;  %v5734_v27 = vcombine.low %v2741_v56, %v7254_v39  ;;  %v7376_v33 = vld [vmem:[%s6647_s19 + $0x58] sm:$0xff]  }
 0x100   : > { %5918 = vmatpush3.bf16.xpose.msra.mxu1 %v1195_v18  ;;  %v3095_v18 = vshll.u32 %v7321_v61, 16  ;;  %v3162_v56 = vsel %vm504_vm1, %v3157_v58, %v3161_v31 }
 0x101   : > { %6254 = vmatprep.subr.msk.bf16.mxu1 %vm872_vm0, %v6575_v26  ;;  %v3074_v11 = vshll.u32 %v5734_v27, 16  ;;  %v3072_v32 = vshrl.u32 %v5734_v27, 16  ;;  %v7334_v26 = vld [vmem:[%s6647_s19 + $0x88] sm:$0xff]  }
 0x102   : > { %v3097_v14 = vrot.slane %v3095_v18, 1  ;;  %v3167_v27 = vshll.u32 %v7334_v26, 16  ;;  %v7385_v18 = vld [vmem:[%s6647_s19 + $0xa0] sm:$0xff]  }
 0x104   : > { %v3169_v46 = vrot.slane %v3167_v27, 1  ;;  %v3191_v27 = vshll.u32 %v7385_v18, 16 }
 0x106   : > { %5970 = vmatpush3.bf16.xpose.msra.mxu0 %v2478_v29  ;;  %v3093_v29 = vor.u32 %v3091_v45, %v3089_v37  ;;  %v3183_v37 = vshll.u32 %v7368_v63, 16 }
 0x107   : > { %6277 = vmatprep.subr.msk.bf16.mxu0 %vm872_vm0, %v7040_v4  ;;  %v2400_v4 = vsel %vm2367_vm2, %v2397_v34, %v8879_v19  ;;  %v3076_v34 = vrot.slane %v3074_v11, 1 }
 0x108   : > { %5920 = vmatpush3.bf16.xpose.msra.mxu1 %v1197_v36  ;;  %v3163_v36 = vshrl.u32 %v7308_v59, 16  ;;  %v3098_v21 = vsel %vm504_vm1, %v3093_v29, %v3097_v14  ;;  %v3185_v58 = vrot.slane %v3183_v37, 1  ;;  %v7424_v37 = vld [vmem:[%s6647_s19 + $0x130] sm:$0xff]  }
 0x109   : > { %1329 = vmatprep.subr.bf16.mxu1 %v8880_v1  ;;  %v3077_v41 = vor.u32 %v3076_v34, %v3072_v32  ;;  %v7351_v32 = vld [vmem:[%s6647_s19 + $0x90] sm:$0xff]   ;;  %v3448_v34 = vsel %vm872_vm0, %v3098_v21, 0  ;;  %v3123_v21 = vshrl.u32 %v7376_v33, 16 }
 0x10a   : > { %v3165_v25 = vor.u32 %v3163_v36, %v3161_v31  ;;  %v3119_v31 = vshll.u32 %v7376_v33, 16  ;;  %v3187_v36 = vshrl.u32 %v7368_v63, 16 }
 0x10b   : > { %v3082_v3 = vsel %vm504_vm1, %v3077_v41, %v3081_v15  ;;  %v3175_v41 = vshll.u32 %v7351_v32, 16  ;;  %v6581_v15 = vld [vmem:[%s6647_s19 + $0x120] sm:$0xff]  }
 0x10c   : > { %v3442_v62 = vsel %vm872_vm0, %v3082_v3, 0  ;;  %v3170_v10 = vsel %vm504_vm1, %v3165_v25, %v3169_v46  ;;  %v1223_v60 = vsel %vm872_vm0, %v6581_v15, 0  ;;  %v3195_v15 = vshrl.u32 %v7385_v18, 16 }
 0x10d   : > { %v3177_v47 = vrot.slane %v3175_v41, 1 }
 0x10e   : > { %5972 = vmatpush3.bf16.xpose.msra.mxu0 %v2481_v38  ;;  %v6580_v38 = vld [vmem:[%s6647_s19 + $0x118] sm:$0xff]  }
 0x10f   : > { %5922 = vmatmul.mubr.msk.bf16.vlgmr.msra.gmra.mrb[0].mxu1 %vm872_vm0, %v7185_v12  ;;  %6278 = vmatprep.subr.msk.bf16.mxu0 %vm872_vm0, %v2400_v4  ;;  %v1221_v11 = vsel %vm872_vm0, %v6580_v38, 0  ;;  %v3099_v4 = vshrl.u32 %v7321_v61, 16  ;;  %v7393_v38 = vld [vmem:[%s6647_s19 + $0x60] sm:$0xff]  }
 0x110   : > { %1330 = vmatpush1.bf16.xpose.msra.mxu1 %v1215_v53  ;;  %1361 = vmatprep.mubr.bf16.mxu1 %v8880_v1  ;;  %v3103_v53 = vshll.u32 %v7342_v20, 16 }
 0x111   : > { %1331 = vmatprep.subr.bf16.mxu1 %v8880_v1  ;;  %v3101_v43 = vor.u32 %v3099_v4, %v3097_v14  ;;  %v3121_v14 = vrot.slane %v3119_v31, 1  ;;  %v3335_v31 = vshll.u32 %v7424_v37, 16 }
 0x112   : > { %v3105_v9 = vrot.slane %v3103_v53, 1  ;;  %v3193_v53 = vrot.slane %v3191_v27, 1 }
 0x114   : > { %v3106_v54 = vsel %vm504_vm1, %v3101_v43, %v3105_v9  ;;  %v3109_v57 = vor.u32 %v3107_v17, %v3105_v9  ;;  %v7402_v43 = vld [vmem:[%s6647_s19 + $0xa8] sm:$0xff]   ;;  %v3125_v9 = vor.u32 %v3123_v21, %v3121_v14  ;;  %v6584_v17 = vld [vmem:[%s6647_s19 + $0x138] sm:$0xff]  }
 0x115   : > { %v3451_v24 = vsel %vm872_vm0, %v3106_v54, 0  ;;  %v1229_v54 = vsel %vm872_vm0, %v6584_v17, 0 }
 0x116   : > { %5974 = vmatpush3.bf16.xpose.msra.mxu0 %v2484_v7  ;;  %v3171_v7 = vshrl.u32 %v7334_v26, 16 }
 0x117   : > { %6287 = vmatprep.subr.msk.bf16.mxu0 %vm872_vm0, %v3146_v52  ;;  %v7359_v52 = vld [vmem:[%s6647_s19 + $0x50] sm:$0xff]  }
 0x118   : > { %1332 = vmatpush1.bf16.xpose.msra.mxu1 %v1217_v40  ;;  %v3173_v40 = vor.u32 %v3171_v7, %v3169_v46  ;;  %v3111_v3 = vshll.u32 %v7359_v52, 16  ;;  %v3189_v46 = vor.u32 %v3187_v36, %v3185_v58  ;;  %v6586_v36 = vld [vmem:[%s6647_s19 + $0x148] sm:$0xff]  }
 0x119   : > { %1333 = vmatprep.subr.bf16.mxu1 %v8880_v1 }
 0x11a   : > { %v3113_v48 = vrot.slane %v3111_v3, 1  ;;  %v3194_v7 = vsel %vm504_vm1, %v3189_v46, %v3193_v53 }
 0x11c   : > { %v3114_v45 = vsel %vm504_vm1, %v3109_v57, %v3113_v48  ;;  %v7417_v57 = vld [vmem:[%s6647_s19 + $0x128] sm:$0xff]  }
 0x11d   : > { %5976 = vmatmul.mubr.msk.bf16.vlgmr.msra.gmra.mrb[0].mxu0 %vm872_vm0, %v7201_v16  ;;  %v3445_v16 = vsel %vm872_vm0, %v3090_v51, 0  ;;  %8919 = vst [vmem:[#allocation3_spill] sm:$0xff] %v7417_v57  ;;  %v3327_v42 = vshll.u32 %v7417_v57, 16 }
 0x11e   : > { %5996 = vmatpush3.bf16.xpose.msra.mxu0 %v3442_v62  ;;  %6011 = vmatprep.mubr.msk.bf16.mxu0 %vm872_vm0, %v7314_v49  ;;  %v3178_v62 = vsel %vm504_vm1, %v3173_v40, %v3177_v47 }
 0x11f   : > { %6288 = vmatprep.subr.msk.bf16.mxu0 %vm872_vm0, %v3154_v35  ;;  %v3179_v35 = vshrl.u32 %v7351_v32, 16 }
 0x120   : > { %1334 = vmatpush1.bf16.xpose.msra.mxu1 %v1219_v5  ;;  %v3115_v5 = vshrl.u32 %v7359_v52, 16 }
 0x121   : > { %1335 = vmatprep.subr.bf16.mxu1 %v8880_v1  ;;  %v3181_v51 = vor.u32 %v3179_v35, %v3177_v47  ;;  %v3197_v47 = vor.u32 %v3195_v15, %v3193_v53  ;;  %v7451_v53 = vld [vmem:[%s6647_s19 + $0x140] sm:$0xff]  }
 0x122   : > { %v3117_v29 = vor.u32 %v3115_v5, %v3113_v48 }
 0x124   : > { %v3122_v25 = vsel %vm504_vm1, %v3117_v29, %v3121_v14  ;;  %v7440_v14 = vld [vmem:[%s6647_s19 + $0x138] sm:$0xff]  }
 0x126   : > { %5998 = vmatpush3.bf16.xpose.msra.mxu0 %v3445_v16  ;;  %v3454_v16 = vsel %vm872_vm0, %v3114_v45, 0 }
 0x127   : > { %6289 = vmatprep.subr.msk.bf16.mxu0 %vm872_vm0, %v3162_v56  ;;  %v3186_v56 = vsel %vm504_vm1, %v3181_v51, %v3185_v58  ;;  %v7432_v51 = vrot.slane %v3327_v42, 1  ;;  %v3331_v58 = vshrl.u32 %v7417_v57, 16 }
 0x128   : > { %1336 = vmatpush1.bf16.xpose.msra.mxu1 %v1221_v11  ;;  %v6583_v11 = vld [vmem:[%s6647_s19 + $0x130] sm:$0xff]  }
 0x129   : > { %1337 = vmatprep.subr.bf16.mxu1 %v8880_v1  ;;  %v1227_v4 = vsel %vm872_vm0, %v6583_v11, 0  ;;  %8920 = vst [vmem:[#allocation4_spill] sm:$0xff] %v7432_v51  ;;  %v3333_v29 = vor.u32 %v3331_v58, %v7432_v51  ;;  %v3339_v11 = vshrl.u32 %v7424_v37, 16  ;;  %v1239_v58 = vsel %vm872_vm0, %v7102_v23, 0 }
 0x12e   : > { %6000 = vmatpush3.bf16.xpose.msra.mxu0 %v3448_v34  ;;  %v3127_v34 = vshll.u32 %v7393_v38, 16 }
 0x12f   : > { %6290 = vmatprep.subr.msk.bf16.mxu0 %vm872_vm0, %v3170_v10  ;;  %v3457_v10 = vsel %vm872_vm0, %v3122_v25, 0 }
 0x130   : > { %1338 = vmatpush1.bf16.xpose.msra.mxu1 %v1223_v60  ;;  %v3129_v41 = vrot.slane %v3127_v34, 1  ;;  %v3199_v60 = vshll.u32 %v7402_v43, 16  ;;  %v6587_v34 = vld [vmem:[%s6647_s19 + $0x150] sm:$0xff]  }
 0x131   : > { %1339 = vmatprep.subr.bf16.mxu1 %v8880_v1 }
 0x132   : > { %v3130_v40 = vsel %vm504_vm1, %v3125_v9, %v3129_v41  ;;  %v7413_v3 = vrot.slane %v3199_v60, 1 }
 0x134   : > { %8918 = vst [vmem:[#allocation2_spill] sm:$0xff] %v7413_v3  ;;  %v3202_v48 = vsel %vm504_vm1, %v3197_v47, %v7413_v3  ;;  %v7470_v47 = vld [vmem:[%s6647_s19 + $0xc4] sm:$0xff]  }
 0x135   : > { %v1894_v42 = vshll.u32 %v7470_v47, 16 }
 0x136   : > { %6002 = vmatpush3.bf16.xpose.msra.mxu0 %v3451_v24  ;;  %v3131_v24 = vshrl.u32 %v7393_v38, 16 }
 0x137   : > { %6291 = vmatprep.subr.msk.bf16.mxu0 %vm872_vm0, %v3178_v62  ;;  %v3460_v62 = vsel %vm872_vm0, %v3130_v40, 0  ;;  %v1237_v40 = vsel %vm872_vm0, %v7077_v22, 0 }
 0x138   : > { %1340 = vmatpush1.bf16.xpose.msra.mxu1 %v1225_v50  ;;  %v3133_v35 = vor.u32 %v3131_v24, %v3129_v41  ;;  %v6585_v50 = vld [vmem:[%s6647_s19 + $0x140] sm:$0xff]   ;;  %v3351_v41 = vshll.u32 %v7451_v53, 16 }
 0x139   : > { %1341 = vmatprep.subr.bf16.mxu1 %v8880_v1  ;;  %v1231_v5 = vsel %vm872_vm0, %v6585_v50, 0 }
 0x13a   : > { %v3138_v45 = vsel %vm504_vm1, %v3133_v35, %v7274_v2  ;;  %v1233_v2 = vsel %vm872_vm0, %v6586_v36, 0  ;;  %v3353_v17 = vrot.slane %v3351_v41, 1  ;;  %v7478_v35 = vld [vmem:[%s6647_s19 + $0xcc] sm:$0xff]  }
 0x13e   : > { %6004 = vmatpush3.bf16.xpose.msra.mxu0 %v3454_v16  ;;  %v3463_v16 = vsel %vm872_vm0, %v3138_v45, 0  ;;  %v7483_v45 = vld [vmem:[%s6647_s19 + $0x150] sm:$0xff]  }
 0x13f   : > { %6292 = vmatprep.subr.msk.bf16.mxu0 %vm872_vm0, %v3186_v56  ;;  %v3337_v56 = vrot.slane %v3335_v31, 1  ;;  %v7487_v31 = vrot.slane %v1894_v42, 1  ;;  %v3367_v23 = vshll.u32 %v7483_v45, 16 }
 0x140   : > { %1342 = vmatpush1.bf16.xpose.msra.mxu1 %v1227_v4  ;;  %v3343_v4 = vshll.u32 %v7440_v14, 16 }
 0x141   : > { %1343 = vmatprep.subr.bf16.mxu1 %v8880_v1  ;;  %v3338_v27 = vsel %vm504_vm1, %v3333_v29, %v3337_v56  ;;  %v3341_v25 = vor.u32 %v3339_v11, %v3337_v56  ;;  %v1902_v29 = vshll.u32 %v7478_v35, 16  ;;  %v7492_v56 = vld [vmem:[%s6647_s19 + $0x8c] sm:$0xff]  }
 0x142   : > { %v3538_v21 = vsel %vm872_vm0, %v3338_v27, 0  ;;  %v3345_v46 = vrot.slane %v3343_v4, 1  ;;  %v1834_v27 = vshrl.u32 %v7155_v30, 16 }
 0x143   : > { %v1904_v4 = vrot.slane %v1902_v29, 1 }
 0x144   : > { %v3346_v9 = vsel %vm504_vm1, %v3341_v25, %v3345_v46  ;;  %v7503_v25 = vld [vmem:[%s6647_s19 + $0xd4] sm:$0xff]   ;;  %v1836_v41 = vor.u32 %v1834_v27, %v7166_v55 }
 0x145   : > { %v3541_v15 = vsel %vm872_vm0, %v3346_v9, 0  ;;  %v7507_v9 = vld [vmem:[%s6647_s19 + $0x158] sm:$0xff]  }
 0x146   : > { %6006 = vmatpush3.bf16.xpose.msra.mxu0 %v3457_v10  ;;  %v1235_v10 = vsel %vm872_vm0, %v6587_v34, 0  ;;  %v3375_v55 = vshll.u32 %v7507_v9, 16 }
 0x147   : > { %6293 = vmatprep.subr.msk.bf16.mxu0 %vm872_vm0, %v3194_v7  ;;  %v3347_v7 = vshrl.u32 %v7440_v14, 16 }
 0x148   : > { %1344 = vmatpush1.bf16.xpose.msra.mxu1 %v1229_v54  ;;  %v7465_v54 = vld [vmem:[%s6647_s19 + $0x148] sm:$0xff]  }
 0x149   : > { %1345 = vmatprep.subr.bf16.mxu1 %v8880_v1  ;;  %v3349_v60 = vor.u32 %v3347_v7, %v3345_v46  ;;  %v1241_v7 = vsel %vm872_vm0, %v7117_v13, 0  ;;  %v3371_v13 = vshrl.u32 %v7483_v45, 16 }
 0x14b   : > { %v3354_v24 = vsel %vm504_vm1, %v3349_v60, %v3353_v17 }
 0x14c   : > { %v3544_v22 = vsel %vm872_vm0, %v3354_v24, 0  ;;  %v7516_v24 = vld [vmem:[%s6647_s19 + $0x94] sm:$0xff]  }
 0x14e   : > { %6008 = vmatpush3.bf16.xpose.msra.mxu0 %v3460_v62  ;;  %v3355_v62 = vshrl.u32 %v7451_v53, 16 }
 0x14f   : > { %6294 = vmatprep.subr.msk.bf16.mxu0 %vm872_vm0, %v3202_v48  ;;  %v3359_v48 = vshll.u32 %v7465_v54, 16 }
 0x150   : > { %1346 = vmatpush1.bf16.xpose.msra.mxu1 %v1231_v5  ;;  %v3357_v50 = vor.u32 %v3355_v62, %v3353_v17  ;;  %v1906_v17 = vshrl.u32 %v7478_v35, 16 }
 0x151   : > { %1347 = vmatprep.subr.bf16.mxu1 %v8880_v1  ;;  %v3361_v5 = vrot.slane %v3359_v48, 1  ;;  %v1842_v48 = vshrl.u32 %v7492_v56, 16 }
 0x153   : > { %v3362_v36 = vsel %vm504_vm1, %v3357_v50, %v3361_v5 }
 0x154   : > { %v3547_v46 = vsel %vm872_vm0, %v3362_v36, 0  ;;  %v3377_v36 = vrot.slane %v3375_v55, 1 }
 0x156   : > { %6010 = vmatpush3.bf16.xpose.msra.mxu0 %v3463_v16  ;;  %v1898_v16 = vshrl.u32 %v7470_v47, 16 }
 0x157   : > { %3665 = vmatprep.subr.bf16.mxu0 %v8880_v1 }
 0x158   : > { %1348 = vmatpush1.bf16.xpose.msra.mxu1 %v1233_v2  ;;  %v3363_v2 = vshrl.u32 %v7465_v54, 16  ;;  %v1900_v11 = vor.u32 %v1898_v16, %v7487_v31 }
 0x159   : > { %1349 = vmatprep.subr.bf16.mxu1 %v8880_v1 }
 0x15a   : > { %v3365_v34 = vor.u32 %v3363_v2, %v3361_v5  ;;  %v1846_v5 = vshll.u32 %v7516_v24, 16  ;;  %v7531_v2 = vld [vmem:[%s6647_s19 + $0x160] sm:$0xff]  }
 0x15d   : > { %6012 = vmatmul.mubr.msk.bf16.vlgmr.msra.gmra.mrb[0].mxu0 %vm872_vm0, %v7314_v49 }
 0x15e   : > { %3666 = vmatpush1.bf16.xpose.msra.mxu0 %v3538_v21  ;;  %3697 = vmatprep.mubr.bf16.mxu0 %v8880_v1  ;;  %v1838_v21 = vshll.u32 %v7492_v56, 16 }
 0x15f   : > { %3667 = vmatprep.subr.bf16.mxu0 %v8880_v1 }
 0x160   : > { %1350 = vmatpush1.bf16.xpose.msra.mxu1 %v1235_v10  ;;  %v3369_v10 = vrot.slane %v3367_v23, 1  ;;  %v1840_v60 = vrot.slane %v1838_v21, 1  ;;  %v1848_v21 = vrot.slane %v1846_v5, 1 }
 0x161   : > { %1351 = vmatprep.subr.bf16.mxu1 %v8880_v1 }
 0x162   : > { %v3370_v62 = vsel %vm504_vm1, %v3365_v34, %v3369_v10  ;;  %v1841_v42 = vsel %vm504_vm1, %v1836_v41, %v1840_v60  ;;  %v3373_v29 = vor.u32 %v3371_v13, %v3369_v10  ;;  %v1844_v27 = vor.u32 %v1842_v48, %v1840_v60  ;;  %v7538_v34 = vld [vmem:[%s6647_s19 + $0x9c] sm:$0xff]   ;;  %v7558_v13 = vld [vmem:[%s6647_s19 + $0xe4] sm:$0xff]  }
 0x163   : > { %v3550_v16 = vsel %vm872_vm0, %v3370_v62, 0  ;;  %v2121_v23 = vsel %vm872_vm0, %v1841_v42, 0  ;;  %v3383_v41 = vshll.u32 %v7531_v2, 16  ;;  %v1854_v62 = vshll.u32 %v7538_v34, 16 }
 0x164   : > { %v3378_v10 = vsel %vm504_vm1, %v3373_v29, %v3377_v36  ;;  %v1849_v60 = vsel %vm504_vm1, %v1844_v27, %v1848_v21  ;;  %v1926_v27 = vshll.u32 %v7558_v13, 16 }
 0x165   : > { %v3553_v55 = vsel %vm872_vm0, %v3378_v10, 0  ;;  %v3385_v42 = vrot.slane %v3383_v41, 1  ;;  %v2124_v5 = vsel %vm872_vm0, %v1849_v60, 0  ;;  %v7580_v60 = vld [vmem:[%s6647_s19 + $0xec] sm:$0xff]  }
 0x166   : > { %3668 = vmatpush1.bf16.xpose.msra.mxu0 %v3541_v15  ;;  %v1905_v15 = vsel %vm504_vm1, %v1900_v11, %v1904_v4  ;;  %v1928_v41 = vrot.slane %v1926_v27, 1  ;;  %8923 = vst [vmem:[#allocation7_spill] sm:$0xff] %v7580_v60  ;;  %v7591_v27 = vld [vmem:[%s6647_s19 + $0xac] sm:$0xff]  }
 0x167   : > { %3669 = vmatprep.subr.bf16.mxu0 %v8880_v1  ;;  %8925 = vst [vmem:[#allocation9_spill] sm:$0xff] %v7591_v27 }
 0x168   : > { %1352 = vmatpush1.bf16.xpose.msra.mxu1 %v1237_v40  ;;  %v1910_v40 = vshll.u32 %v7503_v25, 16 }
 0x169   : > { %1353 = vmatprep.subr.bf16.mxu1 %v8880_v1 }
 0x16a   : > { %v1912_v50 = vrot.slane %v1910_v40, 1 }
 0x16e   : > { %3670 = vmatpush1.bf16.xpose.msra.mxu0 %v3544_v22  ;;  %v1908_v22 = vor.u32 %v1906_v17, %v1904_v4  ;;  %v1914_v4 = vshrl.u32 %v7503_v25, 16 }
 0x16f   : > { %3671 = vmatprep.subr.bf16.mxu0 %v8880_v1 }
 0x170   : > { %1354 = vmatpush1.bf16.xpose.msra.mxu1 %v1239_v58  ;;  %v7527_v58 = vld [vmem:[%s6647_s19 + $0xdc] sm:$0xff]   ;;  %v1913_v11 = vsel %vm504_vm1, %v1908_v22, %v1912_v50  ;;  %v1916_v17 = vor.u32 %v1914_v4, %v1912_v50  ;;  %v7562_v22 = vld [vmem:[%s6647_s19 + $0x168] sm:$0xff]   ;;  %v3387_v4 = vshrl.u32 %v7531_v2, 16 }
 0x171   : > { %1355 = vmatprep.subr.bf16.mxu1 %v8880_v1  ;;  %8921 = vst [vmem:[#allocation5_spill] sm:$0xff] %v7562_v22  ;;  %v1922_v50 = vshrl.u32 %v7527_v58, 16 }
 0x176   : > { %3672 = vmatpush1.bf16.xpose.msra.mxu0 %v3547_v46  ;;  %v1918_v46 = vshll.u32 %v7527_v58, 16 }
 0x177   : > { %3673 = vmatprep.subr.bf16.mxu0 %v8880_v1 }
 0x178   : > { %1356 = vmatpush1.bf16.xpose.msra.mxu1 %v1241_v7  ;;  %v3379_v7 = vshrl.u32 %v7507_v9, 16  ;;  %v1920_v40 = vrot.slane %v1918_v46, 1  ;;  %v1858_v46 = vshrl.u32 %v7538_v34, 16 }
 0x179   : > { %6263 = vmatprep.subr.msk.bf16.mxu1 %vm872_vm0, %v1905_v15  ;;  %v7549_v15 = vld [vmem:[%s8876_s1 + $0x10] sm:$0xff]  }
 0x17a   : > { %v3381_v48 = vor.u32 %v3379_v7, %v3377_v36  ;;  %v1921_v29 = vsel %vm504_vm1, %v1916_v17, %v1920_v40  ;;  %v1924_v7 = vor.u32 %v1922_v50, %v1920_v40  ;;  %v1930_v40 = vshrl.u32 %v7558_v13, 16 }
 0x17b   : > { %v1934_v50 = vshll.u32 %v7580_v60, 16 }
 0x17c   : > { %v3386_v36 = vsel %vm504_vm1, %v3381_v48, %v3385_v42  ;;  %v7584_v48 = vld [vmem:[%s6647_s19 + $0x170] sm:$0xff]   ;;  %v1929_v19 = vsel %vm504_vm1, %v1924_v7, %v1928_v41  ;;  %v1870_v7 = vshll.u32 %v7591_v27, 16 }
 0x17d   : > { %v3556_v17 = vsel %vm872_vm0, %v3386_v36, 0  ;;  %8924 = vst [vmem:[#allocation8_spill] sm:$0xff] %v7584_v48  ;;  %v3395_v36 = vshrl.u32 %v7562_v22, 16 }
 0x17e   : > { %3674 = vmatpush1.bf16.xpose.msra.mxu0 %v3550_v16 }
 0x17f   : > { %5670 = vmatmul.mubr.msk.bf16.vlgmr.msra.gmra.mrb[4].mxu1 %vm872_vm0, %v7185_v12  ;;  %3675 = vmatprep.subr.bf16.mxu0 %v8880_v1  ;;  %v1850_v12 = vshrl.u32 %v7516_v24, 16 }
 0x180   : > { %5942 = vmatpush3.bf16.xpose.msra.mxu1 %v2121_v23  ;;  %5957 = vmatprep.mubr.msk.bf16.mxu1 %vm872_vm0, %v7549_v15  ;;  %v1856_v23 = vrot.slane %v1854_v62, 1  ;;  %v3389_v62 = vor.u32 %v3387_v4, %v3385_v42 }
 0x181   : > { %6264 = vmatprep.subr.msk.bf16.mxu1 %vm872_vm0, %v1913_v11  ;;  %v1852_v16 = vor.u32 %v1850_v12, %v1848_v21  ;;  %v7569_v11 = vld [vmem:[%s6647_s19 + $0xa4] sm:$0xff]   ;;  %v3391_v21 = vshll.u32 %v7562_v22, 16  ;;  %v7672_v22 = vld [vmem:[%s6647_s19 + $0x10c] sm:$0xff]  }
 0x182   : > { %8922 = vst [vmem:[#allocation6_spill] sm:$0xff] %v7569_v11  ;;  %v1862_v12 = vshll.u32 %v7569_v11, 16  ;;  %v1866_v4 = vshrl.u32 %v7569_v11, 16  ;;  %v8929_v11 = vmov 0  }
 0x183   : > { %v1857_v10 = vsel %vm504_vm1, %v1852_v16, %v1856_v23 }
 0x184   : > { %v1864_v16 = vrot.slane %v1862_v12, 1  ;;  %v7602_v12 = vld [vmem:[%s6647_s19 + $0xf4] sm:$0xff]  }
 0x185   : > { %8926 = vst [vmem:[#allocation10_spill] sm:$0xff] %v7602_v12 }
 0x186   : > { %3676 = vmatpush1.bf16.xpose.msra.mxu0 %v3553_v55  ;;  %v3393_v55 = vrot.slane %v3391_v21, 1 }
 0x187   : > { %3677 = vmatprep.subr.bf16.mxu0 %v8880_v1 }
 0x188   : > { %5944 = vmatpush3.bf16.xpose.msra.mxu1 %v2124_v5  ;;  %v2127_v5 = vsel %vm872_vm0, %v1857_v10, 0  ;;  %v3394_v42 = vsel %vm504_vm1, %v3389_v62, %v3393_v55  ;;  %v1936_v10 = vrot.slane %v1934_v50, 1  ;;  %v3397_v62 = vor.u32 %v3395_v36, %v3393_v55  ;;  %v7613_v50 = vld [vmem:[%s6647_s19 + $0xb4] sm:$0xff]  }
 0x189   : > { %6265 = vmatprep.subr.msk.bf16.mxu1 %vm872_vm0, %v1921_v29  ;;  %v1860_v29 = vor.u32 %v1858_v46, %v1856_v23  ;;  %v3399_v23 = vshll.u32 %v7584_v48, 16  ;;  %v1932_v46 = vor.u32 %v1930_v40, %v1928_v41  ;;  %v1938_v41 = vshrl.u32 %v7580_v60, 16  ;;  %8928 = vst [vmem:[#allocation12_spill] sm:$0xff] %v7613_v50 }
 0x18a   : > { %v1942_v40 = vshll.u32 %v7602_v12, 16  ;;  %v1874_v36 = vshrl.u32 %v7591_v27, 16 }
 0x18b   : > { %v1865_v21 = vsel %vm504_vm1, %v1860_v29, %v1864_v16  ;;  %v1937_v3 = vsel %vm504_vm1, %v1932_v46, %v1936_v10  ;;  %v1872_v29 = vrot.slane %v1870_v7, 1  ;;  %v1878_v46 = vshll.u32 %v7613_v50, 16  ;;  %v7624_v7 = vld [vmem:[%s6647_s19 + $0xfc] sm:$0xff]  }
 0x18c   : > { %v2130_v51 = vsel %vm872_vm0, %v1865_v21, 0  ;;  %v1944_v21 = vrot.slane %v1942_v40, 1  ;;  %8930 = vst [vmem:[#allocation13_spill] sm:$0xff] %v7624_v7  ;;  %v7635_v40 = vld [vmem:[%s6647_s19 + $0xbc] sm:$0xff]  }
 0x18e   : > { %3678 = vmatpush1.bf16.xpose.msra.mxu0 %v3556_v17  ;;  %v3559_v17 = vsel %vm872_vm0, %v3394_v42, 0  ;;  %v3403_v42 = vshrl.u32 %v7584_v48, 16  ;;  %v7628_v48 = vld [vmem:[%s6647_s19 + $0x180] sm:$0xff]  }
 0x18f   : > { %3679 = vmatprep.subr.bf16.mxu0 %v8880_v1  ;;  %v7606_v1 = vld [vmem:[%s6647_s19 + $0x178] sm:$0xff]   ;;  %8931 = vst [vmem:[#allocation14_spill] sm:$0xff] %v7628_v48 }
 0x190   : > { %5946 = vmatpush3.bf16.xpose.msra.mxu1 %v2127_v5  ;;  %v3401_v5 = vrot.slane %v3399_v23, 1  ;;  %8927 = vst [vmem:[#allocation11_spill] sm:$0xff] %v7606_v1 }
 0x191   : > { %6266 = vmatprep.subr.msk.bf16.mxu1 %vm872_vm0, %v1929_v19  ;;  %v1868_v19 = vor.u32 %v1866_v4, %v1864_v16  ;;  %v3407_v16 = vshll.u32 %v7606_v1, 16  ;;  %v1940_v4 = vor.u32 %v1938_v41, %v1936_v10  ;;  %v1946_v10 = vshrl.u32 %v7602_v12, 16 }
 0x192   : > { %v3402_v55 = vsel %vm504_vm1, %v3397_v62, %v3401_v5  ;;  %v1950_v41 = vshll.u32 %v7624_v7, 16 }
 0x193   : > { %v1873_v23 = vsel %vm504_vm1, %v1868_v19, %v1872_v29  ;;  %v3409_v62 = vrot.slane %v3407_v16, 1  ;;  %v1945_v27 = vsel %vm504_vm1, %v1940_v4, %v1944_v21  ;;  %v1880_v19 = vrot.slane %v1878_v46, 1  ;;  %v7646_v46 = vld [vmem:[%s6647_s19 + $0x104] sm:$0xff]  }
 0x194   : > { %v2133_v60 = vsel %vm872_vm0, %v1873_v23, 0  ;;  %v1952_v23 = vrot.slane %v1950_v41, 1  ;;  %v1886_v4 = vshll.u32 %v7635_v40, 16  ;;  %v1958_v41 = vshll.u32 %v7646_v46, 16 }
 0x196   : > { %3680 = vmatpush1.bf16.xpose.msra.mxu0 %v3559_v17  ;;  %v3405_v17 = vor.u32 %v3403_v42, %v3401_v5  ;;  %v1882_v42 = vshrl.u32 %v7613_v50, 16 }
 0x197   : > { %3681 = vmatprep.subr.bf16.mxu0 %v8929_v11 }
 0x198   : > { %5948 = vmatpush3.bf16.xpose.msra.mxu1 %v2130_v51  ;;  %v3562_v51 = vsel %vm872_vm0, %v3402_v55, 0  ;;  %v3410_v5 = vsel %vm504_vm1, %v3405_v17, %v3409_v62  ;;  %v3411_v55 = vshrl.u32 %v7606_v1, 16  ;;  %v7650_v1 = vld [vmem:[%s6647_s19 + $0x188] sm:$0xff]   ;;  %v1884_v12 = vor.u32 %v1882_v42, %v1880_v19 }
 0x199   : > { %6267 = vmatprep.subr.msk.bf16.mxu1 %vm872_vm0, %v1937_v3  ;;  %v1876_v3 = vor.u32 %v1874_v36, %v1872_v29  ;;  %v3415_v29 = vshll.u32 %v7628_v48, 16  ;;  %v1948_v36 = vor.u32 %v1946_v10, %v1944_v21  ;;  %v1888_v21 = vrot.slane %v1886_v4, 1 }
 0x19a   : > { %v1954_v10 = vshrl.u32 %v7624_v7, 16  ;;  %v1890_v4 = vshrl.u32 %v7635_v40, 16 }
 0x19b   : > { %v1881_v16 = vsel %vm504_vm1, %v1876_v3, %v1880_v19  ;;  %v3417_v17 = vrot.slane %v3415_v29, 1  ;;  %v1953_v3 = vsel %vm504_vm1, %v1948_v36, %v1952_v23  ;;  %v7662_v19 = vld [vmem:[%s6647_s19 + $0x190] sm:$0xf]  ;;  %v2832_v29 = vld [vmem:[%s6647_s19 + $0x194] sm:$0x1]  ;;  %v1889_v42 = vsel %vm504_vm1, %v1884_v12, %v1888_v21 }
 0x19c   : > { %v1960_v36 = vrot.slane %v1958_v41, 1  ;;  %v2139_v7 = vsel %vm872_vm0, %v1889_v42, 0  ;;  %v1892_v50 = vor.u32 %v1890_v4, %v1888_v21  ;;  %v1962_v41 = vshrl.u32 %v7646_v46, 16 }
 0x19d   : > { %v1966_v21 = vshll.u32 %v7672_v22, 16  ;;  %v1970_v4 = vshrl.u32 %v7672_v22, 16 }
 0x19e   : > { %3682 = vmatpush1.bf16.xpose.msra.mxu0 %v3562_v51  ;;  %v3413_v51 = vor.u32 %v3411_v55, %v3409_v62  ;;  %v3423_v55 = vshll.u32 %v7650_v1, 16 }
 0x19f   : > { %3683 = vmatprep.subr.bf16.mxu0 %v8929_v11  ;;  %v1968_v42 = vrot.slane %v1966_v21, 1 }
 0x1a0   : > { %5950 = vmatpush3.bf16.xpose.msra.mxu1 %v2133_v60  ;;  %v3565_v60 = vsel %vm872_vm0, %v3410_v5, 0  ;;  %v3418_v62 = vsel %vm504_vm1, %v3413_v51, %v3417_v17  ;;  %v3419_v5 = vshrl.u32 %v7628_v48, 16  ;;  %v3425_v51 = vrot.slane %v3423_v55, 1 }
 0x1a1   : > { %6268 = vmatprep.subr.msk.bf16.mxu1 %vm872_vm0, %v1945_v27  ;;  %v2136_v27 = vsel %vm872_vm0, %v1881_v16, 0  ;;  %v1956_v16 = vor.u32 %v1954_v10, %v1952_v23  ;;  %v5779_v48 = vcombine.low %v7662_v19, %v2832_v29  ;;  %v3427_v23 = vshrl.u32 %v7650_v1, 16 }
 0x1a2   : > { %v1897_v10 = vsel %vm504_vm1, %v1892_v50, %v7487_v31  ;;  %v1964_v29 = vor.u32 %v1962_v41, %v1960_v36  ;;  %v3751_v41 = vrot.slane %v7250_v8, 1 }
 0x1a4   : > { %v1969_v50 = vsel %vm504_vm1, %v1964_v29, %v1968_v42 }
 0x1a6   : > { %3684 = vmatpush1.bf16.xpose.msra.mxu0 %v3565_v60  ;;  %v3568_v60 = vsel %vm872_vm0, %v3418_v62, 0 }
 0x1a7   : > { %3685 = vmatprep.subr.bf16.mxu0 %v8929_v11 }
 0x1a8   : > { %5952 = vmatpush3.bf16.xpose.msra.mxu1 %v2136_v27  ;;  %v3421_v27 = vor.u32 %v3419_v5, %v3417_v17  ;;  %v3431_v17 = vshll.u32 %v5779_v48, 16  ;;  %v3429_v5 = vor.u32 %v3427_v23, %v3425_v51 }
 0x1a9   : > { %6269 = vmatprep.subr.msk.bf16.mxu1 %vm872_vm0, %v1953_v3  ;;  %v1961_v3 = vsel %vm504_vm1, %v1956_v16, %v1960_v36  ;;  %v7685_v16 = vld [vmem:[%s6647_s19 + $0x114] sm:$0xff]   ;;  %v3435_v36 = vshrl.u32 %v5779_v48, 16  ;;  %v3753_v48 = vrot.slane %v7263_v28, 1  ;;  %v3737_v28 = vrot.slane %v7279_v44, 1 }
 0x1aa   : > { %v3426_v12 = vsel %vm504_vm1, %v3421_v27, %v3425_v51  ;;  %v3433_v55 = vrot.slane %v3431_v17, 1  ;;  %v2169_v51 = vsel %vm872_vm0, %v1969_v50, 0  ;;  %v7697_v17 = vld [vmem:[%s6647_s19 + $0x11c] sm:$0xff]  }
 0x1ab   : > { %v3571_v62 = vsel %vm872_vm0, %v3426_v12, 0  ;;  %v1972_v12 = vor.u32 %v1970_v4, %v1968_v42  ;;  %v3754_v29 = vsel %vm2367_vm2, %v3751_v41, %v3753_v48  ;;  %v7717_v4 = vld [vmem:[%s6647_s19 + $0x124] sm:$0xff]   ;;  %v1986_v44 = vshrl.u32 %v7697_v17, 16 }
 0x1ac   : > { %v3434_v31 = vsel %vm504_vm1, %v3429_v5, %v3433_v55  ;;  %v1978_v5 = vshrl.u32 %v7685_v16, 16 }
 0x1ad   : > { %v3574_v27 = vsel %vm872_vm0, %v3434_v31, 0 }
 0x1ae   : > { %3686 = vmatpush1.bf16.xpose.msra.mxu0 %v3568_v60  ;;  %v1974_v60 = vshll.u32 %v7685_v16, 16 }
 0x1af   : > { %3687 = vmatprep.subr.bf16.mxu0 %v8929_v11 }
 0x1b0   : > { %5954 = vmatpush3.bf16.xpose.msra.mxu1 %v2139_v7  ;;  %v2142_v7 = vsel %vm872_vm0, %v1897_v10, 0  ;;  %v1976_v23 = vrot.slane %v1974_v60, 1  ;;  %v3437_v10 = vor.u32 %v3435_v36, %v3433_v55 }
 0x1b1   : > { %6270 = vmatprep.subr.msk.bf16.mxu1 %vm872_vm0, %v1961_v3  ;;  %v3720_v3 = vld [vmem:[%s6647_s19 + $0x28] sm:$0xe] }
 0x1b2   : > { %v5786_v21 = vcombine.low %v3720_v3, %v7254_v39  ;;  %v3577_v55 = vsel %vm872_vm0, %v3437_v10, 0  ;;  %v1980_v31 = vor.u32 %v1978_v5, %v1976_v23  ;;  %v7729_v3 = vld [vmem:[%s8876_s1 + $0x28] sm:$0xff]   ;;  %v3739_v10 = vrot.slane %v7299_v6, 1 }
 0x1b3   : > { %v7738_v5 = vld [vmem:[%s6647_s19 + $0x12c] sm:$0xff]   ;;  %v3757_v6 = vrot.slane %v7308_v59, 1  ;;  %v7754_v59 = vld [vmem:[%s6647_s19 + $0x134] sm:$0xff]  }
 0x1b4   : > { %v3736_v42 = vrot.slane %v5786_v21, 1 }
 0x1b6   : > { %3688 = vmatpush1.bf16.xpose.msra.mxu0 %v3571_v62  ;;  %v1977_v62 = vsel %vm504_vm1, %v1972_v12, %v1976_v23  ;;  %v3738_v60 = vsel %vm2367_vm2, %v3736_v42, %v3737_v28 }
 0x1b7   : > { %3689 = vmatprep.subr.bf16.mxu0 %v8929_v11  ;;  %v2172_v39 = vsel %vm872_vm0, %v1977_v62, 0  ;;  %v3831_v12 = vsel %vm872_vm0, %v3738_v60, 0 }
 0x1b8   : > { %5956 = vmatpush3.bf16.xpose.msra.mxu1 %v2142_v7  ;;  %v1982_v7 = vshll.u32 %v7697_v17, 16 }
 0x1b9   : > { %2296 = vmatprep.subr.bf16.mxu1 %v8929_v11 }
 0x1ba   : > { %v1984_v50 = vrot.slane %v1982_v7, 1  ;;  %v1994_v7 = vshrl.u32 %v7717_v4, 16 }
 0x1bc   : > { %v1985_v36 = vsel %vm504_vm1, %v1980_v31, %v1984_v50  ;;  %v1988_v21 = vor.u32 %v1986_v44, %v1984_v50  ;;  %v2006_v44 = vshll.u32 %v7754_v59, 16 }
 0x1be   : > { %3690 = vmatpush1.bf16.xpose.msra.mxu0 %v3574_v27  ;;  %v3755_v27 = vrot.slane %v7289_v0, 1  ;;  %v2175_v0 = vsel %vm872_vm0, %v1985_v36, 0  ;;  %v3759_v36 = vrot.slane %v7334_v26, 1  ;;  %v7768_v26 = vld [vmem:[%s6647_s19 + $0x13c] sm:$0xff]  }
 0x1bf   : > { %5958 = vmatmul.mubr.msk.bf16.vlgmr.msra.gmra.mrb[0].mxu1 %vm872_vm0, %v7549_v15  ;;  %3691 = vmatprep.subr.bf16.mxu0 %v8929_v11 }
 0x1c0   : > { %2297 = vmatpush1.bf16.xpose.msra.mxu1 %v2169_v51  ;;  %2328 = vmatprep.mubr.bf16.mxu1 %v8929_v11  ;;  %v1990_v51 = vshll.u32 %v7717_v4, 16  ;;  %v3756_v23 = vsel %vm2367_vm2, %v3753_v48, %v3755_v27  ;;  %v3740_v48 = vsel %vm2367_vm2, %v3737_v28, %v3739_v10  ;;  %v3758_v42 = vsel %vm2367_vm2, %v3755_v27, %v3757_v6 }
 0x1c1   : > { %2298 = vmatprep.subr.bf16.mxu1 %v8929_v11 }
 0x1c2   : > { %v1992_v62 = vrot.slane %v1990_v51, 1 }
 0x1c4   : > { %v1996_v28 = vor.u32 %v1994_v7, %v1992_v62 }
 0x1c6   : > { %3692 = vmatpush1.bf16.xpose.msra.mxu0 %v3577_v55  ;;  %v1998_v55 = vshll.u32 %v7738_v5, 16 }
 0x1c7   : > { %6303 = vmatprep.subr.msk.bf16.mxu0 %vm872_vm0, %v3754_v29  ;;  %v3834_v29 = vsel %vm872_vm0, %v3740_v48, 0  ;;  %v3761_v48 = vrot.slane %v7351_v32, 1  ;;  %v7782_v32 = vld [vmem:[%s6647_s19 + $0x144] sm:$0xff]  }
 0x1c8   : > { %2299 = vmatpush1.bf16.xpose.msra.mxu1 %v2172_v39  ;;  %v3741_v39 = vrot.slane %v7321_v61, 1  ;;  %v2000_v50 = vrot.slane %v1998_v55, 1  ;;  %v2002_v61 = vshrl.u32 %v7738_v5, 16 }
 0x1c9   : > { %2300 = vmatprep.subr.bf16.mxu1 %v8929_v11  ;;  %v3762_v55 = vsel %vm2367_vm2, %v3759_v36, %v3761_v48 }
 0x1ca   : > { %v3742_v60 = vsel %vm2367_vm2, %v3739_v10, %v3741_v39  ;;  %v2001_v27 = vsel %vm504_vm1, %v1996_v28, %v2000_v50  ;;  %v2004_v10 = vor.u32 %v2002_v61, %v2000_v50  ;;  %v3763_v50 = vrot.slane %v7368_v63, 1  ;;  %v7796_v63 = vld [vmem:[%s6647_s19 + $0x14c] sm:$0xff]  }
 0x1cb   : > { %v3837_v51 = vsel %vm872_vm0, %v3742_v60, 0 }
 0x1cc   : > { %v3764_v61 = vsel %vm2367_vm2, %v3761_v48, %v3763_v50 }
 0x1cd   : > { %5782 = vmatmul.mubr.msk.bf16.vlgmr.msra.gmra.mrb[4].mxu0 %vm872_vm0, %v7314_v49  ;;  %v1993_v49 = vsel %vm504_vm1, %v1988_v21, %v1992_v62  ;;  %v2008_v21 = vrot.slane %v2006_v44, 1  ;;  %v3747_v44 = vrot.slane %v7376_v33, 1  ;;  %v2026_v33 = vshrl.u32 %v7782_v32, 16 }
 0x1ce   : > { %6032 = vmatpush3.bf16.xpose.msra.mxu0 %v3831_v12  ;;  %6047 = vmatprep.mubr.msk.bf16.mxu0 %vm872_vm0, %v7729_v3  ;;  %v2178_v31 = vsel %vm872_vm0, %v1993_v49, 0  ;;  %v3760_v12 = vsel %vm2367_vm2, %v3757_v6, %v3759_v36  ;;  %v2014_v49 = vshll.u32 %v7768_v26, 16  ;;  %v2022_v36 = vshll.u32 %v7782_v32, 16 }
 0x1cf   : > { %6304 = vmatprep.subr.msk.bf16.mxu0 %vm872_vm0, %v3756_v23  ;;  %v3743_v23 = vrot.slane %v7342_v20, 1  ;;  %v2009_v6 = vsel %vm504_vm1, %v2004_v10, %v2008_v21  ;;  %v2010_v20 = vshrl.u32 %v7754_v59, 16  ;;  %v3765_v10 = vrot.slane %v7385_v18, 1  ;;  %v7810_v18 = vld [vmem:[%s6647_s19 + $0x154] sm:$0xff]  }
 0x1d0   : > { %2301 = vmatpush1.bf16.xpose.msra.mxu1 %v2175_v0  ;;  %v2181_v0 = vsel %vm872_vm0, %v2001_v27, 0 }
 0x1d1   : > { %2302 = vmatprep.subr.bf16.mxu1 %v8929_v11  ;;  %v3744_v62 = vsel %vm2367_vm2, %v3741_v39, %v3743_v23  ;;  %v2012_v39 = vor.u32 %v2010_v20, %v2008_v21  ;;  %v3749_v20 = vrot.slane %v7393_v38, 1  ;;  %v2034_v38 = vshrl.u32 %v7796_v63, 16 }
 0x1d2   : > { %v3840_v7 = vsel %vm872_vm0, %v3744_v62, 0  ;;  %v2030_v62 = vshll.u32 %v7796_v63, 16 }
 0x1d6   : > { %6034 = vmatpush3.bf16.xpose.msra.mxu0 %v3834_v29  ;;  %v3745_v29 = vrot.slane %v7359_v52, 1  ;;  %v2018_v52 = vshrl.u32 %v7768_v26, 16 }
 0x1d7   : > { %6305 = vmatprep.subr.msk.bf16.mxu0 %vm872_vm0, %v3758_v42  ;;  %v2184_v42 = vsel %vm872_vm0, %v2009_v6, 0  ;;  %v3766_v6 = vsel %vm2367_vm2, %v3763_v50, %v3765_v10 }
 0x1d8   : > { %2303 = vmatpush1.bf16.xpose.msra.mxu1 %v2178_v31  ;;  %v2016_v31 = vrot.slane %v2014_v49, 1  ;;  %v3746_v28 = vsel %vm2367_vm2, %v3743_v23, %v3745_v29  ;;  %v2024_v23 = vrot.slane %v2022_v36, 1 }
 0x1d9   : > { %2304 = vmatprep.subr.bf16.mxu1 %v8929_v11  ;;  %v3843_v27 = vsel %vm872_vm0, %v3746_v28, 0 }
 0x1da   : > { %v2017_v60 = vsel %vm504_vm1, %v2012_v39, %v2016_v31 }
 0x1de   : > { %6036 = vmatpush3.bf16.xpose.msra.mxu0 %v3837_v51  ;;  %v2187_v51 = vsel %vm872_vm0, %v2017_v60, 0 }
 0x1df   : > { %6306 = vmatprep.subr.msk.bf16.mxu0 %vm872_vm0, %v3760_v12  ;;  %v2020_v12 = vor.u32 %v2018_v52, %v2016_v31  ;;  %v2038_v31 = vshll.u32 %v7810_v18, 16 }
 0x1e0   : > { %2305 = vmatpush1.bf16.xpose.msra.mxu1 %v2181_v0  ;;  %v3748_v0 = vsel %vm2367_vm2, %v3745_v29, %v3747_v44  ;;  %v3750_v29 = vsel %vm2367_vm2, %v3747_v44, %v3749_v20 }
 0x1e1   : > { %2306 = vmatprep.subr.bf16.mxu1 %v8929_v11  ;;  %v2025_v21 = vsel %vm504_vm1, %v2020_v12, %v2024_v23  ;;  %v3846_v48 = vsel %vm872_vm0, %v3748_v0, 0  ;;  %v3849_v28 = vsel %vm872_vm0, %v3750_v29, 0  ;;  %v2040_v36 = vrot.slane %v2038_v31, 1 }
 0x1e2   : > { %v2190_v49 = vsel %vm872_vm0, %v2025_v21, 0  ;;  %v8896_v0 = vrot.slane %v7417_v57, 1 }
 0x1e6   : > { %6038 = vmatpush3.bf16.xpose.msra.mxu0 %v3840_v7  ;;  %v2028_v7 = vor.u32 %v2026_v33, %v2024_v23  ;;  %v7840_v33 = vld [vmem:[%s6647_s19 + $0x164] sm:$0xff]  }
 0x1e7   : > { %6307 = vmatprep.subr.msk.bf16.mxu0 %vm872_vm0, %v3762_v55  ;;  %v2032_v55 = vrot.slane %v2030_v62, 1 }
 0x1e8   : > { %2307 = vmatpush1.bf16.xpose.msra.mxu1 %v2184_v42  ;;  %v8898_v42 = vrot.slane %v7402_v43, 1 }
 0x1e9   : > { %2308 = vmatprep.subr.bf16.mxu1 %v8929_v11  ;;  %v2033_v39 = vsel %vm504_vm1, %v2028_v7, %v2032_v55  ;;  %v2036_v52 = vor.u32 %v2034_v38, %v2032_v55  ;;  %v1463_v7 = vld [vmem:[%s6647_s19 + $0x170] sm:$0x1]  ;;  %v3803_v55 = vrot.slane %v7440_v14, 1 }
 0x1ea   : > { %v3768_v50 = vsel %vm2367_vm2, %v3765_v10, %v8898_v42  ;;  %v2193_v60 = vsel %vm872_vm0, %v2033_v39, 0  ;;  %v3801_v10 = vrot.slane %v7424_v37, 1 }
 0x1eb   : > { %v2041_v44 = vsel %vm504_vm1, %v2036_v52, %v2040_v36 }
 0x1ec   : > { %v2196_v8 = vsel %vm872_vm0, %v2041_v44, 0  ;;  %v3802_v62 = vsel %vm2367_vm2, %v8896_v0, %v3801_v10 }
 0x1ee   : > { %6040 = vmatpush3.bf16.xpose.msra.mxu0 %v3843_v27  ;;  %v7825_v27 = vld [vmem:[%s6647_s19 + $0x15c] sm:$0xff]  }
 0x1ef   : > { %6308 = vmatprep.subr.msk.bf16.mxu0 %vm872_vm0, %v3764_v61  ;;  %v3752_v61 = vsel %vm2367_vm2, %v3749_v20, %v3751_v41  ;;  %v2046_v12 = vshll.u32 %v7825_v27, 16  ;;  %v2050_v37 = vshrl.u32 %v7825_v27, 16  ;;  %v3927_v20 = vsel %vm872_vm0, %v3802_v62, 0 }
 0x1f0   : > { %2309 = vmatpush1.bf16.xpose.msra.mxu1 %v2187_v51  ;;  %v2042_v51 = vshrl.u32 %v7810_v18, 16  ;;  %v3852_v23 = vsel %vm872_vm0, %v3752_v61, 0 }
 0x1f1   : > { %2310 = vmatprep.subr.bf16.mxu1 %v8929_v11  ;;  %v2048_v21 = vrot.slane %v2046_v12, 1 }
 0x1f2   : > { %v2044_v41 = vor.u32 %v2042_v51, %v2040_v36  ;;  %v3805_v36 = vrot.slane %v7451_v53, 1 }
 0x1f3   : > { %v2052_v39 = vor.u32 %v2050_v37, %v2048_v21  ;;  %v2417_v37 = vrot.slane %v7478_v35, 1  ;;  %v8932_v35 = vrot.slane %v7155_v30, 1 }
 0x1f4   : > { %v3806_v12 = vsel %vm2367_vm2, %v3803_v55, %v3805_v36 }
 0x1f6   : > { %6042 = vmatpush3.bf16.xpose.msra.mxu0 %v3846_v48  ;;  %v2049_v48 = vsel %vm504_vm1, %v2044_v41, %v2048_v21 }
 0x1f7   : > { %6309 = vmatprep.subr.msk.bf16.mxu0 %vm872_vm0, %v3766_v6  ;;  %v2054_v6 = vshll.u32 %v7840_v33, 16  ;;  %v2199_v29 = vsel %vm872_vm0, %v2049_v48, 0  ;;  %v2415_v48 = vrot.slane %v7470_v47, 1 }
 0x1f8   : > { %2311 = vmatpush1.bf16.xpose.msra.mxu1 %v2190_v49  ;;  %v7852_v49 = vld [vmem:[%s6647_s19 + $0x16c] sm:$0xf] }
 0x1f9   : > { %2312 = vmatprep.subr.bf16.mxu1 %v8929_v11  ;;  %v2056_v38 = vrot.slane %v2054_v6, 1  ;;  %v5719_v31 = vcombine.low %v7852_v49, %v1463_v7  ;;  %v2418_v7 = vsel %vm2367_vm2, %v2415_v48, %v2417_v37 }
 0x1fb   : > { %v2057_v14 = vsel %vm504_vm1, %v2052_v39, %v2056_v38  ;;  %v2066_v41 = vshrl.u32 %v5719_v31, 16  ;;  %v2419_v39 = vrot.slane %v7503_v25, 1  ;;  %v7907_v25 = vld [vmem:[%s8876_s1 + $0x18] sm:$0xff]  }
 0x1fc   : > { %v2202_v61 = vsel %vm872_vm0, %v2057_v14, 0  ;;  %v2403_v14 = vrot.slane %v7516_v24, 1  ;;  %v2421_v24 = vrot.slane %v7527_v58, 1 }
 0x1fe   : > { %6044 = vmatpush3.bf16.xpose.msra.mxu0 %v3849_v28  ;;  %v3804_v28 = vsel %vm2367_vm2, %v3801_v10, %v3803_v55  ;;  %v3933_v10 = vsel %vm872_vm0, %v3806_v12, 0  ;;  %v2401_v55 = vrot.slane %v7492_v56, 1  ;;  %v2420_v56 = vsel %vm2367_vm2, %v2417_v37, %v2419_v39  ;;  %v8936_v37 = vld [vmem:[#allocation8_spill] sm:$0xff] }
 0x1ff   : > { %6310 = vmatprep.subr.msk.bf16.mxu0 %vm872_vm0, %v3768_v50  ;;  %v2058_v50 = vshrl.u32 %v7840_v33, 16  ;;  %v3930_v52 = vsel %vm872_vm0, %v3804_v28, 0 }
 0x200   : > { %2313 = vmatpush1.bf16.xpose.msra.mxu1 %v2193_v60  ;;  %v2062_v60 = vshll.u32 %v5719_v31, 16  ;;  %v3811_v31 = vrot.slane %v7507_v9, 1  ;;  %v2404_v9 = vsel %vm2367_vm2, %v2401_v55, %v2403_v14 }
 0x201   : > { %2314 = vmatprep.subr.bf16.mxu1 %v8929_v11  ;;  %v2060_v44 = vor.u32 %v2058_v50, %v2056_v38  ;;  %v3813_v50 = vrot.slane %v7531_v2, 1 }
 0x202   : > { %v2064_v51 = vrot.slane %v2062_v60, 1  ;;  %v2514_v60 = vsel %vm872_vm0, %v2404_v9, 0 }
 0x204   : > { %v2068_v62 = vor.u32 %v2066_v41, %v2064_v51  ;;  %v8935_v41 = vld [vmem:[#allocation7_spill] sm:$0xff] }
 0x206   : > { %6046 = vmatpush3.bf16.xpose.msra.mxu0 %v3852_v23  ;;  %v2065_v23 = vsel %vm504_vm1, %v2060_v44, %v2064_v51  ;;  %v2423_v44 = vrot.slane %v7558_v13, 1  ;;  %v8933_v51 = vld [vmem:[#allocation5_spill] sm:$0xff] }
 0x207   : > { %4054 = vmatprep.subr.bf16.mxu0 %v8929_v11  ;;  %v2205_v53 = vsel %vm872_vm0, %v2065_v23, 0  ;;  %v3815_v12 = vrot.slane %v8933_v51, 1 }
 0x208   : > { %2315 = vmatpush1.bf16.xpose.msra.mxu1 %v2196_v8  ;;  %v3807_v8 = vrot.slane %v7465_v54, 1  ;;  %v3809_v54 = vrot.slane %v7483_v45, 1  ;;  %v2402_v45 = vsel %vm2367_vm2, %v8932_v35, %v2401_v55 }
 0x209   : > { %2316 = vmatprep.subr.bf16.mxu1 %v8929_v11  ;;  %v2511_v28 = vsel %vm872_vm0, %v2402_v45, 0  ;;  %v8938_v45 = vld [vmem:[#allocation10_spill] sm:$0xff] }
 0x20a   : > { %v3808_v21 = vsel %vm2367_vm2, %v3805_v36, %v3807_v8  ;;  %v3812_v30 = vsel %vm2367_vm2, %v3809_v54, %v3811_v31  ;;  %v2405_v36 = vrot.slane %v7538_v34, 1  ;;  %v2424_v34 = vsel %vm2367_vm2, %v2421_v24, %v2423_v44 }
 0x20b   : > { %v3936_v6 = vsel %vm872_vm0, %v3808_v21, 0  ;;  %v2425_v21 = vrot.slane %v8935_v41, 1 }
 0x20c   : > { %v2406_v58 = vsel %vm2367_vm2, %v2403_v14, %v2405_v36 }
 0x20d   : > { %6048 = vmatmul.mubr.msk.bf16.vlgmr.msra.gmra.mrb[0].mxu0 %vm872_vm0, %v7729_v3  ;;  %v2517_v23 = vsel %vm872_vm0, %v2406_v58, 0 }
 0x20e   : > { %4055 = vmatpush1.bf16.xpose.msra.mxu0 %v3927_v20  ;;  %4086 = vmatprep.mubr.bf16.mxu0 %v8929_v11  ;;  %v2208_v20 = vsel %vm872_vm0, %v2068_v62, 0 }
 0x20f   : > { %4056 = vmatprep.subr.bf16.mxu0 %v8929_v11 }
 0x210   : > { %2317 = vmatpush1.bf16.xpose.msra.mxu1 %v2199_v29  ;;  %v3810_v29 = vsel %vm2367_vm2, %v3807_v8, %v3809_v54 }
 0x211   : > { %2318 = vmatprep.subr.bf16.mxu1 %v8929_v11  ;;  %v3939_v38 = vsel %vm872_vm0, %v3810_v29, 0 }
 0x216   : > { %4057 = vmatpush1.bf16.xpose.msra.mxu0 %v3930_v52  ;;  %v2422_v52 = vsel %vm2367_vm2, %v2419_v39, %v2421_v24  ;;  %v2427_v39 = vrot.slane %v8938_v45, 1 }
 0x217   : > { %4058 = vmatprep.subr.bf16.mxu0 %v8929_v11 }
 0x218   : > { %2319 = vmatpush1.bf16.xpose.msra.mxu1 %v2202_v61  ;;  %v3814_v61 = vsel %vm2367_vm2, %v3811_v31, %v3813_v50  ;;  %v8939_v31 = vld [vmem:[#allocation11_spill] sm:$0xff]  ;;  %v2428_v14 = vsel %vm2367_vm2, %v2425_v21, %v2427_v39 }
 0x219   : > { %2320 = vmatprep.subr.bf16.mxu1 %v8929_v11  ;;  %v3945_v2 = vsel %vm872_vm0, %v3814_v61, 0 }
 0x21e   : > { %4059 = vmatpush1.bf16.xpose.msra.mxu0 %v3933_v10  ;;  %v8934_v10 = vld [vmem:[#allocation6_spill] sm:$0xff] }
 0x21f   : > { %4060 = vmatprep.subr.bf16.mxu0 %v8929_v11  ;;  %v2407_v8 = vrot.slane %v8934_v10, 1  ;;  %v3823_v10 = vrot.slane %v7650_v1, 1 }
 0x220   : > { %2321 = vmatpush1.bf16.xpose.msra.mxu1 %v2205_v53  ;;  %v3816_v53 = vsel %vm2367_vm2, %v3813_v50, %v3815_v12  ;;  %v8941_v50 = vld [vmem:[#allocation13_spill] sm:$0xff] }
 0x221   : > { %2322 = vmatprep.subr.bf16.mxu1 %v8929_v11  ;;  %v2408_v13 = vsel %vm2367_vm2, %v2405_v36, %v2407_v8  ;;  %v3948_v62 = vsel %vm872_vm0, %v3816_v53, 0  ;;  %v8942_v36 = vld [vmem:[#allocation14_spill] sm:$0xff]  ;;  %v3721_v53 = vld [vmem:[%s6647_s19 + $0x194] sm:$0x3] }
 0x222   : > { %v2520_v54 = vsel %vm872_vm0, %v2408_v13, 0  ;;  %v3821_v61 = vrot.slane %v8942_v36, 1  ;;  %v5787_v41 = vcombine.low %v7662_v19, %v3721_v53  ;;  %v8034_v36 = vld [vmem:[%s6647_s19 + $0x84] sm:$0xff]  }
 0x224   : > { %v3824_v13 = vsel %vm2367_vm2, %v3821_v61, %v3823_v10 }
 0x226   : > { %4061 = vmatpush1.bf16.xpose.msra.mxu0 %v3936_v6  ;;  %v3817_v6 = vrot.slane %v8936_v37, 1  ;;  %v2433_v37 = vrot.slane %v7672_v22, 1  ;;  %v2435_v22 = vrot.slane %v7685_v16, 1 }
 0x227   : > { %4062 = vmatprep.subr.bf16.mxu0 %v8929_v11 }
 0x228   : > { %2323 = vmatpush1.bf16.xpose.msra.mxu1 %v2208_v20  ;;  %v2426_v20 = vsel %vm2367_vm2, %v2423_v44, %v2425_v21  ;;  %v3818_v29 = vsel %vm2367_vm2, %v3815_v12, %v3817_v6  ;;  %v3825_v21 = vrot.slane %v5787_v41, 1  ;;  %v2436_v16 = vsel %vm2367_vm2, %v2433_v37, %v2435_v22 }
 0x229   : > { %6279 = vmatprep.subr.msk.bf16.mxu1 %vm872_vm0, %v2418_v7  ;;  %v8937_v7 = vld [vmem:[#allocation9_spill] sm:$0xff] }
 0x22a   : > { %v2409_v55 = vrot.slane %v8937_v7, 1  ;;  %v3826_v19 = vsel %vm2367_vm2, %v3823_v10, %v3825_v21  ;;  %v3966_v45 = vsel %vm872_vm0, %v3825_v21, 0  ;;  %v8070_v21 = vld [vmem:[%s6647_s19 + $0x94] sm:$0xff]  }
 0x22c   : > { %v2410_v35 = vsel %vm2367_vm2, %v2407_v8, %v2409_v55 }
 0x22e   : > { %4063 = vmatpush1.bf16.xpose.msra.mxu0 %v3939_v38  ;;  %v3951_v38 = vsel %vm872_vm0, %v3818_v29, 0  ;;  %v7998_v29 = vld [vmem:[%s6647_s19 + $0x2c] sm:$0xfe]  }
 0x22f   : > { %5722 = vmatmul.mubr.msk.bf16.vlgmr.msra.gmra.mrb[4].mxu1 %vm872_vm0, %v7549_v15  ;;  %4064 = vmatprep.subr.bf16.mxu0 %v8929_v11  ;;  %v3942_v15 = vsel %vm872_vm0, %v3812_v30, 0  ;;  %v8940_v30 = vld [vmem:[#allocation12_spill] sm:$0xff] }
 0x230   : > { %5978 = vmatpush3.bf16.xpose.msra.mxu1 %v2511_v28  ;;  %5993 = vmatprep.mubr.msk.bf16.mxu1 %vm872_vm0, %v7907_v25  ;;  %v3819_v28 = vrot.slane %v8939_v31, 1  ;;  %v2411_v9 = vrot.slane %v8940_v30, 1 }
 0x231   : > { %6280 = vmatprep.subr.msk.bf16.mxu1 %vm872_vm0, %v2420_v56  ;;  %v2523_v56 = vsel %vm872_vm0, %v2410_v35, 0  ;;  %v8001_v35 = vld [vmem:[%s6647_s19 + $0x34] sm:$0xff]  }
 0x232   : > { %v3820_v24 = vsel %vm2367_vm2, %v3817_v6, %v3819_v28  ;;  %v3822_v51 = vsel %vm2367_vm2, %v3819_v28, %v3821_v61  ;;  %v7985_v6 = vld [vmem:[%s6647_s19 + $0x6c] sm:$0xff]   ;;  %v4440_v31 = vrot.slane %v8001_v35, 1  ;;  %v8013_v28 = vld [vmem:[%s6647_s19 + $0x7c] sm:$0xff]  }
 0x233   : > { %v4454_v7 = vrot.slane %v7985_v6, 1 }
 0x236   : > { %4065 = vmatpush1.bf16.xpose.msra.mxu0 %v3942_v15  ;;  %v2412_v15 = vsel %vm2367_vm2, %v2409_v55, %v2411_v9 }
 0x237   : > { %4066 = vmatprep.subr.bf16.mxu0 %v8929_v11  ;;  %v2526_v58 = vsel %vm872_vm0, %v2412_v15, 0 }
 0x238   : > { %5980 = vmatpush3.bf16.xpose.msra.mxu1 %v2514_v60  ;;  %v2429_v60 = vrot.slane %v8941_v50, 1  ;;  %v8028_v50 = vld [vmem:[%s8876_s1 + $0x30] sm:$0xff]  }
 0x239   : > { %6281 = vmatprep.subr.msk.bf16.mxu1 %vm872_vm0, %v2422_v52  ;;  %v3954_v52 = vsel %vm872_vm0, %v3820_v24, 0  ;;  %v8021_v24 = vld [vmem:[%s6647_s19 + $0x3c] sm:$0xff]  }
 0x23a   : > { %v2430_v44 = vsel %vm2367_vm2, %v2427_v39, %v2429_v60 }
 0x23e   : > { %4067 = vmatpush1.bf16.xpose.msra.mxu0 %v3945_v2  ;;  %v2413_v2 = vrot.slane %v7635_v40, 1 }
 0x23f   : > { %4068 = vmatprep.subr.bf16.mxu0 %v8929_v11 }
 0x240   : > { %5982 = vmatpush3.bf16.xpose.msra.mxu1 %v2517_v23  ;;  %v2414_v12 = vsel %vm2367_vm2, %v2411_v9, %v2413_v2  ;;  %v2431_v23 = vrot.slane %v7646_v46, 1  ;;  %v2416_v1 = vsel %vm2367_vm2, %v2413_v2, %v2415_v48  ;;  %v3960_v46 = vsel %vm872_vm0, %v3824_v13, 0  ;;  %v8062_v13 = vld [vmem:[%s6647_s19 + $0x4c] sm:$0xff]  }
 0x241   : > { %6282 = vmatprep.subr.msk.bf16.mxu1 %vm872_vm0, %v2424_v34  ;;  %v3957_v34 = vsel %vm872_vm0, %v3822_v51, 0  ;;  %v2529_v8 = vsel %vm872_vm0, %v2414_v12, 0  ;;  %v3963_v48 = vsel %vm872_vm0, %v3826_v19, 0  ;;  %v4458_v9 = vrot.slane %v8013_v28, 1  ;;  %v8046_v51 = vld [vmem:[%s6647_s19 + $0x44] sm:$0xff]  }
 0x242   : > { %v2432_v40 = vsel %vm2367_vm2, %v2429_v60, %v2431_v23  ;;  %v2434_v47 = vsel %vm2367_vm2, %v2431_v23, %v2433_v37  ;;  %v4460_v2 = vrot.slane %v8034_v36, 1  ;;  %v4444_v23 = vrot.slane %v8046_v51, 1 }
 0x243   : > { %v2443_v37 = vrot.slane %v7754_v59, 1 }
 0x246   : > { %4069 = vmatpush1.bf16.xpose.msra.mxu0 %v3948_v62  ;;  %v2532_v62 = vsel %vm872_vm0, %v2416_v1, 0 }
 0x247   : > { %4070 = vmatprep.subr.bf16.mxu0 %v8929_v11 }
 0x248   : > { %5984 = vmatpush3.bf16.xpose.msra.mxu1 %v2520_v54  ;;  %v7988_v54 = vld [vmem:[%s6647_s19 + $0x74] sm:$0xff]  }
 0x249   : > { %6283 = vmatprep.subr.msk.bf16.mxu1 %vm872_vm0, %v2426_v20  ;;  %v2559_v20 = vsel %vm872_vm0, %v2434_v47, 0  ;;  %v4456_v55 = vrot.slane %v7988_v54, 1  ;;  %v4464_v47 = vrot.slane %v8070_v21, 1 }
 0x24b   : > { %v4457_v39 = vsel %vm2367_vm2, %v4454_v7, %v4456_v55  ;;  %v4459_v60 = vsel %vm2367_vm2, %v4456_v55, %v4458_v9 }
 0x24e   : > { %4071 = vmatpush1.bf16.xpose.msra.mxu0 %v3951_v38  ;;  %v4439_v38 = vrot.slane %v7998_v29, 1 }
 0x24f   : > { %4072 = vmatprep.subr.bf16.mxu0 %v8929_v11 }
 0x250   : > { %5986 = vmatpush3.bf16.xpose.msra.mxu1 %v2523_v56  ;;  %v2562_v56 = vsel %vm872_vm0, %v2436_v16, 0  ;;  %v4441_v30 = vsel %vm2367_vm2, %v4439_v38, %v4440_v31  ;;  %v8086_v16 = vld [vmem:[%s6647_s19 + $0x9c] sm:$0xff]   ;;  %v8091_v38 = vld [vmem:[%s6647_s19 + $0xe8] sm:$0xff]  }
 0x251   : > { %6284 = vmatprep.subr.msk.bf16.mxu1 %vm872_vm0, %v2428_v14  ;;  %v2437_v14 = vrot.slane %v7697_v17, 1  ;;  %v4534_v17 = vsel %vm872_vm0, %v4441_v30, 0  ;;  %v8100_v30 = vld [vmem:[%s6647_s19 + $0x5c] sm:$0xff]  }
 0x253   : > { %v2438_v15 = vsel %vm2367_vm2, %v2435_v22, %v2437_v14 }
 0x254   : > { %v2565_v61 = vsel %vm872_vm0, %v2438_v15, 0 }
 0x256   : > { %4073 = vmatpush1.bf16.xpose.msra.mxu0 %v3954_v52  ;;  %v4442_v52 = vrot.slane %v8021_v24, 1 }
 0x257   : > { %4074 = vmatprep.subr.bf16.mxu0 %v8929_v11 }
 0x258   : > { %5988 = vmatpush3.bf16.xpose.msra.mxu1 %v2526_v58  ;;  %v2439_v58 = vrot.slane %v7717_v4, 1  ;;  %v4461_v4 = vsel %vm2367_vm2, %v4458_v9, %v4460_v2  ;;  %v4445_v53 = vsel %vm2367_vm2, %v4442_v52, %v4444_v23  ;;  %v8899_v9 = vrot.slane %v8091_v38, 1 }
 0x259   : > { %6285 = vmatprep.subr.msk.bf16.mxu1 %vm872_vm0, %v2430_v44  ;;  %v4443_v44 = vsel %vm2367_vm2, %v4440_v31, %v4442_v52  ;;  %v4540_v1 = vsel %vm872_vm0, %v4445_v53, 0  ;;  %v8094_v31 = vld [vmem:[%s6647_s19 + $0xf0] sm:$0xff]  }
 0x25a   : > { %v4537_v12 = vsel %vm872_vm0, %v4443_v44, 0  ;;  %v3785_v15 = vrot.slane %v8094_v31, 1 }
 0x25e   : > { %4075 = vmatpush1.bf16.xpose.msra.mxu0 %v3957_v34  ;;  %v8054_v34 = vld [vmem:[%s6647_s19 + $0x8c] sm:$0xff]  }
 0x25f   : > { %4076 = vmatprep.subr.bf16.mxu0 %v8929_v11 }
 0x260   : > { %5990 = vmatpush3.bf16.xpose.msra.mxu1 %v2529_v8  ;;  %v2441_v8 = vrot.slane %v7738_v5, 1  ;;  %v4446_v5 = vrot.slane %v8062_v13, 1 }
 0x261   : > { %6286 = vmatprep.subr.msk.bf16.mxu1 %vm872_vm0, %v2432_v40  ;;  %v4462_v40 = vrot.slane %v8054_v34, 1 }
 0x262   : > { %v2442_v41 = vsel %vm2367_vm2, %v2439_v58, %v2441_v8  ;;  %v4447_v19 = vsel %vm2367_vm2, %v4444_v23, %v4446_v5  ;;  %v8126_v23 = vld [vmem:[%s6647_s19 + $0x64] sm:$0xff]  }
 0x263   : > { %v4543_v22 = vsel %vm872_vm0, %v4447_v19, 0  ;;  %v4465_v55 = vsel %vm2367_vm2, %v4462_v40, %v4464_v47  ;;  %8943 = vst [vmem:[#allocation5_spill] sm:$0xff] %v8126_v23  ;;  %v8150_v19 = vld [vmem:[%s6647_s19 + $0xc0] sm:$0xff]  }
 0x266   : > { %4077 = vmatpush1.bf16.xpose.msra.mxu0 %v3960_v46  ;;  %v4463_v46 = vsel %vm2367_vm2, %v4460_v2, %v4462_v40  ;;  %v2447_v2 = vrot.slane %v7782_v32, 1 }
 0x267   : > { %4078 = vmatprep.subr.bf16.mxu0 %v8929_v11 }
 0x268   : > { %5992 = vmatpush3.bf16.xpose.msra.mxu1 %v2532_v62  ;;  %v2571_v62 = vsel %vm872_vm0, %v2442_v41, 0  ;;  %v4452_v41 = vrot.slane %v8126_v23, 1  ;;  %v8954_v23 = vld [vmem:[#allocation2_spill] sm:$0xff] }
 0x269   : > { %2686 = vmatprep.subr.bf16.mxu1 %v8929_v11 }
 0x26e   : > { %4079 = vmatpush1.bf16.xpose.msra.mxu0 %v3963_v48  ;;  %v8078_v48 = vld [vmem:[%s6647_s19 + $0x54] sm:$0xff]  }
 0x26f   : > { %5994 = vmatmul.mubr.msk.bf16.vlgmr.msra.gmra.mrb[0].mxu1 %vm872_vm0, %v7907_v25  ;;  %4080 = vmatprep.subr.bf16.mxu0 %v8929_v11  ;;  %v4448_v59 = vrot.slane %v8078_v48, 1 }
 0x270   : > { %2687 = vmatpush1.bf16.xpose.msra.mxu1 %v2559_v20  ;;  %2718 = vmatprep.mubr.bf16.mxu1 %v8929_v11  ;;  %v2444_v20 = vsel %vm2367_vm2, %v2441_v8, %v2443_v37 }
 0x271   : > { %2688 = vmatprep.subr.bf16.mxu1 %v8929_v11 }
 0x276   : > { %4081 = vmatpush1.bf16.xpose.msra.mxu0 %v3966_v45  ;;  %v2574_v45 = vsel %vm872_vm0, %v2444_v20, 0 }
 0x277   : > { %6319 = vmatprep.subr.msk.bf16.mxu0 %vm872_vm0, %v4457_v39  ;;  %v2445_v39 = vrot.slane %v7768_v26, 1 }
 0x278   : > { %2689 = vmatpush1.bf16.xpose.msra.mxu1 %v2562_v56  ;;  %v4449_v56 = vsel %vm2367_vm2, %v4446_v5, %v4448_v59  ;;  %v2449_v5 = vrot.slane %v7796_v63, 1 }
 0x279   : > { %2690 = vmatprep.subr.bf16.mxu1 %v8929_v11  ;;  %v2446_v26 = vsel %vm2367_vm2, %v2443_v37, %v2445_v39  ;;  %v2448_v32 = vsel %vm2367_vm2, %v2445_v39, %v2447_v2  ;;  %v8147_v37 = vld [vmem:[%s6647_s19 + $0xb8] sm:$0xff]  }
 0x27a   : > { %v2577_v44 = vsel %vm872_vm0, %v2446_v26, 0  ;;  %v8897_v63 = vrot.slane %v8147_v37, 1  ;;  %v2451_v26 = vrot.slane %v7810_v18, 1 }
 0x27d   : > { %5790 = vmatmul.mubr.msk.bf16.vlgmr.msra.gmra.mrb[4].mxu0 %vm872_vm0, %v7729_v3  ;;  %v2440_v3 = vsel %vm2367_vm2, %v2437_v14, %v2439_v58  ;;  %v4466_v14 = vrot.slane %v8086_v16, 1  ;;  %v8115_v58 = vld [vmem:[%s6647_s19 + $0xa4] sm:$0xff]  }
 0x27e   : > { %6068 = vmatpush3.bf16.xpose.msra.mxu0 %v4534_v17  ;;  %6083 = vmatprep.mubr.msk.bf16.mxu0 %vm872_vm0, %v8028_v50  ;;  %v2568_v10 = vsel %vm872_vm0, %v2440_v3, 0  ;;  %v8109_v17 = vsel %vm2367_vm2, %v8899_v9, %v3785_v15  ;;  %v8120_v3 = vld [vmem:[%s6647_s19 + $0xf8] sm:$0xff]  }
 0x27f   : > { %6320 = vmatprep.subr.msk.bf16.mxu0 %vm872_vm0, %v4459_v60  ;;  %v4546_v60 = vsel %vm872_vm0, %v4449_v56, 0  ;;  %v4467_v52 = vsel %vm2367_vm2, %v4464_v47, %v4466_v14 }
 0x280   : > { %2691 = vmatpush1.bf16.xpose.msra.mxu1 %v2565_v61  ;;  %v4450_v61 = vrot.slane %v8100_v30, 1 }
 0x281   : > { %2692 = vmatprep.subr.bf16.mxu1 %v8929_v11 }
 0x282   : > { %v4453_v47 = vsel %vm2367_vm2, %v4450_v61, %v4452_v41 }
 0x283   : > { %v4552_v39 = vsel %vm872_vm0, %v4453_v47, 0  ;;  %v8205_v47 = vld [vmem:[%s6647_s19 + $0x110] sm:$0xff]  }
 0x286   : > { %6070 = vmatpush3.bf16.xpose.msra.mxu0 %v4537_v12  ;;  %v4451_v12 = vsel %vm2367_vm2, %v4448_v59, %v4450_v61  ;;  %v2450_v59 = vsel %vm2367_vm2, %v2447_v2, %v2449_v5  ;;  %v4455_v61 = vsel %vm2367_vm2, %v4452_v41, %v4454_v7  ;;  %v8187_v2 = vld [vmem:[%s6647_s19 + $0x134] sm:$0xff]  }
 0x287   : > { %6321 = vmatprep.subr.msk.bf16.mxu0 %vm872_vm0, %v4461_v4  ;;  %v4468_v4 = vrot.slane %v8115_v58, 1  ;;  %v4549_v53 = vsel %vm872_vm0, %v4451_v12, 0  ;;  %8946 = vst [vmem:[#allocation8_spill] sm:$0xff] %v8187_v2 }
 0x288   : > { %2693 = vmatpush1.bf16.xpose.msra.mxu1 %v2568_v10  ;;  %v3787_v10 = vrot.slane %v8120_v3, 1 }
 0x289   : > { %2694 = vmatprep.subr.bf16.mxu1 %v8929_v11  ;;  %v4469_v40 = vsel %vm2367_vm2, %v4466_v14, %v4468_v4 }
 0x28a   : > { %v8132_v8 = vsel %vm2367_vm2, %v3785_v15, %v3787_v10  ;;  %v2583_v15 = vsel %vm872_vm0, %v2450_v59, 0  ;;  %v3793_v59 = vrot.slane %v8205_v47, 1 }
 0x28e   : > { %6072 = vmatpush3.bf16.xpose.msra.mxu0 %v4540_v1  ;;  %v8138_v1 = vld [vmem:[%s6647_s19 + $0xac] sm:$0xff]  }
 0x28f   : > { %6322 = vmatprep.subr.msk.bf16.mxu0 %vm872_vm0, %v4463_v46  ;;  %8944 = vst [vmem:[#allocation6_spill] sm:$0xff] %v8138_v1  ;;  %v2580_v46 = vsel %vm872_vm0, %v2448_v32, 0  ;;  %v8895_v20 = vrot.slane %v8138_v1, 1  ;;  %v4555_v32 = vsel %vm872_vm0, %v4455_v61, 0  ;;  %v8292_v1 = vld [vmem:[%s6647_s19 + $0xb0] sm:$0xff]  }
 0x290   : > { %2695 = vmatpush1.bf16.xpose.msra.mxu1 %v2571_v62  ;;  %v8143_v62 = vld [vmem:[%s6647_s19 + $0x100] sm:$0xff]   ;;  %v3207_v57 = vshll.u32 %v8292_v1, 16 }
 0x291   : > { %2696 = vmatprep.subr.bf16.mxu1 %v8929_v11  ;;  %v4471_v14 = vsel %vm2367_vm2, %v4468_v4, %v8895_v20  ;;  %v2452_v4 = vsel %vm2367_vm2, %v2449_v5, %v2451_v26  ;;  %v8209_v5 = vld [vmem:[%s6647_s19 + $0xd0] sm:$0xff]  }
 0x292   : > { %v2586_v41 = vsel %vm872_vm0, %v2452_v4, 0 }
 0x296   : > { %6074 = vmatpush3.bf16.xpose.msra.mxu0 %v4543_v22  ;;  %v3789_v22 = vrot.slane %v8143_v62, 1 }
 0x297   : > { %6323 = vmatprep.subr.msk.bf16.mxu0 %vm872_vm0, %v4465_v55  ;;  %v3773_v55 = vrot.slane %v8150_v19, 1 }
 0x298   : > { %2697 = vmatpush1.bf16.xpose.msra.mxu1 %v2574_v45  ;;  %v8160_v45 = vsel %vm2367_vm2, %v3787_v10, %v3789_v22 }
 0x299   : > { %2698 = vmatprep.subr.bf16.mxu1 %v8929_v11  ;;  %v8166_v56 = vsel %vm2367_vm2, %v8897_v63, %v3773_v55 }
 0x29e   : > { %6076 = vmatpush3.bf16.xpose.msra.mxu0 %v4546_v60  ;;  %v8174_v60 = vld [vmem:[%s6647_s19 + $0x108] sm:$0xff]  }
 0x29f   : > { %6324 = vmatprep.subr.msk.bf16.mxu0 %vm872_vm0, %v4467_v52  ;;  %v8178_v52 = vld [vmem:[%s6647_s19 + $0xc8] sm:$0xff]   ;;  %v3791_v12 = vrot.slane %v8174_v60, 1 }
 0x2a0   : > { %2699 = vmatpush1.bf16.xpose.msra.mxu1 %v2577_v44  ;;  %v8184_v44 = vld [vmem:[%s6647_s19 + $0x12c] sm:$0xff]   ;;  %v3775_v18 = vrot.slane %v8178_v52, 1 }
 0x2a1   : > { %2700 = vmatprep.subr.bf16.mxu1 %v8929_v11  ;;  %8945 = vst [vmem:[#allocation7_spill] sm:$0xff] %v8184_v44  ;;  %v8194_v10 = vsel %vm2367_vm2, %v3789_v22, %v3791_v12 }
 0x2a2   : > { %v8198_v7 = vsel %vm2367_vm2, %v3773_v55, %v3775_v18  ;;  %v8215_v55 = vld [vmem:[%s6647_s19 + $0x13c] sm:$0xff]  }
 0x2a3   : > { %8947 = vst [vmem:[#allocation9_spill] sm:$0xff] %v8215_v55  ;;  %v4506_v4 = vrot.slane %v8215_v55, 1  ;;  %v8261_v55 = vld [vmem:[%s6647_s19 + $0x120] sm:$0xff]  }
 0x2a6   : > { %6078 = vmatpush3.bf16.xpose.msra.mxu0 %v4549_v53  ;;  %v8894_v53 = vrot.slane %v8184_v44, 1  ;;  %v3271_v44 = vshll.u32 %v8094_v31, 16 }
 0x2a7   : > { %6325 = vmatprep.subr.msk.bf16.mxu0 %vm872_vm0, %v4469_v40  ;;  %v4504_v40 = vrot.slane %v8187_v2, 1 }
 0x2a8   : > { %2701 = vmatpush1.bf16.xpose.msra.mxu1 %v2580_v46  ;;  %v2453_v46 = vrot.slane %v7825_v27, 1  ;;  %v3777_v27 = vrot.slane %v8209_v5, 1 }
 0x2a9   : > { %2702 = vmatprep.subr.bf16.mxu1 %v8929_v11  ;;  %v4505_v22 = vsel %vm2367_vm2, %v8894_v53, %v4504_v40 }
 0x2aa   : > { %v8226_v61 = vsel %vm2367_vm2, %v3775_v18, %v3777_v27  ;;  %v4507_v18 = vsel %vm2367_vm2, %v4504_v40, %v4506_v4 }
 0x2ae   : > { %6080 = vmatpush3.bf16.xpose.msra.mxu0 %v4552_v39  ;;  %v2454_v39 = vsel %vm2367_vm2, %v2451_v26, %v2453_v46  ;;  %v8234_v26 = vld [vmem:[%s6647_s19 + $0x118] sm:$0xff]  }
 0x2af   : > { %6326 = vmatprep.subr.msk.bf16.mxu0 %vm872_vm0, %v4471_v14  ;;  %v8222_v14 = vsel %vm2367_vm2, %v3791_v12, %v3793_v59  ;;  %v2352_v12 = vld [vmem:[%s6647_s19 + $0x170] sm:$0x3] }
 0x2b0   : > { %2703 = vmatpush1.bf16.xpose.msra.mxu1 %v2583_v15  ;;  %v4630_v15 = vsel %vm872_vm0, %v4505_v22, 0  ;;  %v8240_v22 = vld [vmem:[%s6647_s19 + $0xd8] sm:$0xff]   ;;  %v5727_v20 = vcombine.low %v7852_v49, %v2352_v12  ;;  %v3263_v12 = vshll.u32 %v8091_v38, 16 }
 0x2b1   : > { %2704 = vmatprep.subr.bf16.mxu1 %v8929_v11 }
 0x2b2   : > { %v2457_v9 = vrot.slane %v5727_v20, 1  ;;  %v8287_v2 = vrot.slane %v3263_v12, 1  ;;  %v8953_v12 = vrot.slane %v8091_v38, 1 }
 0x2b6   : > { %6082 = vmatpush3.bf16.xpose.msra.mxu0 %v4555_v32  ;;  %v2589_v32 = vsel %vm872_vm0, %v2454_v39, 0  ;;  %v8244_v39 = vld [vmem:[%s6647_s19 + $0x144] sm:$0xff]  }
 0x2b7   : > { %4757 = vmatprep.subr.bf16.mxu0 %v8929_v11  ;;  %8948 = vst [vmem:[#allocation10_spill] sm:$0xff] %v8244_v39  ;;  %v4508_v63 = vrot.slane %v8244_v39, 1 }
 0x2b8   : > { %2705 = vmatpush1.bf16.xpose.msra.mxu1 %v2586_v41  ;;  %v2455_v41 = vrot.slane %v7840_v33, 1  ;;  %v3779_v33 = vrot.slane %v8240_v22, 1 }
 0x2b9   : > { %2706 = vmatprep.subr.bf16.mxu1 %v8929_v11  ;;  %v4509_v49 = vsel %vm2367_vm2, %v4506_v4, %v4508_v63 }
 0x2ba   : > { %v2456_v53 = vsel %vm2367_vm2, %v2453_v46, %v2455_v41  ;;  %v8256_v40 = vsel %vm2367_vm2, %v3777_v27, %v3779_v33  ;;  %v8265_v46 = vld [vmem:[%s6647_s19 + $0xe0] sm:$0xff]   ;;  %v8910_v27 = vrot.slane %v8261_v55, 1  ;;  %v2458_v20 = vsel %vm2367_vm2, %v2455_v41, %v2457_v9 }
 0x2bb   : > { %v2592_v42 = vsel %vm872_vm0, %v2456_v53, 0  ;;  %v3781_v53 = vrot.slane %v8265_v46, 1  ;;  %v4636_v4 = vsel %vm872_vm0, %v4509_v49, 0  ;;  %v2595_v39 = vsel %vm872_vm0, %v2458_v20, 0  ;;  %v6590_v49 = vld [vmem:[%s6647_s19 + $0xa8] sm:$0xff]  }
 0x2bc   : > { %v3267_v41 = vshrl.u32 %v8091_v38, 16  ;;  %v3203_v20 = vshrl.u32 %v6590_v49, 16  ;;  %v3209_v49 = vrot.slane %v3207_v57, 1 }
 0x2bd   : > { %6084 = vmatmul.mubr.msk.bf16.vlgmr.msra.gmra.mrb[0].mxu0 %vm872_vm0, %v8028_v50 }
 0x2be   : > { %4758 = vmatpush1.bf16.xpose.msra.mxu0 %v4630_v15  ;;  %4789 = vmatprep.mubr.bf16.mxu0 %v8929_v11  ;;  %v3795_v15 = vrot.slane %v8234_v26, 1 }
 0x2bf   : > { %4759 = vmatprep.subr.bf16.mxu0 %v8929_v11 }
 0x2c0   : > { %2707 = vmatpush1.bf16.xpose.msra.mxu1 %v2589_v32  ;;  %v8252_v0 = vsel %vm2367_vm2, %v3793_v59, %v3795_v15  ;;  %v4633_v32 = vsel %vm872_vm0, %v4507_v18, 0  ;;  %v8269_v59 = vld [vmem:[%s6647_s19 + $0x14c] sm:$0xff]   ;;  %v8283_v18 = vsel %vm2367_vm2, %v3779_v33, %v3781_v53  ;;  %v8297_v33 = vld [vmem:[%s6647_s19 + $0x154] sm:$0xff]  }
 0x2c1   : > { %2708 = vmatprep.subr.bf16.mxu1 %v8929_v11  ;;  %8949 = vst [vmem:[#allocation11_spill] sm:$0xff] %v8269_v59  ;;  %8951 = vst [vmem:[#allocation13_spill] sm:$0xff] %v8283_v18  ;;  %v2598_v18 = vsel %vm872_vm0, %v2457_v9, 0  ;;  %v3211_v9 = vshrl.u32 %v8292_v1, 16 }
 0x2c2   : > { %8952 = vst [vmem:[#allocation14_spill] sm:$0xff] %v8297_v33 }
 0x2c6   : > { %4760 = vmatpush1.bf16.xpose.msra.mxu0 %v4633_v32  ;;  %v4510_v32 = vrot.slane %v8269_v59, 1  ;;  %v3273_v59 = vrot.slane %v3271_v44, 1 }
 0x2c7   : > { %4761 = vmatprep.subr.bf16.mxu0 %v8929_v11 }
 0x2c8   : > { %2709 = vmatpush1.bf16.xpose.msra.mxu1 %v2592_v42  ;;  %v8279_v42 = vsel %vm2367_vm2, %v3795_v15, %v8910_v27  ;;  %v4511_v15 = vsel %vm2367_vm2, %v4508_v63, %v4510_v32  ;;  %v3269_v27 = vor.u32 %v3267_v41, %v8287_v2  ;;  %v4512_v63 = vrot.slane %v8297_v33, 1  ;;  %v8318_v41 = vld [vmem:[%s6647_s19 + $0x15c] sm:$0xff]  }
 0x2c9   : > { %2710 = vmatprep.subr.bf16.mxu1 %v8929_v11  ;;  %8950 = vst [vmem:[#allocation12_spill] sm:$0xff] %v8279_v42  ;;  %v3205_v42 = vor.u32 %v3203_v20, %v8954_v23  ;;  %v4514_v20 = vrot.slane %v8318_v41, 1  ;;  %v3283_v33 = vshrl.u32 %v8120_v3, 16 }
 0x2ca   : > { %v3274_v38 = vsel %vm504_vm1, %v3269_v27, %v3273_v59  ;;  %v4513_v44 = vsel %vm2367_vm2, %v4510_v32, %v4512_v63  ;;  %v3213_v32 = vor.u32 %v3211_v9, %v3209_v49 }
 0x2cb   : > { %v3210_v23 = vsel %vm504_vm1, %v3205_v42, %v3209_v49  ;;  %v4642_v27 = vsel %vm872_vm0, %v4513_v44, 0  ;;  %v3287_v42 = vshll.u32 %v8143_v62, 16  ;;  %v8340_v49 = vld [vmem:[%s8876_s1 + $0x20] sm:$0xff]  }
 0x2cd   : > { %v3289_v44 = vrot.slane %v3287_v42, 1  ;;  %v3227_v42 = vshrl.u32 %v8150_v19, 16 }
 0x2ce   : > { %4762 = vmatpush1.bf16.xpose.msra.mxu0 %v4636_v4  ;;  %v8304_v4 = vsel %vm2367_vm2, %v3781_v53, %v8953_v12  ;;  %v3275_v53 = vshrl.u32 %v8094_v31, 16  ;;  %v3279_v12 = vshll.u32 %v8120_v3, 16  ;;  %v3215_v31 = vshll.u32 %v8147_v37, 16 }
 0x2cf   : > { %4763 = vmatprep.subr.bf16.mxu0 %v8929_v11  ;;  %v3219_v3 = vshrl.u32 %v8147_v37, 16 }
 0x2d0   : > { %2711 = vmatpush1.bf16.xpose.msra.mxu1 %v2595_v39  ;;  %v4639_v39 = vsel %vm872_vm0, %v4511_v15, 0  ;;  %v3277_v15 = vor.u32 %v3275_v53, %v3273_v59  ;;  %v3281_v57 = vrot.slane %v3279_v12, 1  ;;  %v4515_v59 = vsel %vm2367_vm2, %v4512_v63, %v4514_v20  ;;  %v8335_v53 = vld [vmem:[%s6647_s19 + $0x164] sm:$0xff]  }
 0x2d1   : > { %2712 = vmatprep.subr.bf16.mxu1 %v8929_v11  ;;  %v3223_v63 = vshll.u32 %v8150_v19, 16  ;;  %v4645_v9 = vsel %vm872_vm0, %v4515_v59, 0  ;;  %v3299_v19 = vshrl.u32 %v8174_v60, 16 }
 0x2d2   : > { %v3285_v12 = vor.u32 %v3283_v33, %v3281_v57 }
 0x2d6   : > { %4764 = vmatpush1.bf16.xpose.msra.mxu0 %v4639_v39  ;;  %v3282_v39 = vsel %vm504_vm1, %v3277_v15, %v3281_v57  ;;  %v8357_v57 = vld [vmem:[%s6647_s19 + $0x16c] sm:$0xff]  }
 0x2d7   : > { %4765 = vmatprep.subr.bf16.mxu0 %v8929_v11 }
 0x2d8   : > { %2713 = vmatpush1.bf16.xpose.msra.mxu1 %v2598_v18  ;;  %v3490_v18 = vsel %vm872_vm0, %v3210_v23, 0  ;;  %v4516_v23 = vrot.slane %v8335_v53, 1 }
 0x2d9   : > { %6295 = vmatprep.subr.msk.bf16.mxu1 %vm872_vm0, %v3274_v38  ;;  %v3217_v38 = vrot.slane %v3215_v31, 1 }
 0x2da   : > { %v4517_v33 = vsel %vm2367_vm2, %v4514_v20, %v4516_v23 }
 0x2db   : > { %v3221_v31 = vor.u32 %v3219_v3, %v3217_v38 }
 0x2de   : > { %4766 = vmatpush1.bf16.xpose.msra.mxu0 %v4642_v27  ;;  %v3290_v27 = vsel %vm504_vm1, %v3285_v12, %v3289_v44  ;;  %v4518_v12 = vrot.slane %v8357_v57, 1 }
 0x2df   : > { %5730 = vmatmul.mubr.msk.bf16.vlgmr.msra.gmra.mrb[4].mxu1 %vm872_vm0, %v7907_v25  ;;  %4767 = vmatprep.subr.bf16.mxu0 %v8929_v11  ;;  %v3218_v25 = vsel %vm504_vm1, %v3213_v32, %v3217_v38  ;;  %v3295_v32 = vshll.u32 %v8174_v60, 16  ;;  %v3239_v60 = vshll.u32 %v8209_v5, 16 }
 0x2e0   : > { %6014 = vmatpush3.bf16.xpose.msra.mxu1 %v3490_v18  ;;  %6029 = vmatprep.mubr.msk.bf16.mxu1 %vm872_vm0, %v8340_v49  ;;  %v3493_v15 = vsel %vm872_vm0, %v3218_v25, 0  ;;  %v3225_v18 = vrot.slane %v3223_v63, 1  ;;  %v4648_v25 = vsel %vm872_vm0, %v4517_v33, 0 }
 0x2e1   : > { %6296 = vmatprep.subr.msk.bf16.mxu1 %vm872_vm0, %v3282_v39  ;;  %v3291_v39 = vshrl.u32 %v8143_v62, 16  ;;  %v3297_v3 = vrot.slane %v3295_v32, 1  ;;  %v3231_v62 = vshll.u32 %v8178_v52, 16 }
 0x2e2   : > { %v3226_v38 = vsel %vm504_vm1, %v3221_v31, %v3225_v18  ;;  %v3229_v20 = vor.u32 %v3227_v42, %v3225_v18  ;;  %v3303_v31 = vshll.u32 %v8205_v47, 16 }
 0x2e3   : > { %v3293_v59 = vor.u32 %v3291_v39, %v3289_v44  ;;  %v3496_v63 = vsel %vm872_vm0, %v3226_v38, 0  ;;  %v4519_v44 = vsel %vm2367_vm2, %v4516_v23, %v4518_v12  ;;  %v3235_v39 = vshrl.u32 %v8178_v52, 16 }
 0x2e4   : > { %v3301_v32 = vor.u32 %v3299_v19, %v3297_v3  ;;  %v3305_v33 = vrot.slane %v3303_v31, 1  ;;  %v4651_v42 = vsel %vm872_vm0, %v4519_v44, 0  ;;  %v3307_v52 = vshrl.u32 %v8205_v47, 16 }
 0x2e6   : > { %4768 = vmatpush1.bf16.xpose.msra.mxu0 %v4645_v9  ;;  %v3298_v9 = vsel %vm504_vm1, %v3293_v59, %v3297_v3  ;;  %v3309_v31 = vor.u32 %v3307_v52, %v3305_v33  ;;  %v3251_v52 = vshrl.u32 %v8240_v22, 16 }
 0x2e7   : > { %4769 = vmatprep.subr.bf16.mxu0 %v8929_v11 }
 0x2e8   : > { %6016 = vmatpush3.bf16.xpose.msra.mxu1 %v3493_v15  ;;  %v3233_v15 = vrot.slane %v3231_v62, 1  ;;  %v3306_v62 = vsel %vm504_vm1, %v3301_v32, %v3305_v33 }
 0x2e9   : > { %6297 = vmatprep.subr.msk.bf16.mxu1 %vm872_vm0, %v3290_v27  ;;  %v8372_v27 = vld [vmem:[%s6647_s19 + $0x174] sm:$0xff]  }
 0x2ea   : > { %v3234_v18 = vsel %vm504_vm1, %v3229_v20, %v3233_v15  ;;  %v4520_v38 = vrot.slane %v8372_v27, 1  ;;  %v3237_v23 = vor.u32 %v3235_v39, %v3233_v15  ;;  %v8387_v20 = vld [vmem:[%s6647_s19 + $0x17c] sm:$0xff]   ;;  %v3247_v15 = vshll.u32 %v8240_v22, 16 }
 0x2eb   : > { %v3499_v59 = vsel %vm872_vm0, %v3234_v18, 0  ;;  %v4522_v39 = vrot.slane %v8387_v20, 1 }
 0x2ec   : > { %v4521_v3 = vsel %vm2367_vm2, %v4518_v12, %v4520_v38  ;;  %v3249_v32 = vrot.slane %v3247_v15, 1 }
 0x2ed   : > { %v4654_v44 = vsel %vm872_vm0, %v4521_v3, 0  ;;  %v4523_v33 = vsel %vm2367_vm2, %v4520_v38, %v4522_v39 }
 0x2ee   : > { %4770 = vmatpush1.bf16.xpose.msra.mxu0 %v4648_v25  ;;  %v3241_v25 = vrot.slane %v3239_v60, 1  ;;  %v3253_v15 = vor.u32 %v3251_v52, %v3249_v32 }
 0x2ef   : > { %4771 = vmatprep.subr.bf16.mxu0 %v8929_v11 }
 0x2f0   : > { %6018 = vmatpush3.bf16.xpose.msra.mxu1 %v3496_v63  ;;  %v3311_v63 = vshll.u32 %v8234_v26, 16  ;;  %v3242_v19 = vsel %vm504_vm1, %v3237_v23, %v3241_v25 }
 0x2f1   : > { %6298 = vmatprep.subr.msk.bf16.mxu1 %vm872_vm0, %v3298_v9  ;;  %v3243_v9 = vshrl.u32 %v8209_v5, 16  ;;  %v3502_v18 = vsel %vm872_vm0, %v3242_v19, 0  ;;  %v3315_v5 = vshrl.u32 %v8234_v26, 16  ;;  %v3255_v26 = vshll.u32 %v8265_v46, 16 }
 0x2f2   : > { %v3313_v47 = vrot.slane %v3311_v63, 1  ;;  %v4657_v63 = vsel %vm872_vm0, %v4523_v33, 0 }
 0x2f3   : > { %v3245_v12 = vor.u32 %v3243_v9, %v3241_v25  ;;  %v3257_v19 = vrot.slane %v3255_v26, 1 }
 0x2f4   : > { %v3314_v60 = vsel %vm504_vm1, %v3309_v31, %v3313_v47  ;;  %v3323_v31 = vshrl.u32 %v8261_v55, 16 }
 0x2f5   : > { %v3250_v23 = vsel %vm504_vm1, %v3245_v12, %v3249_v32  ;;  %v3259_v12 = vshrl.u32 %v8265_v46, 16 }
 0x2f6   : > { %4772 = vmatpush1.bf16.xpose.msra.mxu0 %v4651_v42  ;;  %v3319_v42 = vshll.u32 %v8261_v55, 16  ;;  %v3505_v9 = vsel %vm872_vm0, %v3250_v23, 0  ;;  %v8428_v23 = vld [vmem:[%s6647_s19 + $0x194] sm:$0x3f]  }
 0x2f7   : > { %4773 = vmatprep.subr.bf16.mxu0 %v8929_v11  ;;  %v4528_v52 = vrot.slane %v8428_v23, 1 }
 0x2f8   : > { %6020 = vmatpush3.bf16.xpose.msra.mxu1 %v3499_v59  ;;  %v8402_v59 = vld [vmem:[%s6647_s19 + $0x184] sm:$0xff]   ;;  %v3321_v25 = vrot.slane %v3319_v42, 1  ;;  %v8955_v42 = vld [vmem:[#allocation4_spill] sm:$0xff] }
 0x2f9   : > { %6299 = vmatprep.subr.msk.bf16.mxu1 %vm872_vm0, %v3306_v62  ;;  %v3317_v62 = vor.u32 %v3315_v5, %v3313_v47  ;;  %v4524_v3 = vrot.slane %v8402_v59, 1  ;;  %v8416_v47 = vld [vmem:[%s6647_s19 + $0x18c] sm:$0xff]  }
 0x2fb   : > { %v3322_v38 = vsel %vm504_vm1, %v3317_v62, %v3321_v25  ;;  %v4525_v22 = vsel %vm2367_vm2, %v4522_v39, %v4524_v3  ;;  %v3261_v39 = vor.u32 %v3259_v12, %v3257_v19  ;;  %v4822_v12 = vshrl.u32 %v7998_v29, 16 }
 0x2fc   : > { %v4660_v32 = vsel %vm872_vm0, %v4525_v22, 0 }
 0x2fd   : > { %v3266_v46 = vsel %vm504_vm1, %v3261_v39, %v8287_v2  ;;  %v4905_v2 = vshll.u32 %v7988_v54, 16 }
 0x2fe   : > { %4774 = vmatpush1.bf16.xpose.msra.mxu0 %v4654_v44  ;;  %v3258_v44 = vsel %vm504_vm1, %v3253_v15, %v3257_v19  ;;  %v3511_v26 = vsel %vm872_vm0, %v3266_v46, 0  ;;  %v4902_v15 = vshrl.u32 %v7988_v54, 16  ;;  %v8956_v19 = vrot.slane %v7402_v43, 1  ;;  %v8465_v46 = vld [vmem:[%s8876_s1 + $0x28] sm:$0xff]  }
 0x2ff   : > { %4775 = vmatprep.subr.bf16.mxu0 %v8929_v11  ;;  %v3508_v5 = vsel %vm872_vm0, %v3258_v44, 0  ;;  %v4833_v54 = vshll.u32 %v8001_v35, 16 }
 0x300   : > { %6022 = vmatpush3.bf16.xpose.msra.mxu1 %v3502_v18  ;;  %v3325_v18 = vor.u32 %v3323_v31, %v3321_v25 }
 0x301   : > { %6300 = vmatprep.subr.msk.bf16.mxu1 %vm872_vm0, %v3314_v60  ;;  %v4526_v60 = vrot.slane %v8416_v47, 1 }
 0x302   : > { %v3330_v33 = vsel %vm504_vm1, %v3325_v18, %v8955_v42  ;;  %v4904_v18 = vrot.slane %v4902_v15, 1  ;;  %v4911_v42 = vshrl.u32 %v8013_v28, 16 }
 0x303   : > { %v4527_v62 = vsel %vm2367_vm2, %v4524_v3, %v4526_v60  ;;  %v4893_v3 = vshrl.u32 %v7985_v6, 16 }
 0x304   : > { %v4663_v25 = vsel %vm872_vm0, %v4527_v62, 0 }
 0x305   : > { %v4895_v22 = vrot.slane %v4893_v3, 1  ;;  %v4839_v3 = vshrl.u32 %v8021_v24, 16 }
 0x306   : > { %4776 = vmatpush1.bf16.xpose.msra.mxu0 %v4657_v63  ;;  %v3769_v63 = vrot.slane %v8292_v1, 1 }
 0x307   : > { %4777 = vmatprep.subr.bf16.mxu0 %v8929_v11 }
 0x308   : > { %6024 = vmatpush3.bf16.xpose.msra.mxu1 %v3505_v9  ;;  %v4529_v9 = vsel %vm2367_vm2, %v4526_v60, %v4528_v52  ;;  %v3770_v1 = vsel %vm2367_vm2, %v8956_v19, %v3769_v63  ;;  %v4830_v60 = vshrl.u32 %v8001_v35, 16  ;;  %v4835_v35 = vrot.slane %v4833_v54, 2 }
 0x309   : > { %6301 = vmatprep.subr.msk.bf16.mxu1 %vm872_vm0, %v3322_v38  ;;  %v4896_v38 = vshll.u32 %v7985_v6, 16  ;;  %v4666_v31 = vsel %vm872_vm0, %v4529_v9, 0  ;;  %v4907_v6 = vrot.slane %v4905_v2, 2  ;;  %v4851_v54 = vshll.u32 %v8046_v51, 16 }
 0x30a   : > { %v4832_v62 = vrot.slane %v4830_v60, 1  ;;  %v4848_v60 = vshrl.u32 %v8046_v51, 16 }
 0x30b   : > { %v4898_v44 = vrot.slane %v4896_v38, 2  ;;  %v4842_v38 = vshll.u32 %v8021_v24, 16  ;;  %v4923_v24 = vshll.u32 %v8034_v36, 16 }
 0x30c   : > { %v4836_v19 = vor.u32 %v4835_v35, %v4832_v62  ;;  %v4860_v62 = vshll.u32 %v8062_v13, 16 }
 0x30d   : > { %v8458_v43 = vor.u32 %v4898_v44, %v4895_v22  ;;  %v8489_v22 = vld [vmem:[%s8876_s1 + $0x38] sm:$0xff]  }
 0x30e   : > { %4778 = vmatpush1.bf16.xpose.msra.mxu0 %v4660_v32  ;;  %v4825_v32 = vshll.u32 %v7998_v29, 16  ;;  %v4908_v29 = vor.u32 %v4907_v6, %v4904_v18 }
 0x30f   : > { %4779 = vmatprep.subr.bf16.mxu0 %v8929_v11 }
 0x310   : > { %6026 = vmatpush3.bf16.xpose.msra.mxu1 %v3508_v5  ;;  %v4824_v5 = vrot.slane %v4822_v12, 1  ;;  %v4827_v39 = vrot.slane %v4825_v32, 2  ;;  %v4909_v15 = vsel %vm4820_vm3, %v8458_v43, %v4908_v29  ;;  %v4925_v32 = vrot.slane %v4923_v24, 2  ;;  %v5517_v24 = vld [vmem:[%s8877_s2 + $0x8] sm:$0xff] }
 0x311   : > { %6302 = vmatprep.subr.msk.bf16.mxu1 %vm872_vm0, %v3330_v33  ;;  %v4914_v33 = vshll.u32 %v8013_v28, 16 }
 0x312   : > { %v4828_v2 = vor.u32 %v4827_v39, %v4824_v5  ;;  %v4932_v5 = vshll.u32 %v8054_v34, 16  ;;  %v4857_v39 = vshrl.u32 %v8062_v13, 16 }
 0x313   : > { %v4916_v9 = vrot.slane %v4914_v33, 2  ;;  %v4853_v33 = vrot.slane %v4851_v54, 2 }
 0x316   : > { %4780 = vmatpush1.bf16.xpose.msra.mxu0 %v4663_v25  ;;  %v4669_v25 = vsel %vm872_vm0, %v4528_v52, 0  ;;  %v4837_v52 = vsel %vm4820_vm3, %v4828_v2, %v4836_v19 }
 0x317   : > { %4781 = vmatprep.subr.bf16.mxu0 %v8929_v11  ;;  %v5238_v44 = vsel %vm872_vm0, %v4837_v52, 0 }
 0x318   : > { %6028 = vmatpush3.bf16.xpose.msra.mxu1 %v3511_v26  ;;  %v4913_v26 = vrot.slane %v4911_v42, 1  ;;  %v4850_v42 = vrot.slane %v4848_v60, 1  ;;  %v3894_v60 = vsel %vm872_vm0, %v8256_v40, 0 }
 0x319   : > { %6311 = vmatprep.subr.msk.bf16.mxu1 %vm872_vm0, %v8109_v17  ;;  %v3879_v17 = vsel %vm872_vm0, %v3770_v1, 0  ;;  %v4844_v1 = vrot.slane %v4842_v38, 2 }
 0x31e   : > { %4782 = vmatpush1.bf16.xpose.msra.mxu0 %v4666_v31  ;;  %v4920_v31 = vshrl.u32 %v8034_v36, 16  ;;  %v3885_v36 = vsel %vm872_vm0, %v8166_v56, 0 }
 0x31f   : > { %6030 = vmatmul.mubr.msk.bf16.vlgmr.msra.gmra.mrb[0].mxu1 %vm872_vm0, %v8340_v49  ;;  %4783 = vmatprep.subr.bf16.mxu0 %v8929_v11  ;;  %v8957_v49 = vrot.slane %v8147_v37, 1  ;;  %v4917_v37 = vor.u32 %v4916_v9, %v4913_v26  ;;  %v4938_v9 = vshrl.u32 %v8070_v21, 16 }
 0x320   : > { %6050 = vmatpush3.bf16.xpose.msra.mxu1 %v3879_v17  ;;  %6065 = vmatprep.mubr.msk.bf16.mxu1 %vm872_vm0, %v8465_v46  ;;  %v4922_v6 = vrot.slane %v4920_v31, 1  ;;  %v4929_v17 = vshrl.u32 %v8054_v34, 16  ;;  %v3888_v34 = vsel %vm872_vm0, %v8198_v7, 0 }
 0x321   : > { %6312 = vmatprep.subr.msk.bf16.mxu1 %vm872_vm0, %v8132_v8  ;;  %v3772_v28 = vsel %vm2367_vm2, %v3769_v63, %v8957_v49  ;;  %v4841_v63 = vrot.slane %v4839_v3, 1  ;;  %v4918_v18 = vsel %vm4820_vm3, %v4908_v29, %v4917_v37  ;;  %v4934_v29 = vrot.slane %v4932_v5, 2  ;;  %v8958_v5 = vld [vmem:[#allocation12_spill] sm:$0xff] }
 0x322   : > { %v3882_v8 = vsel %vm872_vm0, %v3772_v28, 0  ;;  %v4926_v51 = vor.u32 %v4925_v32, %v4922_v6  ;;  %v4931_v56 = vrot.slane %v4929_v17, 1  ;;  %v4854_v49 = vor.u32 %v4853_v33, %v4850_v42 }
 0x323   : > { %v4845_v12 = vor.u32 %v4844_v1, %v4841_v63  ;;  %v4941_v3 = vshll.u32 %v8070_v21, 16  ;;  %v4950_v63 = vshll.u32 %v8086_v16, 16  ;;  %v4959_v17 = vshll.u32 %v8115_v58, 16 }
 0x324   : > { %v4927_v35 = vsel %vm4820_vm3, %v4917_v37, %v4926_v51  ;;  %v4935_v28 = vor.u32 %v4934_v29, %v4931_v56  ;;  %v3891_v37 = vsel %vm872_vm0, %v8226_v61, 0  ;;  %v8959_v56 = vld [vmem:[#allocation5_spill] sm:$0xff] }
 0x325   : > { %v4855_v26 = vsel %vm4820_vm3, %v4845_v12, %v4854_v49  ;;  %v4943_v2 = vrot.slane %v4941_v3, 2  ;;  %v4884_v29 = vshrl.u32 %v8959_v56, 16 }
 0x326   : > { %4784 = vmatpush1.bf16.xpose.msra.mxu0 %v4669_v25  ;;  %v4859_v25 = vrot.slane %v4857_v39, 1  ;;  %v5244_v13 = vsel %vm872_vm0, %v4855_v26, 0  ;;  %v4936_v7 = vsel %vm4820_vm3, %v4926_v51, %v4935_v28  ;;  %v4887_v39 = vshll.u32 %v8959_v56, 16  ;;  %v8964_v26 = vld [vmem:[#allocation6_spill] sm:$0xff] }
 0x327   : > { %6335 = vmatprep.subr.msk.bf16.mxu0 %vm872_vm0, %v4909_v15  ;;  %v4940_v15 = vrot.slane %v4938_v9, 1  ;;  %v4965_v9 = vshrl.u32 %v8964_v26, 16  ;;  %v4968_v3 = vshll.u32 %v8964_v26, 16 }
 0x328   : > { %6052 = vmatpush3.bf16.xpose.msra.mxu1 %v3882_v8  ;;  %v4869_v8 = vshll.u32 %v8078_v48, 16 }
 0x329   : > { %6313 = vmatprep.subr.msk.bf16.mxu1 %vm872_vm0, %v8160_v45  ;;  %v4846_v45 = vsel %vm4820_vm3, %v4836_v19, %v4845_v12  ;;  %v4866_v19 = vshrl.u32 %v8078_v48, 16  ;;  %v4944_v1 = vor.u32 %v4943_v2, %v4940_v15  ;;  %v5516_v48 = vld [vmem:[%s8877_s2] sm:$0xff]  ;;  %v4878_v12 = vshll.u32 %v8100_v30, 16 }
 0x32a   : > { %v4871_v31 = vrot.slane %v4869_v8, 2  ;;  %5520 = vperm.xlu0 %6362, %v5516_v48   ;;  %v4889_v15 = vrot.slane %v4887_v39, 2  ;;  %v8585_v48 = vld [vmem:[%s6647_s19 + $0xfc] sm:$0xff]   ;;  %v8628_v39 = vld [vmem:[%s6647_s19 + $0xc4] sm:$0xff]  }
 0x32b   : > { %v4868_v52 = vrot.slane %v4866_v19, 1  ;;  %v4945_v6 = vsel %vm4820_vm3, %v4935_v28, %v4944_v1  ;;  %v8574_v19 = vld [vmem:[%s6647_s19 + $0xb4] sm:$0xff]  }
 0x32d   : > { %5842 = vmatmul.mubr.msk.bf16.vlgmr.msra.gmra.mrb[4].mxu0 %vm872_vm0, %v8028_v50  ;;  %v5241_v50 = vsel %vm872_vm0, %v4846_v45, 0  ;;  %v4872_v32 = vor.u32 %v4871_v31, %v4868_v52  ;;  %v4472_v31 = vrot.slane %v8574_v19, 1 }
 0x32e   : > { %6104 = vmatpush3.bf16.xpose.msra.mxu0 %v5238_v44  ;;  %6119 = vmatprep.mubr.msk.bf16.mxu0 %vm872_vm0, %v8489_v22 }
 0x32f   : > { %6336 = vmatprep.subr.msk.bf16.mxu0 %vm872_vm0, %v4918_v18  ;;  %v4875_v18 = vshrl.u32 %v8100_v30, 16  ;;  %5525 = vperm.xlu0 %6362, %v5517_v24   ;;  %v4956_v30 = vshrl.u32 %v8115_v58, 16  ;;  %v8961_v58 = vld [vmem:[#allocation3_spill] sm:$0xff] }
 0x330   : > { %6054 = vmatpush3.bf16.xpose.msra.mxu1 %v3885_v36  ;;  %v4880_v36 = vrot.slane %v4878_v12, 2 }
 0x331   : > { %6314 = vmatprep.subr.msk.bf16.mxu1 %vm872_vm0, %v8194_v10  ;;  %v4862_v10 = vrot.slane %v4860_v62, 2  ;;  %v4877_v54 = vrot.slane %v4875_v18, 1  ;;  %v4958_v33 = vrot.slane %v4956_v30, 1  ;;  %v8960_v62 = vld [vmem:[#allocation13_spill] sm:$0xff] }
 0x332   : > { %v8597_v18 = vld [vmem:[%s6647_s19 + $0xbc] sm:$0xff]  }
 0x333   : > { %v4863_v38 = vor.u32 %v4862_v10, %v4859_v25  ;;  %v4881_v42 = vor.u32 %v4880_v36, %v4877_v54  ;;  %v8561_v25 = vld [vmem:[%s6647_s19 + $0xec] sm:$0xff]   ;;  %v8564_v10 = vld [vmem:[%s6647_s19 + $0xf4] sm:$0xff]  }
 0x334   : > { %v4488_v2 = vrot.slane %v8564_v10, 1  ;;  %v8967_v54 = vld [vmem:[#allocation8_spill] sm:$0xff] }
 0x335   : > { %v4864_v21 = vsel %vm4820_vm3, %v4854_v49, %v4863_v38  ;;  %v4873_v45 = vsel %vm4820_vm3, %v4863_v38, %v4872_v32  ;;  %v8962_v49 = vrot.slane %v8961_v58, 1  ;;  %v4886_v38 = vrot.slane %v4884_v29, 1  ;;  %v8620_v29 = vld [vmem:[%s8876_s1 + $0x30] sm:$0xff]  }
 0x336   : > { %6106 = vmatpush3.bf16.xpose.msra.mxu0 %v5241_v50  ;;  %v5247_v61 = vsel %vm872_vm0, %v4864_v21, 0  ;;  %v5250_v40 = vsel %vm872_vm0, %v4873_v45, 0  ;;  %v4961_v50 = vrot.slane %v4959_v17, 2  ;;  %v4970_v21 = vrot.slane %v4968_v3, 2 }
 0x337   : > { %6337 = vmatprep.subr.msk.bf16.mxu0 %vm872_vm0, %v4927_v35  ;;  %v3897_v35 = vsel %vm872_vm0, %v8960_v62, 0  ;;  %v5118_v36 = vshrl.u32 %v8967_v54, 16  ;;  %v5121_v45 = vshll.u32 %v8967_v54, 16  ;;  %v4476_v3 = vrot.slane %v8628_v39, 1  ;;  %v8668_v54 = vld [vmem:[%s6647_s19 + $0xd4] sm:$0xff]  }
 0x338   : > { %6056 = vmatpush3.bf16.xpose.msra.mxu1 %v3888_v34  ;;  %v8963_v34 = vrot.slane %v8261_v55, 1  ;;  %v4486_v55 = vrot.slane %v8561_v25, 1 }
 0x339   : > { %6315 = vmatprep.subr.msk.bf16.mxu1 %vm872_vm0, %v8222_v14  ;;  %v4947_v14 = vshrl.u32 %v8086_v16, 16  ;;  %v4952_v16 = vrot.slane %v4950_v63, 2  ;;  %v4890_v63 = vor.u32 %v4889_v15, %v4886_v38  ;;  %v5123_v56 = vrot.slane %v5121_v45, 2 }
 0x33a   : > { %v3800_v28 = vsel %vm2367_vm2, %v8963_v34, %v8962_v49  ;;  %v4489_v52 = vsel %vm2367_vm2, %v4486_v55, %v4488_v2  ;;  %v8968_v49 = vld [vmem:[#allocation9_spill] sm:$0xff] }
 0x33b   : > { %v4949_v44 = vrot.slane %v4947_v14, 1  ;;  %v4891_v24 = vsel %vm4820_vm3, %v4881_v42, %v4890_v63  ;;  %v5127_v34 = vshrl.u32 %v8968_v49, 16 }
 0x33c   : > { %v5256_v12 = vsel %vm872_vm0, %v4891_v24, 0 }
 0x33d   : > { %v5129_v38 = vrot.slane %v5127_v34, 1 }
 0x33e   : > { %6108 = vmatpush3.bf16.xpose.msra.mxu0 %v5244_v13  ;;  %v4882_v13 = vsel %vm4820_vm3, %v4872_v32, %v4881_v42  ;;  %v8966_v32 = vld [vmem:[#allocation7_spill] sm:$0xff] }
 0x33f   : > { %6338 = vmatprep.subr.msk.bf16.mxu0 %vm872_vm0, %v4936_v7  ;;  %v4962_v7 = vor.u32 %v4961_v50, %v4958_v33  ;;  %v5253_v8 = vsel %vm872_vm0, %v4882_v13, 0  ;;  %v5120_v50 = vrot.slane %v5118_v36, 1  ;;  %v8639_v13 = vld [vmem:[%s6647_s19 + $0x10c] sm:$0xff]  }
 0x340   : > { %6058 = vmatpush3.bf16.xpose.msra.mxu1 %v3891_v37  ;;  %v4967_v37 = vrot.slane %v4965_v9, 1 }
 0x341   : > { %6316 = vmatprep.subr.msk.bf16.mxu1 %vm872_vm0, %v8252_v0  ;;  %v4953_v0 = vor.u32 %v4952_v16, %v4949_v44  ;;  %v4490_v16 = vrot.slane %v8585_v48, 1  ;;  %v5124_v58 = vor.u32 %v5123_v56, %v5120_v50  ;;  %v8677_v50 = vld [vmem:[%s6647_s19 + $0x11c] sm:$0xff]  }
 0x343   : > { %v4954_v51 = vsel %vm4820_vm3, %v4944_v1, %v4953_v0  ;;  %v4963_v14 = vsel %vm4820_vm3, %v4953_v0, %v4962_v7  ;;  %v3900_v1 = vsel %vm872_vm0, %v8304_v4, 0  ;;  %v8965_v4 = vrot.slane %v8964_v26, 1 }
 0x344   : > { %v5112_v0 = vshll.u32 %v8966_v32, 16  ;;  %v4491_v17 = vsel %vm2367_vm2, %v4488_v2, %v4490_v16 }
 0x345   : > { %v4473_v44 = vsel %vm2367_vm2, %v8965_v4, %v4472_v31 }
 0x346   : > { %6110 = vmatpush3.bf16.xpose.msra.mxu0 %v5247_v61  ;;  %v8588_v61 = vor.u32 %v4970_v21, %v4967_v37  ;;  %v4582_v30 = vsel %vm872_vm0, %v4473_v44, 0  ;;  %v5114_v33 = vrot.slane %v5112_v0, 2  ;;  %v8648_v37 = vld [vmem:[%s6647_s19 + $0xcc] sm:$0xff]   ;;  %v8659_v44 = vld [vmem:[%s6647_s19 + $0x114] sm:$0xff]  }
 0x347   : > { %6339 = vmatprep.subr.msk.bf16.mxu0 %vm872_vm0, %v4945_v6  ;;  %v4478_v4 = vrot.slane %v8648_v37, 1  ;;  %v4496_v0 = vrot.slane %v8659_v44, 1 }
 0x348   : > { %6060 = vmatpush3.bf16.xpose.msra.mxu1 %v3894_v60  ;;  %v4972_v6 = vsel %vm4820_vm3, %v4962_v7, %v8588_v61  ;;  %v5109_v60 = vshrl.u32 %v8966_v32, 16 }
 0x349   : > { %6317 = vmatprep.subr.msk.bf16.mxu1 %vm872_vm0, %v8958_v5  ;;  %v4474_v5 = vrot.slane %v8597_v18, 1 }
 0x34a   : > { %v5111_v42 = vrot.slane %v5109_v60, 1  ;;  %v4479_v60 = vsel %vm2367_vm2, %v4476_v3, %v4478_v4 }
 0x34b   : > { %v4477_v2 = vsel %vm2367_vm2, %v4474_v5, %v4476_v3 }
 0x34e   : > { %6112 = vmatpush3.bf16.xpose.msra.mxu0 %v5250_v40  ;;  %v8610_v40 = vld [vmem:[%s6647_s19 + $0x104] sm:$0xff]  }
 0x34f   : > { %6340 = vmatprep.subr.msk.bf16.mxu0 %vm872_vm0, %v4954_v51  ;;  %v4900_v51 = vsel %vm4820_vm3, %v4890_v63, %v8458_v43  ;;  %v4492_v43 = vrot.slane %v8610_v40, 1  ;;  %v8969_v63 = vld [vmem:[#allocation10_spill] sm:$0xff] }
 0x350   : > { %6062 = vmatpush3.bf16.xpose.msra.mxu1 %v3897_v35  ;;  %v5259_v62 = vsel %vm872_vm0, %v4900_v51, 0  ;;  %v8631_v35 = vor.u32 %v5114_v33, %v5111_v42  ;;  %v4591_v51 = vsel %vm872_vm0, %v4479_v60, 0  ;;  %v4480_v33 = vrot.slane %v8668_v54, 1 }
 0x351   : > { %6318 = vmatprep.subr.msk.bf16.mxu1 %vm872_vm0, %v3800_v28  ;;  %v5130_v28 = vshll.u32 %v8968_v49, 16  ;;  %v4493_v9 = vsel %vm2367_vm2, %v4490_v16, %v4492_v43  ;;  %v8685_v49 = vld [vmem:[%s6647_s19 + $0xdc] sm:$0xff]  }
 0x352   : > { %v5125_v7 = vsel %vm4820_vm3, %v8631_v35, %v5124_v58 }
 0x353   : > { %v5132_v15 = vrot.slane %v5130_v28, 2  ;;  %v5334_v21 = vsel %vm872_vm0, %v5125_v7, 0 }
 0x356   : > { %6114 = vmatpush3.bf16.xpose.msra.mxu0 %v5253_v8  ;;  %v4494_v8 = vrot.slane %v8639_v13, 1 }
 0x357   : > { %6341 = vmatprep.subr.msk.bf16.mxu0 %vm872_vm0, %v4963_v14  ;;  %v5133_v14 = vor.u32 %v5132_v15, %v5129_v38  ;;  %v4482_v15 = vrot.slane %v8685_v49, 1 }
 0x358   : > { %6064 = vmatpush3.bf16.xpose.msra.mxu1 %v3900_v1  ;;  %v5136_v1 = vshrl.u32 %v8969_v63, 16  ;;  %v4495_v24 = vsel %vm2367_vm2, %v4492_v43, %v4494_v8  ;;  %v4497_v42 = vsel %vm2367_vm2, %v4494_v8, %v4496_v0 }
 0x359   : > { %6327 = vmatprep.subr.msk.bf16.mxu1 %vm872_vm0, %v4489_v52  ;;  %v5139_v52 = vshll.u32 %v8969_v63, 16  ;;  %v5134_v16 = vsel %vm4820_vm3, %v5124_v58, %v5133_v14  ;;  %v4498_v58 = vrot.slane %v8677_v50, 1  ;;  %v8700_v63 = vld [vmem:[%s6647_s19 + $0xe4] sm:$0xff]  }
 0x35a   : > { %v5337_v36 = vsel %vm872_vm0, %v5134_v16, 0  ;;  %v5166_v16 = vshll.u32 %v8318_v41, 16 }
 0x35b   : > { %v4499_v38 = vsel %vm2367_vm2, %v4496_v0, %v4498_v58 }
 0x35e   : > { %6116 = vmatpush3.bf16.xpose.msra.mxu0 %v5256_v12  ;;  %v5138_v12 = vrot.slane %v5136_v1, 1  ;;  %v4483_v1 = vsel %vm2367_vm2, %v4480_v33, %v4482_v15 }
 0x35f   : > { %6066 = vmatmul.mubr.msk.bf16.vlgmr.msra.gmra.mrb[0].mxu1 %vm872_vm0, %v8465_v46  ;;  %6342 = vmatprep.subr.msk.bf16.mxu0 %vm872_vm0, %v4972_v6  ;;  %v4475_v46 = vsel %vm2367_vm2, %v4472_v31, %v4474_v5  ;;  %v4588_v31 = vsel %vm872_vm0, %v4477_v2, 0  ;;  %v5141_v6 = vrot.slane %v5139_v52, 2  ;;  %v8694_v2 = vld [vmem:[%s6647_s19 + $0x124] sm:$0xff]   ;;  %s6352_s19 = smul.u32 96, %s8974_s13 }
 0x360   : > { %6086 = vmatpush3.bf16.xpose.msra.mxu1 %v4582_v30  ;;  %6101 = vmatprep.mubr.msk.bf16.mxu1 %vm872_vm0, %v8620_v29  ;;  %v4585_v26 = vsel %vm872_vm0, %v4475_v46, 0  ;;  %v8970_v30 = vld [vmem:[#allocation11_spill] sm:$0xff]  ;;  %v4500_v52 = vrot.slane %v8694_v2, 1 }
 0x361   : > { %6328 = vmatprep.subr.msk.bf16.mxu1 %vm872_vm0, %v4491_v17  ;;  %v5142_v45 = vor.u32 %v5141_v6, %v5138_v12  ;;  %v5145_v17 = vshrl.u32 %v8970_v30, 16  ;;  %v5148_v5 = vshll.u32 %v8970_v30, 16  ;;  %v4597_v12 = vsel %vm872_vm0, %v4483_v1, 0  ;;  %s8852_s30 = scalar_lea.vmem %s8878_s3, %s6352_s19 }
 0x362   : > { %v4484_v6 = vrot.slane %v8700_v63, 1  ;;  %v4501_v60 = vsel %vm2367_vm2, %v4498_v58, %v4500_v52 }
 0x363   : > { %v5143_v56 = vsel %vm4820_vm3, %v5133_v14, %v5142_v45  ;;  %v5147_v46 = vrot.slane %v5145_v17, 1  ;;  %v5150_v43 = vrot.slane %v5148_v5, 2  ;;  %v5040_v17 = vshll.u32 %v8561_v25, 16 }
 0x364   : > { %v5340_v34 = vsel %vm872_vm0, %v5143_v56, 0  ;;  %v4485_v30 = vsel %vm2367_vm2, %v4482_v15, %v4484_v6  ;;  %v5046_v5 = vshrl.u32 %v8564_v10, 16  ;;  %v5172_v56 = vshrl.u32 %v8335_v53, 16 }
 0x365   : > { %v5151_v28 = vor.u32 %v5150_v43, %v5147_v46  ;;  %v5175_v46 = vshll.u32 %v8335_v53, 16  ;;  %v4600_v43 = vsel %vm872_vm0, %v4485_v30, 0  ;;  %v5058_v15 = vshll.u32 %v8585_v48, 16 }
 0x366   : > { %6118 = vmatpush3.bf16.xpose.msra.mxu0 %v5259_v62  ;;  %v4481_v62 = vsel %vm2367_vm2, %v4478_v4, %v4480_v33  ;;  %v5163_v4 = vshrl.u32 %v8318_v41, 16  ;;  %v5037_v41 = vshrl.u32 %v8561_v25, 16  ;;  %v5184_v25 = vshll.u32 %v8357_v57, 16 }
 0x367   : > { %5461 = vmatprep.subr.bf16.mxu0 %v8929_v11  ;;  %v4594_v7 = vsel %vm872_vm0, %v4481_v62, 0  ;;  %v5152_v8 = vsel %vm4820_vm3, %v5142_v45, %v5151_v28  ;;  %v5168_v45 = vrot.slane %v5166_v16, 2  ;;  %v8972_v62 = vrot.slane %v8966_v32, 1 }
 0x368   : > { %6088 = vmatpush3.bf16.xpose.msra.mxu1 %v4585_v26  ;;  %v8971_v26 = vld [vmem:[#allocation14_spill] sm:$0xff]  ;;  %v4487_v32 = vsel %vm2367_vm2, %v4484_v6, %v4486_v55  ;;  %v5060_v55 = vrot.slane %v5058_v15, 2  ;;  %v5202_v15 = vshll.u32 %v8387_v20, 16 }
 0x369   : > { %6329 = vmatprep.subr.msk.bf16.mxu1 %vm872_vm0, %v4493_v9  ;;  %v5154_v9 = vshrl.u32 %v8971_v26, 16  ;;  %v5157_v3 = vshll.u32 %v8971_v26, 16  ;;  %v4503_v58 = vsel %vm2367_vm2, %v4500_v52, %v8972_v62  ;;  %v5039_v26 = vrot.slane %v5037_v41, 1 }
 0x36b   : > { %v5159_v14 = vrot.slane %v5157_v3, 2 }
 0x36d   : > { %6120 = vmatmul.mubr.msk.bf16.vlgmr.msra.gmra.mrb[0].mxu0 %vm872_vm0, %v8489_v22 }
 0x36e   : > { %5462 = vmatpush1.bf16.xpose.msra.mxu0 %v5334_v21  ;;  %5493 = vmatprep.mubr.bf16.mxu0 %v8929_v11  ;;  %v5156_v21 = vrot.slane %v5154_v9, 1  ;;  %v5048_v9 = vrot.slane %v5046_v5, 1  ;;  %v5067_v5 = vshll.u32 %v8610_v40, 16 }
 0x36f   : > { %5463 = vmatprep.subr.bf16.mxu0 %v8929_v11 }
 0x370   : > { %6090 = vmatpush3.bf16.xpose.msra.mxu1 %v4588_v31  ;;  %v5343_v31 = vsel %vm872_vm0, %v5152_v8, 0 }
 0x371   : > { %6330 = vmatprep.subr.msk.bf16.mxu1 %vm872_vm0, %v4495_v24  ;;  %v5160_v24 = vor.u32 %v5159_v14, %v5156_v21 }
 0x373   : > { %v5161_v0 = vsel %vm4820_vm3, %v5151_v28, %v5160_v24  ;;  %v4977_v28 = vshll.u32 %v8574_v19, 16 }
 0x375   : > { %v4979_v1 = vrot.slane %v4977_v28, 2  ;;  %v4995_v28 = vshll.u32 %v8628_v39, 16 }
 0x376   : > { %5464 = vmatpush1.bf16.xpose.msra.mxu0 %v5337_v36  ;;  %v5165_v36 = vrot.slane %v5163_v4, 1  ;;  %v5181_v4 = vshrl.u32 %v8357_v57, 16 }
 0x377   : > { %5465 = vmatprep.subr.bf16.mxu0 %v8929_v11 }
 0x378   : > { %6092 = vmatpush3.bf16.xpose.msra.mxu1 %v4591_v51  ;;  %v5049_v51 = vshll.u32 %v8564_v10, 16  ;;  %v5169_v33 = vor.u32 %v5168_v45, %v5165_v36  ;;  %v5042_v10 = vrot.slane %v5040_v17, 2  ;;  %v5183_v36 = vrot.slane %v5181_v4, 1 }
 0x379   : > { %6331 = vmatprep.subr.msk.bf16.mxu1 %vm872_vm0, %v4497_v42  ;;  %v5346_v42 = vsel %vm872_vm0, %v5161_v0, 0  ;;  %v5186_v45 = vrot.slane %v5184_v25, 2  ;;  %v5064_v17 = vshrl.u32 %v8610_v40, 16  ;;  %v5204_v25 = vrot.slane %v5202_v15, 2 }
 0x37a   : > { %v5051_v3 = vrot.slane %v5049_v51, 2  ;;  %v5170_v53 = vsel %vm4820_vm3, %v5160_v24, %v5169_v33  ;;  %v8735_v8 = vor.u32 %v5042_v10, %v5039_v26 }
 0x37b   : > { %v5349_v52 = vsel %vm872_vm0, %v5170_v53, 0  ;;  %v4997_v53 = vrot.slane %v4995_v28, 2 }
 0x37c   : > { %v5052_v21 = vor.u32 %v5051_v3, %v5048_v9  ;;  %v5073_v9 = vshrl.u32 %v8639_v13, 16 }
 0x37e   : > { %5466 = vmatpush1.bf16.xpose.msra.mxu0 %v5340_v34  ;;  %v4974_v34 = vshrl.u32 %v8574_v19, 16  ;;  %v5055_v19 = vshrl.u32 %v8585_v48, 16  ;;  %v4986_v48 = vshll.u32 %v8597_v18, 16  ;;  %v5053_v6 = vsel %vm4820_vm3, %v8735_v8, %v5052_v21 }
 0x37f   : > { %5467 = vmatprep.subr.bf16.mxu0 %v8929_v11 }
 0x380   : > { %6094 = vmatpush3.bf16.xpose.msra.mxu1 %v4594_v7  ;;  %v5174_v7 = vrot.slane %v5172_v56, 1  ;;  %v4976_v14 = vrot.slane %v4974_v34, 1  ;;  %v5057_v16 = vrot.slane %v5055_v19, 1  ;;  %v4988_v41 = vrot.slane %v4986_v48, 2 }
 0x381   : > { %6332 = vmatprep.subr.msk.bf16.mxu1 %vm872_vm0, %v4499_v38  ;;  %v5177_v38 = vrot.slane %v5175_v46, 2  ;;  %v5190_v56 = vshrl.u32 %v8372_v27, 16  ;;  %v5069_v34 = vrot.slane %v5067_v5, 2  ;;  %v5199_v19 = vshrl.u32 %v8387_v20, 16 }
 0x382   : > { %v5061_v57 = vor.u32 %v5060_v55, %v5057_v16  ;;  %v5085_v48 = vshll.u32 %v8659_v44, 16  ;;  %v5013_v5 = vshll.u32 %v8668_v54, 16 }
 0x383   : > { %v5178_v24 = vor.u32 %v5177_v38, %v5174_v7  ;;  %v5192_v40 = vrot.slane %v5190_v56, 1  ;;  %v5201_v4 = vrot.slane %v5199_v19, 1  ;;  %v5091_v56 = vshrl.u32 %v8677_v50, 16 }
 0x385   : > { %v5179_v0 = vsel %vm4820_vm3, %v5169_v33, %v5178_v24  ;;  %v5193_v33 = vshll.u32 %v8372_v27, 16 }
 0x386   : > { %5468 = vmatpush1.bf16.xpose.msra.mxu0 %v5343_v31  ;;  %v4603_v31 = vsel %vm872_vm0, %v4487_v32, 0  ;;  %v5352_v51 = vsel %vm872_vm0, %v5179_v0, 0  ;;  %v5208_v0 = vshrl.u32 %v8402_v59, 16 }
 0x387   : > { %5469 = vmatprep.subr.bf16.mxu0 %v8929_v11  ;;  %v5195_v26 = vrot.slane %v5193_v33, 2  ;;  %v5094_v33 = vshll.u32 %v8677_v50, 16  ;;  %v5093_v50 = vrot.slane %v5091_v56, 1 }
 0x388   : > { %6096 = vmatpush3.bf16.xpose.msra.mxu1 %v4597_v12  ;;  %v4983_v12 = vshrl.u32 %v8597_v18, 16 }
 0x389   : > { %6333 = vmatprep.subr.msk.bf16.mxu1 %vm872_vm0, %v4501_v60  ;;  %v4980_v60 = vor.u32 %v4979_v1, %v4976_v14  ;;  %v5196_v32 = vor.u32 %v5195_v26, %v5192_v40  ;;  %v5001_v1 = vshrl.u32 %v8648_v37, 16  ;;  %v5217_v40 = vshrl.u32 %v8416_v47, 16 }
 0x38a   : > { %v4985_v30 = vrot.slane %v4983_v12, 1  ;;  %v5220_v26 = vshll.u32 %v8416_v47, 16 }
 0x38b   : > { %v4981_v18 = vsel %vm4820_vm3, %v8588_v61, %v4980_v60  ;;  %v4992_v61 = vshrl.u32 %v8628_v39, 16  ;;  %v5076_v39 = vshll.u32 %v8639_v13, 16  ;;  %v5003_v16 = vrot.slane %v5001_v1, 1 }
 0x38c   : > { %v5286_v46 = vsel %vm872_vm0, %v4981_v18, 0  ;;  %v4989_v62 = vor.u32 %v4988_v41, %v4985_v30  ;;  %v5087_v18 = vrot.slane %v5085_v48, 2 }
 0x38d   : > { %v5078_v14 = vrot.slane %v5076_v39, 2  ;;  %v5019_v39 = vshrl.u32 %v8685_v49, 16 }
 0x38e   : > { %5470 = vmatpush1.bf16.xpose.msra.mxu0 %v5346_v42  ;;  %v5187_v42 = vor.u32 %v5186_v45, %v5183_v36  ;;  %v4990_v10 = vsel %vm4820_vm3, %v4980_v60, %v4989_v62  ;;  %v5205_v60 = vor.u32 %v5204_v25, %v5201_v4  ;;  %v5211_v36 = vshll.u32 %v8402_v59, 16 }
 0x38f   : > { %5471 = vmatprep.subr.bf16.mxu0 %v8929_v11  ;;  %v5289_v38 = vsel %vm872_vm0, %v4990_v10, 0  ;;  %v5021_v19 = vrot.slane %v5019_v39, 1 }
 0x390   : > { %6098 = vmatpush3.bf16.xpose.msra.mxu1 %v4600_v43  ;;  %v5062_v43 = vsel %vm4820_vm3, %v5052_v21, %v5061_v57  ;;  %v5188_v27 = vsel %vm4820_vm3, %v5178_v24, %v5187_v42  ;;  %v5075_v21 = vrot.slane %v5073_v9, 1  ;;  %v5197_v24 = vsel %vm4820_vm3, %v5187_v42, %v5196_v32 }
 0x391   : > { %6334 = vmatprep.subr.msk.bf16.mxu1 %vm872_vm0, %v4503_v58  ;;  %v5066_v58 = vrot.slane %v5064_v17, 1  ;;  %v5355_v7 = vsel %vm872_vm0, %v5188_v27, 0  ;;  %v5010_v17 = vshrl.u32 %v8668_v54, 16  ;;  %v5213_v42 = vrot.slane %v5211_v36, 2 }
 0x392   : > { %v5079_v20 = vor.u32 %v5078_v14, %v5075_v21  ;;  %v5015_v54 = vrot.slane %v5013_v5, 2  ;;  %v5096_v9 = vrot.slane %v5094_v33, 2  ;;  %v5103_v14 = vshll.u32 %v8694_v2, 16 }
 0x393   : > { %v5070_v3 = vor.u32 %v5069_v34, %v5066_v58 }
 0x394   : > { %v5097_v47 = vor.u32 %v5096_v9, %v5093_v50 }
 0x395   : > { %v5071_v13 = vsel %vm4820_vm3, %v5061_v57, %v5070_v3  ;;  %v5080_v57 = vsel %vm4820_vm3, %v5070_v3, %v5079_v20  ;;  %v5022_v3 = vshll.u32 %v8685_v49, 16  ;;  %v5100_v49 = vshrl.u32 %v8694_v2, 16 }
 0x396   : > { %5472 = vmatpush1.bf16.xpose.msra.mxu0 %v5349_v52  ;;  %v5004_v52 = vshll.u32 %v8648_v37, 16  ;;  %v5082_v37 = vshrl.u32 %v8659_v44, 16  ;;  %v5206_v44 = vsel %vm4820_vm3, %v5196_v32, %v5205_v60  ;;  %v5222_v32 = vrot.slane %v5220_v26, 2 }
 0x397   : > { %5473 = vmatprep.subr.bf16.mxu0 %v8929_v11  ;;  %v5361_v34 = vsel %vm872_vm0, %v5206_v44, 0  ;;  %v5024_v15 = vrot.slane %v5022_v3, 2 }
 0x398   : > { %6100 = vmatpush3.bf16.xpose.msra.mxu1 %v4603_v31  ;;  %v5006_v55 = vrot.slane %v5004_v52, 2  ;;  %v5084_v41 = vrot.slane %v5082_v37, 1 }
 0x399   : > { %6343 = vmatprep.subr.msk.bf16.mxu1 %vm872_vm0, %v5053_v6  ;;  %v5358_v6 = vsel %vm872_vm0, %v5197_v24, 0  ;;  %v5025_v25 = vor.u32 %v5024_v15, %v5021_v19 }
 0x39a   : > { %v5007_v30 = vor.u32 %v5006_v55, %v5003_v16  ;;  %v5105_v16 = vrot.slane %v5103_v14, 2  ;;  %v5028_v55 = vshrl.u32 %v8700_v63, 16 }
 0x39e   : > { %5474 = vmatpush1.bf16.xpose.msra.mxu0 %v5352_v51  ;;  %v5210_v51 = vrot.slane %v5208_v0, 1 }
 0x39f   : > { %6102 = vmatmul.mubr.msk.bf16.vlgmr.msra.gmra.mrb[0].mxu1 %vm872_vm0, %v8620_v29  ;;  %5475 = vmatprep.subr.bf16.mxu0 %v8929_v11  ;;  %v4994_v29 = vrot.slane %v4992_v61, 1 }
 0x3a0   : > { %6122 = vmatpush3.bf16.xpose.msra.mxu1 %v5286_v46  ;;  %6137 = vmatprep.mubr.msk.bf16.mxu1 %vm872_vm0, %v8489_v22  ;;  %v5214_v27 = vor.u32 %v5213_v42, %v5210_v51 }
 0x3a1   : > { %6344 = vmatprep.subr.msk.bf16.mxu1 %vm872_vm0, %v5062_v43  ;;  %v4998_v31 = vor.u32 %v4997_v53, %v4994_v29  ;;  %v5088_v43 = vor.u32 %v5087_v18, %v5084_v41 }
 0x3a3   : > { %v4999_v12 = vsel %vm4820_vm3, %v4989_v62, %v4998_v31  ;;  %v5008_v59 = vsel %vm4820_vm3, %v4998_v31, %v5007_v30  ;;  %v5012_v62 = vrot.slane %v5010_v17, 1  ;;  %v5089_v29 = vsel %vm4820_vm3, %v5079_v20, %v5088_v43 }
 0x3a4   : > { %v5292_v45 = vsel %vm872_vm0, %v4999_v12, 0  ;;  %v5295_v28 = vsel %vm872_vm0, %v5008_v59, 0  ;;  %v5229_v31 = vshll.u32 %v8428_v23, 16  ;;  %v5098_v4 = vsel %vm4820_vm3, %v5088_v43, %v5097_v47 }
 0x3a5   : > { %v5016_v53 = vor.u32 %v5015_v54, %v5012_v62  ;;  %v5102_v20 = vrot.slane %v5100_v49, 1  ;;  %v5031_v12 = vshll.u32 %v8700_v63, 16 }
 0x3a6   : > { %5476 = vmatpush1.bf16.xpose.msra.mxu0 %v5355_v7  ;;  %v5215_v7 = vsel %vm4820_vm3, %v5205_v60, %v5214_v27  ;;  %v5231_v48 = vrot.slane %v5229_v31, 2  ;;  %v5030_v60 = vrot.slane %v5028_v55, 1 }
 0x3a7   : > { %5477 = vmatprep.subr.bf16.mxu0 %v8929_v11  ;;  %v5017_v21 = vsel %vm4820_vm3, %v5007_v30, %v5016_v53  ;;  %v5364_v1 = vsel %vm872_vm0, %v5215_v7, 0  ;;  %v5033_v0 = vrot.slane %v5031_v12, 2 }
 0x3a8   : > { %6124 = vmatpush3.bf16.xpose.msra.mxu1 %v5289_v38  ;;  %v5219_v38 = vrot.slane %v5217_v40, 1  ;;  %v5298_v24 = vsel %vm872_vm0, %v5017_v21, 0 }
 0x3a9   : > { %6345 = vmatprep.subr.msk.bf16.mxu1 %vm872_vm0, %v5071_v13  ;;  %v5226_v13 = vshrl.u32 %v8428_v23, 16  ;;  %v5026_v23 = vsel %vm4820_vm3, %v5016_v53, %v5025_v25  ;;  %v5034_v30 = vor.u32 %v5033_v0, %v5030_v60 }
 0x3aa   : > { %v5223_v52 = vor.u32 %v5222_v32, %v5219_v38 }
 0x3ab   : > { %v5228_v37 = vrot.slane %v5226_v13, 1  ;;  %v5035_v18 = vsel %vm4820_vm3, %v5025_v25, %v5034_v30  ;;  %v5044_v51 = vsel %vm4820_vm3, %v5034_v30, %v8735_v8 }
 0x3ac   : > { %v5224_v2 = vsel %vm4820_vm3, %v5214_v27, %v5223_v52  ;;  %v5304_v5 = vsel %vm872_vm0, %v5035_v18, 0  ;;  %v5307_v59 = vsel %vm872_vm0, %v5044_v51, 0 }
 0x3ad   : > { %v5367_v36 = vsel %vm872_vm0, %v5224_v2, 0 }
 0x3ae   : > { %5478 = vmatpush1.bf16.xpose.msra.mxu0 %v5358_v6  ;;  %v5106_v6 = vor.u32 %v5105_v16, %v5102_v20 }
 0x3af   : > { %5479 = vmatprep.subr.bf16.mxu0 %v8929_v11 }
 0x3b0   : > { %6126 = vmatpush3.bf16.xpose.msra.mxu1 %v5292_v45  ;;  %v5232_v45 = vor.u32 %v5231_v48, %v5228_v37  ;;  %v5107_v63 = vsel %vm4820_vm3, %v5097_v47, %v5106_v6  ;;  %v5116_v44 = vsel %vm4820_vm3, %v5106_v6, %v8631_v35  ;;  %v5521_v35 = vpop.permute.xlu0 %5520 }
 0x3b1   : > { %6346 = vmatprep.subr.msk.bf16.mxu1 %vm872_vm0, %v5080_v57  ;;  %v5301_v57 = vsel %vm872_vm0, %v5026_v23, 0 }
 0x3b2   : > { %v8795_v46 = vpop.f32.mrb[4].mxu1  ;;  %v5233_v41 = vsel %vm4820_vm3, %v5223_v52, %v5232_v45  ;;  %v5373_v42 = vsel %vm872_vm0, %v5232_v45, 0 }
 0x3b3   : > { %v8797_v58 = vpop.f32.mrb[5].mxu1  ;;  %v5370_v17 = vsel %vm872_vm0, %v5233_v41, 0 }
 0x3b4   : > { %v8800_v61 = vpop.f32.mrb[6].mxu1  ;;  %v5526_v8 = vpop.permute.xlu0 %5525 }
 0x3b5   : > { %v8805_v10 = vpop.f32.mrb[7].mxu1 }
 0x3b6   : > { %5480 = vmatpush1.bf16.xpose.msra.mxu0 %v5361_v34 }
 0x3b7   : > { %5481 = vmatprep.subr.bf16.mxu0 %v8929_v11 }
 0x3b8   : > { %6128 = vmatpush3.bf16.xpose.msra.mxu1 %v5295_v28 }
 0x3b9   : > { %6347 = vmatprep.subr.msk.bf16.mxu1 %vm872_vm0, %v5089_v29 }
 0x3be   : > { %5482 = vmatpush1.bf16.xpose.msra.mxu0 %v5364_v1 }
 0x3bf   : > { %5483 = vmatprep.subr.bf16.mxu0 %v8929_v11 }
 0x3c0   : > { %6130 = vmatpush3.bf16.xpose.msra.mxu1 %v5298_v24 }
 0x3c1   : > { %6348 = vmatprep.subr.msk.bf16.mxu1 %vm872_vm0, %v5098_v4 }
 0x3c6   : > { %5484 = vmatpush1.bf16.xpose.msra.mxu0 %v5367_v36 }
 0x3c7   : > { %5485 = vmatprep.subr.bf16.mxu0 %v8929_v11 }
 0x3c8   : > { %6132 = vmatpush3.bf16.xpose.msra.mxu1 %v5301_v57 }
 0x3c9   : > { %6349 = vmatprep.subr.msk.bf16.mxu1 %vm872_vm0, %v5107_v63 }
 0x3ce   : > { %5486 = vmatpush1.bf16.xpose.msra.mxu0 %v5370_v17 }
 0x3cf   : > { %5487 = vmatprep.subr.bf16.mxu0 %v8929_v11 }
 0x3d0   : > { %6134 = vmatpush3.bf16.xpose.msra.mxu1 %v5304_v5 }
 0x3d1   : > { %6350 = vmatprep.subr.msk.bf16.mxu1 %vm872_vm0, %v5116_v44 }
 0x3d6   : > { %5488 = vmatpush1.bf16.xpose.msra.mxu0 %v5373_v42 }
 0x3d8   : > { %6136 = vmatpush3.bf16.xpose.msra.mxu1 %v5307_v59 }
 0x3dd   : > { %5848 = vmatmul.mubr.msk.bf16.vlgmr.msra.gmra.mrb[4].mxu0 %vm872_vm0, %v8489_v22 }
 0x3df   : > { %6138 = vmatmul.mubr.msk.bf16.vlgmr.msra.gmra.mrb[0].mxu1 %vm872_vm0, %v8489_v22 }
 0x440   : > { %v5409_v11 = vpop.f32.mrb[0].mxu0 }
 0x441   : > { %v5528_v56 = vadd.f32 %v5521_v35, %v5409_v11  ;;  %v5411_v33 = vpop.f32.mrb[1].mxu0 }
 0x442   : > { %v5529_v43 = vadd.f32 %v5521_v35, %v5411_v33  ;;  %v5413_v62 = vpop.f32.mrb[2].mxu0 }
 0x443   : > { %5540 = vst [vmem:[%s8852_s30] sm:$0xff] %v5528_v56  ;;  %v5534_v54 = vadd.f32 %v5526_v8, %v5413_v62  ;;  %v5415_v22 = vpop.f32.mrb[3].mxu0 }
 0x444   : > { %5541 = vst [vmem:[%s8852_s30 + $0x8] sm:$0xff] %v5529_v43  ;;  %v5535_v34 = vadd.f32 %v5526_v8, %v5415_v22 }
 0x445   : > { %5547 = vst [vmem:[%s8852_s30 + $0x30] sm:$0xff] %v5534_v54 }
 0x446   : > { %5548 = vst [vmem:[%s8852_s30 + $0x38] sm:$0xff] %v5535_v34 }
 0x4b0   : > { %v5495_v28 = vpop.f32.mrb[4].mxu0 }
 0x4b1   : > { %v6139_v27 = vadd.f32 %v5495_v28, %v8795_v46  ;;  %v5497_v40 = vpop.f32.mrb[5].mxu0 }
 0x4b2   : > { %v5452_v26 = vpop.f32.mrb[0].mxu1  ;;  %v6140_v50 = vadd.f32 %v5497_v40, %v8797_v58  ;;  %v5499_v9 = vpop.f32.mrb[6].mxu0 }
 0x4b3   : > { %v5530_v39 = vadd.f32 %v5521_v35, %v5452_v26  ;;  %v5532_v3 = vadd.f32 %v6139_v27, %v5521_v35  ;;  %v5454_v29 = vpop.f32.mrb[1].mxu1  ;;  %v6141_v53 = vadd.f32 %v5499_v9, %v8800_v61  ;;  %v5501_v7 = vpop.f32.mrb[7].mxu0 }
 0x4b4   : > { %v5531_v38 = vadd.f32 %v5521_v35, %v5454_v29  ;;  %v5533_v46 = vadd.f32 %v6140_v50, %v5521_v35  ;;  %v5456_v32 = vpop.f32.mrb[2].mxu1  ;;  %v6142_v47 = vadd.f32 %v5501_v7, %v8805_v10 }
 0x4b5   : > { %5542 = vst [vmem:[%s8852_s30 + $0x10] sm:$0xff] %v5530_v39  ;;  %5544 = vst [vmem:[%s8852_s30 + $0x20] sm:$0xff] %v5532_v3  ;;  %v5536_v58 = vadd.f32 %v5526_v8, %v5456_v32  ;;  %v5538_v19 = vadd.f32 %v6141_v53, %v5526_v8  ;;  %v5458_v15 = vpop.f32.mrb[3].mxu1 }
 0x4b6   : > { %5543 = vst [vmem:[%s8852_s30 + $0x18] sm:$0xff] %v5531_v38  ;;  %5546 = vst.msk [vmem:[%s8852_s30 + $0x28] sm:$0xff] %vm5545_vm4, %v5533_v46  ;;  %v5537_v21 = vadd.f32 %v5526_v8, %v5458_v15  ;;  %v5539_v49 = vadd.f32 %v6142_v47, %v5526_v8 }
 0x4b7   : > { %5549 = vst [vmem:[%s8852_s30 + $0x40] sm:$0xff] %v5536_v58  ;;  %5551 = vst [vmem:[%s8852_s30 + $0x50] sm:$0xff] %v5538_v19 }
 0x4b8   : > { %5550 = vst [vmem:[%s8852_s30 + $0x48] sm:$0xff] %v5537_v21  ;;  %5552 = vst.msk [vmem:[%s8852_s30 + $0x58] sm:$0xff] %vm5545_vm4, %v5539_v49 }
 0x4b9 PF: > { %s13_s12 = sadd.s32 1, %s6600_s12  }
 0x4ba   : > { %p10_p4 = scmp.ge.s32.totalorder %s13_s12, 4  }
 0x4bc   :  { %12 = sbr.rel (!%p10_p4) target bundleno = 1 (0x1), region = 69 }

</bundles_post_ra>
